<compile_context>
chip_gen: v7x
topology: tpu7x:2x2x1
jax: 0.10.0
libtpu: 0.0.40
codegen_flags: <defaults>
</compile_context>

<pallas_src>
import jax
import jax.numpy as jnp
from jax.experimental import pallas as pl
from jax.experimental.pallas import tpu as pltpu

EPS = 1e-5
LANE = 128  # channel padding granularity (vreg lane width)


def _round_up(c, m=LANE):
    return ((c + m - 1) // m) * m


def _pick_tile_h(H):
    # Row-tile height: multiple of 8 that divides H. 8 rows x W x 128ch x 4B per
    # block stays far inside every generation's VMEM budget (v7x: 64 MiB phys /
    # 32 MiB scoped) even at real UNet widths; tune upward for large images.
    return 8 if H % 8 == 0 else H


# --------------------------------------------------------------------------
# Kernel 1: 3x3 conv on a spatially pre-padded bf16 input + per-tile stats.
# --------------------------------------------------------------------------
def _conv1_kernel(TH, W, CI, CO):
    n = TH * W

    def kernel(x_main, x_r0, x_r1, w_ref, y_ref, st_ref, xt_ref, pt_ref):
        # x_main: (1, TH, W+2, CI) bf16   padded rows [i*TH, i*TH+TH)
        # x_r0  : (1, 1,  W+2, CI) bf16   padded row  i*TH+TH      (halo)
        # x_r1  : (1, 1,  W+2, CI) bf16   padded row  i*TH+TH+1    (halo)
        # w_ref : (9*CI, CO) bf16         im2col weights, (dy, dx, cin) x cout
        # y_ref : (1, TH, W, CO) f32      raw conv1 output (pre-BN)
        # st_ref: (1, 1, 2, CO) f32       per-tile [sum ; sum of squares]
        # xt_ref: (TH+2, W+2, CI) bf16    halo'd input tile (scratch)
        # pt_ref: (n, 9*CI) bf16          im2col patches (scratch)
        xt_ref[0:TH, :, :] = x_main[0]
        xt_ref[TH:TH + 1, :, :] = x_r0[0]
        xt_ref[TH + 1:TH + 2, :, :] = x_r1[0]

        k = 0
        for dy in range(3):
            for dx in range(3):
                pt_ref[:, k * CI:(k + 1) * CI] = (
                    xt_ref[dy:dy + TH, dx:dx + W, :].reshape(n, CI))
                k += 1

        # Single MXU matmul: (n, 9*CI) @ (9*CI, CO), f32 accumulation.
        acc = jnp.dot(pt_ref[...], w_ref[...],
                      preferred_element_type=jnp.float32)
        y_ref[...] = acc.reshape(1, TH, W, CO)

        s = jnp.sum(acc, axis=0, keepdims=True)
        ss = jnp.sum(acc * acc, axis=0, keepdims=True)
        st_ref[0:1, 0:1, 0:1, :] = s.reshape(1, 1, 1, CO)
        st_ref[0:1, 0:1, 1:2, :] = ss.reshape(1, 1, 1, CO)

    return kernel


# --------------------------------------------------------------------------
# Kernel 2: BN1 + ReLU (fused scale/shift) -> 3x3 conv + per-tile stats.
# Halo rows come from two extra 1-row BlockSpecs; image boundary rows and the
# 1-pixel left/right border are zeroed explicitly (no full-scratch zero fill).
# --------------------------------------------------------------------------
def _bn_conv2_kernel(TH, W, CI, CO):
    n = TH * W

    def kernel(y_main, y_top, y_bot, w_ref, sc_ref, sh_ref,
               y2_ref, st_ref, t_ref, pt_ref):
        i = pl.program_id(1)
        last = pl.num_programs(1) - 1
        scale = sc_ref[...].reshape(1, 1, CI)
        shift = sh_ref[...].reshape(1, 1, CI)

        def bn_relu(v):                       # v: (rows, W, CI) f32
            return jnp.maximum(v * scale + shift, 0.0).astype(jnp.bfloat16)

        # Zero only the 1-pixel left/right border columns.
        zcol = jnp.zeros((TH + 2, 1, CI), jnp.bfloat16)
        t_ref[:, 0:1, :] = zcol
        t_ref[:, W + 1:W + 2, :] = zcol

        # Interior rows.
        t_ref[1:TH + 1, 1:W + 1, :] = bn_relu(y_main[0])

        # Top halo row (zero padding at the image top).
        @pl.when(i > 0)
        def _():
            t_ref[0:1, 1:W + 1, :] = bn_relu(y_top[0])

        @pl.when(i == 0)
        def _():
            t_ref[0:1, 1:W + 1, :] = jnp.zeros((1, W, CI), jnp.bfloat16)

        # Bottom halo row (zero padding at the image bottom).
        @pl.when(i < last)
        def _():
            t_ref[TH + 1:TH + 2, 1:W + 1, :] = bn_relu(y_bot[0])

        @pl.when(i == last)
        def _():
            t_ref[TH + 1:TH + 2, 1:W + 1, :] = jnp.zeros((1, W, CI), jnp.bfloat16)

        k = 0
        for dy in range(3):
            for dx in range(3):
                pt_ref[:, k * CI:(k + 1) * CI] = (
                    t_ref[dy:dy + TH, dx:dx + W, :].reshape(n, CI))
                k += 1

        acc = jnp.dot(pt_ref[...], w_ref[...],
                      preferred_element_type=jnp.float32)
        y2_ref[...] = acc.reshape(1, TH, W, CO)

        s = jnp.sum(acc, axis=0, keepdims=True)
        ss = jnp.sum(acc * acc, axis=0, keepdims=True)
        st_ref[0:1, 0:1, 0:1, :] = s.reshape(1, 1, 1, CO)
        st_ref[0:1, 0:1, 1:2, :] = ss.reshape(1, 1, 1, CO)

    return kernel


# --------------------------------------------------------------------------
# Kernel 3: BN2 + ReLU (elementwise, lane-dense).
# --------------------------------------------------------------------------
def _bn_relu_kernel(y_ref, sc_ref, sh_ref, o_ref):
    c = sc_ref.shape[-1]
    scale = sc_ref[...].reshape(1, 1, 1, c)
    shift = sh_ref[...].reshape(1, 1, 1, c)
    o_ref[...] = jnp.maximum(y_ref[...] * scale + shift, 0.0)


def _fold_bn(stats, gamma, beta, npix):
    """Per-tile [sum, sumsq] -> fused BN scale/shift (training mode, biased var)."""
    tot = jnp.sum(stats, axis=(0, 1))          # (2, Cp)
    mean = tot[0] / npix
    var = tot[1] / npix - mean * mean          # biased variance, as PyTorch BN
    inv = jax.lax.rsqrt(var + EPS)
    scale = gamma * inv
    shift = beta - mean * scale
    return scale.reshape(1, -1), shift.reshape(1, -1)


def make_params(key, in_channels, out_channels):
    k1, k2, k3, k4 = jax.random.split(key, 4)
    return dict(
        w1=jax.random.normal(k1, (out_channels, in_channels, 3, 3), jnp.float32) * 0.1,
        b1=jax.random.normal(k2, (out_channels,), jnp.float32) * 0.1,
        g1=jnp.ones((out_channels,), jnp.float32),
        bt1=jnp.zeros((out_channels,), jnp.float32),
        w2=jax.random.normal(k3, (out_channels, out_channels, 3, 3), jnp.float32) * 0.1,
        b2=jax.random.normal(k4, (out_channels,), jnp.float32) * 0.1,
        g2=jnp.ones((out_channels,), jnp.float32),
        bt2=jnp.zeros((out_channels,), jnp.float32),
    )


def double_conv(x_nchw, p):
    x = jnp.transpose(x_nchw, (0, 2, 3, 1))            # NCHW -> NHWC
    B, H, W, Cin = x.shape
    Cout = p["w1"].shape[0]
    CI, CO = _round_up(Cin), _round_up(Cout)
    TH = _pick_tile_h(H)
    NR = H // TH
    npix = B * H * W

    # Layout prep (one fused XLA pass): channel pad to the lane width, 1-pixel
    # spatial zero pad for conv1, bf16 for the MXU.
    xp = jnp.pad(x.astype(jnp.bfloat16),
                 ((0, 0), (1, 1), (1, 1), (0, CI - Cin)))      # (B, H+2, W+2, CI)

    def prep_w(w, ci, cp):
        # (Cout, Cin, 3, 3) -> (3, 3, Cin, Cout) -> zero-pad -> (9*cp, CO) bf16
        w = jnp.transpose(w, (2, 3, 1, 0))
        w = jnp.pad(w, ((0, 0), (0, 0), (0, cp - ci), (0, CO - Cout)))
        return w.reshape(9 * cp, CO).astype(jnp.bfloat16)

    w1 = prep_w(p["w1"], Cin, CI)
    w2 = prep_w(p["w2"], Cout, CO)

    padc = lambda v, fill: jnp.pad(v.astype(jnp.float32), (0, CO - Cout),
                                   constant_values=fill)
    g1, bt1 = padc(p["g1"], 1.0), padc(p["bt1"], 0.0)
    g2, bt2 = padc(p["g2"], 1.0), padc(p["bt2"], 0.0)
    # NOTE: conv biases p["b1"], p["b2"] are intentionally unused: training-mode
    # BatchNorm subtracts the batch mean, which cancels a per-channel bias exactly.

    cparams = pltpu.CompilerParams(
        dimension_semantics=("parallel", "parallel"),   # batch x row-tiles (megacore)
        vmem_limit_bytes=32 * 1024 * 1024)

    # ---- kernel 1: conv1 + per-tile stats --------------------------------
    y1_raw, s1 = pl.pallas_call(
        _conv1_kernel(TH, W, CI, CO),
        grid=(B, NR),
        in_specs=[
            pl.BlockSpec((1, TH, W + 2, CI), lambda b, i: (b, i, 0, 0)),
            pl.BlockSpec((1, 1, W + 2, CI), lambda b, i: (b, i * TH + TH, 0, 0)),
            pl.BlockSpec((1, 1, W + 2, CI), lambda b, i: (b, i * TH + TH + 1, 0, 0)),
            pl.BlockSpec((9 * CI, CO), lambda b, i: (0, 0)),
        ],
        out_specs=(
            pl.BlockSpec((1, TH, W, CO), lambda b, i: (b, i, 0, 0)),
            pl.BlockSpec((1, 1, 2, CO), lambda b, i: (b, i, 0, 0)),
        ),
        out_shape=(
            jax.ShapeDtypeStruct((B, H, W, CO), jnp.float32),
            jax.ShapeDtypeStruct((B, NR, 2, CO), jnp.float32),
        ),
        scratch_shapes=[
            pltpu.VMEM((TH + 2, W + 2, CI), jnp.bfloat16),
            pltpu.VMEM((TH * W, 9 * CI), jnp.bfloat16),
        ],
        compiler_params=cparams,
        cost_estimate=pl.CostEstimate(
            flops=2 * npix * 9 * CI * CO, transcendentals=0,
            bytes_accessed=xp.size * 2 + w1.size * 2 + npix * CO * 4),
    )(xp, xp, xp, w1)

    scale1, shift1 = _fold_bn(s1, g1, bt1, npix)

    # ---- kernel 2: BN1 + ReLU + conv2 + per-tile stats --------------------
    y2_raw, s2 = pl.pallas_call(
        _bn_conv2_kernel(TH, W, CO, CO),
        grid=(B, NR),
        in_specs=[
            pl.BlockSpec((1, TH, W, CO), lambda b, i: (b, i, 0, 0)),
            pl.BlockSpec((1, 1, W, CO),
                         lambda b, i: (b, jnp.maximum(i * TH - 1, 0), 0, 0)),
            pl.BlockSpec((1, 1, W, CO),
                         lambda b, i: (b, jnp.minimum(i * TH + TH, H - 1), 0, 0)),
            pl.BlockSpec((9 * CO, CO), lambda b, i: (0, 0)),
            pl.BlockSpec((1, CO), lambda b, i: (0, 0)),
            pl.BlockSpec((1, CO), lambda b, i: (0, 0)),
        ],
        out_specs=(
            pl.BlockSpec((1, TH, W, CO), lambda b, i: (b, i, 0, 0)),
            pl.BlockSpec((1, 1, 2, CO), lambda b, i: (b, i, 0, 0)),
        ),
        out_shape=(
            jax.ShapeDtypeStruct((B, H, W, CO), jnp.float32),
            jax.ShapeDtypeStruct((B, NR, 2, CO), jnp.float32),
        ),
        scratch_shapes=[
            pltpu.VMEM((TH + 2, W + 2, CO), jnp.bfloat16),
            pltpu.VMEM((TH * W, 9 * CO), jnp.bfloat16),
        ],
        compiler_params=cparams,
        cost_estimate=pl.CostEstimate(
            flops=2 * npix * 9 * CO * CO, transcendentals=0,
            bytes_accessed=2 * npix * CO * 4 + w2.size * 2),
    )(y1_raw, y1_raw, y1_raw, w2, scale1, shift1)

    scale2, shift2 = _fold_bn(s2, g2, bt2, npix)

    # ---- kernel 3: BN2 + ReLU ---------------------------------------------
    out_p = pl.pallas_call(
        _bn_relu_kernel,
        grid=(B, NR),
        in_specs=[
            pl.BlockSpec((1, TH, W, CO), lambda b, i: (b, i, 0, 0)),
            pl.BlockSpec((1, CO), lambda b, i: (0, 0)),
            pl.BlockSpec((1, CO), lambda b, i: (0, 0)),
        ],
        out_specs=pl.BlockSpec((1, TH, W, CO), lambda b, i: (b, i, 0, 0)),
        out_shape=jax.ShapeDtypeStruct((B, H, W, CO), jnp.float32),
        compiler_params=cparams,
        cost_estimate=pl.CostEstimate(
            flops=2 * npix * CO, transcendentals=0,
            bytes_accessed=2 * npix * CO * 4),
    )(y2_raw, scale2, shift2)

    # Drop channel padding, NHWC -> NCHW at the PyTorch boundary.
    return jnp.transpose(out_p[..., :Cout], (0, 3, 1, 2))


def double_conv_ref(x, p, conv_dtype=jnp.float32):
    """Pure-JAX reference = PyTorch DoubleConv in training mode.

    conv_dtype=bf16 matches the kernel's MXU operand precision (f32 accumulation,
    f32 BatchNorm/ReLU); conv_dtype=f32 is the exact PyTorch-semantics reference.
    """
    def conv_bn_relu(x, w, b, g, bt):
        y = jax.lax.conv_general_dilated(
            x.astype(conv_dtype), w.astype(conv_dtype),
            window_strides=(1, 1), padding="SAME",
            dimension_numbers=("NCHW", "OIHW", "NCHW"),
            preferred_element_type=jnp.float32)
        y = y + b.reshape(1, -1, 1, 1)
        mean = jnp.mean(y, axis=(0, 2, 3), keepdims=True)
        var = jnp.mean((y - mean) ** 2, axis=(0, 2, 3), keepdims=True)
        y = (y - mean) * jax.lax.rsqrt(var + EPS) * g.reshape(1, -1, 1, 1) \
            + bt.reshape(1, -1, 1, 1)
        return jnp.maximum(y, 0.0)

    y = conv_bn_relu(x, p["w1"], p["b1"], p["g1"], p["bt1"])
    return conv_bn_relu(y, p["w2"], p["b2"], p["g2"], p["bt2"])


if __name__ == "__main__":
    key = jax.random.PRNGKey(0)
    kx, kp = jax.random.split(key)
    B, Cin, Cout, H, W = 2, 4, 8, 16, 16

    x = jax.random.normal(kx, (B, Cin, H, W), jnp.float32)   # NCHW like PyTorch
    params = make_params(kp, Cin, Cout)

    out = jax.jit(double_conv)(x, params)
    out = jax.block_until_ready(out)
    assert out.shape == (B, Cout, H, W)

    # Numerics-matched reference (bf16 conv operands, f32 accumulation/BN).
    ref_bf16 = double_conv_ref(x, params, conv_dtype=jnp.bfloat16)
    assert jnp.allclose(out, ref_bf16, atol=1e-2, rtol=1e-2), \
        float(jnp.max(jnp.abs(out - ref_bf16)))

    # Full-f32 PyTorch semantics; looser tolerance covers the bf16 matmuls.
    ref_f32 = double_conv_ref(x, params, conv_dtype=jnp.float32)
    assert jnp.allclose(out, ref_f32, atol=1e-1, rtol=1e-1), \
        float(jnp.max(jnp.abs(out - ref_f32)))

    print("KERNEL_OK")
</pallas_src>

<mosaic_0001>
module attributes {stable_mosaic.version = 11 : i64} {
  func.func @kernel(%arg0: i32, %arg1: i32, %arg2: memref<1x8x18x128xbf16, #tpu.memory_space<vmem>>, %arg3: memref<1x1x18x128xbf16, #tpu.memory_space<vmem>>, %arg4: memref<1x1x18x128xbf16, #tpu.memory_space<vmem>>, %arg5: memref<1152x128xbf16, #tpu.memory_space<vmem>>, %arg6: memref<1x8x16x128xf32, #tpu.memory_space<vmem>>, %arg7: memref<1x1x2x128xf32, #tpu.memory_space<vmem>>, %arg8: memref<10x18x128xbf16, #tpu.memory_space<vmem>>, %arg9: memref<128x1152xbf16, #tpu.memory_space<vmem>>) attributes {dimension_semantics = [#tpu.dimension_semantics<parallel>, #tpu.dimension_semantics<parallel>], iteration_bounds = array<i64: 2, 2>, scalar_prefetch = 0 : i64, scratch_operands = 2 : i64, tpu.core_type = #tpu.core_type<tc>, window_params = [{transform_indices = @transform_0, window_bounds = array<i64: 1, 8, 18, 128>}, {transform_indices = @transform_1, window_bounds = array<i64: 1, 1, 18, 128>}, {transform_indices = @transform_2, window_bounds = array<i64: 1, 1, 18, 128>}, {pipeline_mode = #tpu.pipeline_mode<synchronous>, transform_indices = @transform_3, window_bounds = array<i64: 1152, 128>}, {transform_indices = @transform_4, window_bounds = array<i64: 1, 8, 16, 128>}, {transform_indices = @transform_5, window_bounds = array<i64: 1, 1, 2, 128>}]} {
    %c0 = arith.constant 0 : index
    %c0_0 = arith.constant 0 : index
    %c0_1 = arith.constant 0 : index
    %c0_2 = arith.constant 0 : index
    %0 = vector.load %arg2[%c0, %c0_0, %c0_1, %c0_2] : memref<1x8x18x128xbf16, #tpu.memory_space<vmem>>, vector<1x8x18x128xbf16>
    %1 = vector.shape_cast %0 : vector<1x8x18x128xbf16> to vector<8x18x128xbf16>
    %c0_3 = arith.constant 0 : index
    %c0_4 = arith.constant 0 : index
    %c0_5 = arith.constant 0 : index
    %2 = vector.load %arg8[%c0_3, %c0_4, %c0_5] : memref<10x18x128xbf16, #tpu.memory_space<vmem>>, vector<8x18x128xbf16>
    tpu.vector_store %arg8[%c0_3, %c0_4, %c0_5], %1 {strides = array<i32>} : memref<10x18x128xbf16, #tpu.memory_space<vmem>>, vector<8x18x128xbf16>,
    %c0_6 = arith.constant 0 : index
    %c0_7 = arith.constant 0 : index
    %c0_8 = arith.constant 0 : index
    %c0_9 = arith.constant 0 : index
    %3 = vector.load %arg3[%c0_6, %c0_7, %c0_8, %c0_9] : memref<1x1x18x128xbf16, #tpu.memory_space<vmem>>, vector<1x1x18x128xbf16>
    %4 = vector.shape_cast %3 : vector<1x1x18x128xbf16> to vector<1x18x128xbf16>
    %c8 = arith.constant 8 : index
    %c0_10 = arith.constant 0 : index
    %c0_11 = arith.constant 0 : index
    %5 = vector.load %arg8[%c8, %c0_10, %c0_11] : memref<10x18x128xbf16, #tpu.memory_space<vmem>>, vector<1x18x128xbf16>
    tpu.vector_store %arg8[%c8, %c0_10, %c0_11], %4 {strides = array<i32>} : memref<10x18x128xbf16, #tpu.memory_space<vmem>>, vector<1x18x128xbf16>,
    %c0_12 = arith.constant 0 : index
    %c0_13 = arith.constant 0 : index
    %c0_14 = arith.constant 0 : index
    %c0_15 = arith.constant 0 : index
    %6 = vector.load %arg4[%c0_12, %c0_13, %c0_14, %c0_15] : memref<1x1x18x128xbf16, #tpu.memory_space<vmem>>, vector<1x1x18x128xbf16>
    %7 = vector.shape_cast %6 : vector<1x1x18x128xbf16> to vector<1x18x128xbf16>
    %c9 = arith.constant 9 : index
    %c0_16 = arith.constant 0 : index
    %c0_17 = arith.constant 0 : index
    %8 = vector.load %arg8[%c9, %c0_16, %c0_17] : memref<10x18x128xbf16, #tpu.memory_space<vmem>>, vector<1x18x128xbf16>
    tpu.vector_store %arg8[%c9, %c0_16, %c0_17], %7 {strides = array<i32>} : memref<10x18x128xbf16, #tpu.memory_space<vmem>>, vector<1x18x128xbf16>,
    %c0_18 = arith.constant 0 : index
    %c0_19 = arith.constant 0 : index
    %c0_20 = arith.constant 0 : index
    %9 = vector.load %arg8[%c0_18, %c0_19, %c0_20] : memref<10x18x128xbf16, #tpu.memory_space<vmem>>, vector<8x16x128xbf16>
    %10 = vector.shape_cast %9 : vector<8x16x128xbf16> to vector<128x128xbf16>
    %c0_21 = arith.constant 0 : index
    %c0_22 = arith.constant 0 : index
    %11 = vector.load %arg9[%c0_21, %c0_22] : memref<128x1152xbf16, #tpu.memory_space<vmem>>, vector<128x128xbf16>
    tpu.vector_store %arg9[%c0_21, %c0_22], %10 {strides = array<i32>} : memref<128x1152xbf16, #tpu.memory_space<vmem>>, vector<128x128xbf16>,
    %c0_23 = arith.constant 0 : index
    %c1 = arith.constant 1 : index
    %c0_24 = arith.constant 0 : index
    %12 = vector.load %arg8[%c0_23, %c1, %c0_24] : memref<10x18x128xbf16, #tpu.memory_space<vmem>>, vector<8x16x128xbf16>
    %13 = vector.shape_cast %12 : vector<8x16x128xbf16> to vector<128x128xbf16>
    %c0_25 = arith.constant 0 : index
    %c128 = arith.constant 128 : index
    %14 = vector.load %arg9[%c0_25, %c128] : memref<128x1152xbf16, #tpu.memory_space<vmem>>, vector<128x128xbf16>
    tpu.vector_store %arg9[%c0_25, %c128], %13 {strides = array<i32>} : memref<128x1152xbf16, #tpu.memory_space<vmem>>, vector<128x128xbf16>,
    %c0_26 = arith.constant 0 : index
    %c2 = arith.constant 2 : index
    %c0_27 = arith.constant 0 : index
    %15 = vector.load %arg8[%c0_26, %c2, %c0_27] : memref<10x18x128xbf16, #tpu.memory_space<vmem>>, vector<8x16x128xbf16>
    %16 = vector.shape_cast %15 : vector<8x16x128xbf16> to vector<128x128xbf16>
    %c0_28 = arith.constant 0 : index
    %c256 = arith.constant 256 : index
    %17 = vector.load %arg9[%c0_28, %c256] : memref<128x1152xbf16, #tpu.memory_space<vmem>>, vector<128x128xbf16>
    tpu.vector_store %arg9[%c0_28, %c256], %16 {strides = array<i32>} : memref<128x1152xbf16, #tpu.memory_space<vmem>>, vector<128x128xbf16>,
    %c1_29 = arith.constant 1 : index
    %c0_30 = arith.constant 0 : index
    %c0_31 = arith.constant 0 : index
    %18 = vector.load %arg8[%c1_29, %c0_30, %c0_31] : memref<10x18x128xbf16, #tpu.memory_space<vmem>>, vector<8x16x128xbf16>
    %19 = vector.shape_cast %18 : vector<8x16x128xbf16> to vector<128x128xbf16>
    %c0_32 = arith.constant 0 : index
    %c384 = arith.constant 384 : index
    %20 = vector.load %arg9[%c0_32, %c384] : memref<128x1152xbf16, #tpu.memory_space<vmem>>, vector<128x128xbf16>
    tpu.vector_store %arg9[%c0_32, %c384], %19 {strides = array<i32>} : memref<128x1152xbf16, #tpu.memory_space<vmem>>, vector<128x128xbf16>,
    %c1_33 = arith.constant 1 : index
    %c1_34 = arith.constant 1 : index
    %c0_35 = arith.constant 0 : index
    %21 = vector.load %arg8[%c1_33, %c1_34, %c0_35] : memref<10x18x128xbf16, #tpu.memory_space<vmem>>, vector<8x16x128xbf16>
    %22 = vector.shape_cast %21 : vector<8x16x128xbf16> to vector<128x128xbf16>
    %c0_36 = arith.constant 0 : index
    %c512 = arith.constant 512 : index
    %23 = vector.load %arg9[%c0_36, %c512] : memref<128x1152xbf16, #tpu.memory_space<vmem>>, vector<128x128xbf16>
    tpu.vector_store %arg9[%c0_36, %c512], %22 {strides = array<i32>} : memref<128x1152xbf16, #tpu.memory_space<vmem>>, vector<128x128xbf16>,
    %c1_37 = arith.constant 1 : index
    %c2_38 = arith.constant 2 : index
    %c0_39 = arith.constant 0 : index
    %24 = vector.load %arg8[%c1_37, %c2_38, %c0_39] : memref<10x18x128xbf16, #tpu.memory_space<vmem>>, vector<8x16x128xbf16>
    %25 = vector.shape_cast %24 : vector<8x16x128xbf16> to vector<128x128xbf16>
    %c0_40 = arith.constant 0 : index
    %c640 = arith.constant 640 : index
    %26 = vector.load %arg9[%c0_40, %c640] : memref<128x1152xbf16, #tpu.memory_space<vmem>>, vector<128x128xbf16>
    tpu.vector_store %arg9[%c0_40, %c640], %25 {strides = array<i32>} : memref<128x1152xbf16, #tpu.memory_space<vmem>>, vector<128x128xbf16>,
    %c2_41 = arith.constant 2 : index
    %c0_42 = arith.constant 0 : index
    %c0_43 = arith.constant 0 : index
    %27 = vector.load %arg8[%c2_41, %c0_42, %c0_43] : memref<10x18x128xbf16, #tpu.memory_space<vmem>>, vector<8x16x128xbf16>
    %28 = vector.shape_cast %27 : vector<8x16x128xbf16> to vector<128x128xbf16>
    %c0_44 = arith.constant 0 : index
    %c768 = arith.constant 768 : index
    %29 = vector.load %arg9[%c0_44, %c768] : memref<128x1152xbf16, #tpu.memory_space<vmem>>, vector<128x128xbf16>
    tpu.vector_store %arg9[%c0_44, %c768], %28 {strides = array<i32>} : memref<128x1152xbf16, #tpu.memory_space<vmem>>, vector<128x128xbf16>,
    %c2_45 = arith.constant 2 : index
    %c1_46 = arith.constant 1 : index
    %c0_47 = arith.constant 0 : index
    %30 = vector.load %arg8[%c2_45, %c1_46, %c0_47] : memref<10x18x128xbf16, #tpu.memory_space<vmem>>, vector<8x16x128xbf16>
    %31 = vector.shape_cast %30 : vector<8x16x128xbf16> to vector<128x128xbf16>
    %c0_48 = arith.constant 0 : index
    %c896 = arith.constant 896 : index
    %32 = vector.load %arg9[%c0_48, %c896] : memref<128x1152xbf16, #tpu.memory_space<vmem>>, vector<128x128xbf16>
    tpu.vector_store %arg9[%c0_48, %c896], %31 {strides = array<i32>} : memref<128x1152xbf16, #tpu.memory_space<vmem>>, vector<128x128xbf16>,
    %c2_49 = arith.constant 2 : index
    %c2_50 = arith.constant 2 : index
    %c0_51 = arith.constant 0 : index
    %33 = vector.load %arg8[%c2_49, %c2_50, %c0_51] : memref<10x18x128xbf16, #tpu.memory_space<vmem>>, vector<8x16x128xbf16>
    %34 = vector.shape_cast %33 : vector<8x16x128xbf16> to vector<128x128xbf16>
    %c0_52 = arith.constant 0 : index
    %c1024 = arith.constant 1024 : index
    %35 = vector.load %arg9[%c0_52, %c1024] : memref<128x1152xbf16, #tpu.memory_space<vmem>>, vector<128x128xbf16>
    tpu.vector_store %arg9[%c0_52, %c1024], %34 {strides = array<i32>} : memref<128x1152xbf16, #tpu.memory_space<vmem>>, vector<128x128xbf16>,
    %c0_53 = arith.constant 0 : index
    %c0_54 = arith.constant 0 : index
    %36 = vector.load %arg9[%c0_53, %c0_54] : memref<128x1152xbf16, #tpu.memory_space<vmem>>, vector<128x1152xbf16>
    %c0_55 = arith.constant 0 : index
    %c0_56 = arith.constant 0 : index
    %37 = vector.load %arg5[%c0_55, %c0_56] : memref<1152x128xbf16, #tpu.memory_space<vmem>>, vector<1152x128xbf16>
    %cst = arith.constant dense<0.000000e+00> : vector<128x128xf32>
    %38 = tpu.matmul %36, %37, %cst {dimension_numbers = #tpu.dot_dimension_numbers<[1], [0], [0], [1], [0, 0, 1, 1], [], []>} : vector<128x1152xbf16>, vector<1152x128xbf16>, vector<128x128xf32> -> vector<128x128xf32>
    %39 = vector.shape_cast %38 : vector<128x128xf32> to vector<1x8x16x128xf32>
    %c0_57 = arith.constant 0 : index
    %c0_58 = arith.constant 0 : index
    %c0_59 = arith.constant 0 : index
    %c0_60 = arith.constant 0 : index
    %40 = vector.load %arg6[%c0_57, %c0_58, %c0_59, %c0_60] : memref<1x8x16x128xf32, #tpu.memory_space<vmem>>, vector<1x8x16x128xf32>
    tpu.vector_store %arg6[%c0_57, %c0_58, %c0_59, %c0_60], %39 {strides = array<i32>} : memref<1x8x16x128xf32, #tpu.memory_space<vmem>>, vector<1x8x16x128xf32>,
    %cst_61 = arith.constant dense<0.000000e+00> : vector<128xf32>
    %41 = vector.multi_reduction <add>, %38, %cst_61 [0] : vector<128x128xf32> to vector<128xf32>
    %42 = vector.shape_cast %41 : vector<128xf32> to vector<1x128xf32>
    %43 = arith.mulf %38, %38 : vector<128x128xf32>
    %cst_62 = arith.constant dense<0.000000e+00> : vector<128xf32>
    %44 = vector.multi_reduction <add>, %43, %cst_62 [0] : vector<128x128xf32> to vector<128xf32>
    %45 = vector.shape_cast %44 : vector<128xf32> to vector<1x128xf32>
    %46 = vector.shape_cast %42 : vector<1x128xf32> to vector<1x1x1x128xf32>
    %c0_63 = arith.constant 0 : index
    %c0_64 = arith.constant 0 : index
    %c0_65 = arith.constant 0 : index
    %c0_66 = arith.constant 0 : index
    %47 = vector.load %arg7[%c0_63, %c0_64, %c0_65, %c0_66] : memref<1x1x2x128xf32, #tpu.memory_space<vmem>>, vector<1x1x1x128xf32>
    tpu.vector_store %arg7[%c0_63, %c0_64, %c0_65, %c0_66], %46 {strides = array<i32>} : memref<1x1x2x128xf32, #tpu.memory_space<vmem>>, vector<1x1x1x128xf32>,
    %48 = vector.shape_cast %45 : vector<1x128xf32> to vector<1x1x1x128xf32>
    %c0_67 = arith.constant 0 : index
    %c0_68 = arith.constant 0 : index
    %c1_69 = arith.constant 1 : index
    %c0_70 = arith.constant 0 : index
    %49 = vector.load %arg7[%c0_67, %c0_68, %c1_69, %c0_70] : memref<1x1x2x128xf32, #tpu.memory_space<vmem>>, vector<1x1x1x128xf32>
    tpu.vector_store %arg7[%c0_67, %c0_68, %c1_69, %c0_70], %48 {strides = array<i32>} : memref<1x1x2x128xf32, #tpu.memory_space<vmem>>, vector<1x1x1x128xf32>,
    return
  }
  func.func @transform_0(%arg0: i32, %arg1: i32) -> (i32, i32, i32, i32) {
    %c0_i32 = arith.constant 0 : i32
    %c0_i32_0 = arith.constant 0 : i32
    %c0_i32_1 = arith.constant 0 : i32
    return %arg0, %arg1, %c0_i32, %c0_i32_0 : i32, i32, i32, i32
  }
  func.func @transform_1(%arg0: i32, %arg1: i32) -> (i32, i32, i32, i32) {
    %c8_i32 = arith.constant 8 : i32
    %0 = arith.muli %arg1, %c8_i32 : i32
    %c8_i32_0 = arith.constant 8 : i32
    %1 = arith.addi %0, %c8_i32_0 : i32
    %c0_i32 = arith.constant 0 : i32
    %c0_i32_1 = arith.constant 0 : i32
    %c0_i32_2 = arith.constant 0 : i32
    return %arg0, %1, %c0_i32, %c0_i32_1 : i32, i32, i32, i32
  }
  func.func @transform_2(%arg0: i32, %arg1: i32) -> (i32, i32, i32, i32) {
    %c8_i32 = arith.constant 8 : i32
    %0 = arith.muli %arg1, %c8_i32 : i32
    %c8_i32_0 = arith.constant 8 : i32
    %1 = arith.addi %0, %c8_i32_0 : i32
    %c1_i32 = arith.constant 1 : i32
    %2 = arith.addi %1, %c1_i32 : i32
    %c0_i32 = arith.constant 0 : i32
    %c0_i32_1 = arith.constant 0 : i32
    %c0_i32_2 = arith.constant 0 : i32
    return %arg0, %2, %c0_i32, %c0_i32_1 : i32, i32, i32, i32
  }
  func.func @transform_3(%arg0: i32, %arg1: i32) -> (i32, i32) {
    %c0_i32 = arith.constant 0 : i32
    %c0_i32_0 = arith.constant 0 : i32
    %c0_i32_1 = arith.constant 0 : i32
    return %c0_i32, %c0_i32_0 : i32, i32
  }
  func.func @transform_4(%arg0: i32, %arg1: i32) -> (i32, i32, i32, i32) {
    %c0_i32 = arith.constant 0 : i32
    %c0_i32_0 = arith.constant 0 : i32
    %c0_i32_1 = arith.constant 0 : i32
    return %arg0, %arg1, %c0_i32, %c0_i32_0 : i32, i32, i32, i32
  }
  func.func @transform_5(%arg0: i32, %arg1: i32) -> (i32, i32, i32, i32) {
    %c0_i32 = arith.constant 0 : i32
    %c0_i32_0 = arith.constant 0 : i32
    %c0_i32_1 = arith.constant 0 : i32
    return %arg0, %arg1, %c0_i32, %c0_i32_0 : i32, i32, i32, i32
  }
}

module attributes {stable_mosaic.version = 11 : i64} {
  func.func @_bn_relu_kernel(%arg0: i32, %arg1: i32, %arg2: memref<1x8x16x128xf32, #tpu.memory_space<vmem>>, %arg3: memref<1x128xf32, #tpu.memory_space<vmem>>, %arg4: memref<1x128xf32, #tpu.memory_space<vmem>>, %arg5: memref<1x8x16x128xf32, #tpu.memory_space<vmem>>) attributes {dimension_semantics = [#tpu.dimension_semantics<parallel>, #tpu.dimension_semantics<parallel>], iteration_bounds = array<i64: 2, 2>, scalar_prefetch = 0 : i64, scratch_operands = 0 : i64, tpu.core_type = #tpu.core_type<tc>, window_params = [{transform_indices = @transform_0, window_bounds = array<i64: 1, 8, 16, 128>}, {pipeline_mode = #tpu.pipeline_mode<synchronous>, transform_indices = @transform_1, window_bounds = array<i64: 1, 128>}, {pipeline_mode = #tpu.pipeline_mode<synchronous>, transform_indices = @transform_2, window_bounds = array<i64: 1, 128>}, {transform_indices = @transform_3, window_bounds = array<i64: 1, 8, 16, 128>}]} {
    %c0 = arith.constant 0 : index
    %c0_0 = arith.constant 0 : index
    %0 = vector.load %arg3[%c0, %c0_0] : memref<1x128xf32, #tpu.memory_space<vmem>>, vector<1x128xf32>
    %1 = vector.shape_cast %0 : vector<1x128xf32> to vector<1x1x1x128xf32>
    %c0_1 = arith.constant 0 : index
    %c0_2 = arith.constant 0 : index
    %2 = vector.load %arg4[%c0_1, %c0_2] : memref<1x128xf32, #tpu.memory_space<vmem>>, vector<1x128xf32>
    %3 = vector.shape_cast %2 : vector<1x128xf32> to vector<1x1x1x128xf32>
    %c0_3 = arith.constant 0 : index
    %c0_4 = arith.constant 0 : index
    %c0_5 = arith.constant 0 : index
    %c0_6 = arith.constant 0 : index
    %4 = vector.load %arg2[%c0_3, %c0_4, %c0_5, %c0_6] : memref<1x8x16x128xf32, #tpu.memory_space<vmem>>, vector<1x8x16x128xf32>
    %5 = vector.broadcast %1 : vector<1x1x1x128xf32> to vector<1x8x16x128xf32>
    %6 = arith.mulf %4, %5 : vector<1x8x16x128xf32>
    %7 = vector.broadcast %3 : vector<1x1x1x128xf32> to vector<1x8x16x128xf32>
    %8 = arith.addf %6, %7 : vector<1x8x16x128xf32>
    %cst = arith.constant 0.000000e+00 : f32
    %9 = vector.broadcast %cst : f32 to vector<1x8x16x128xf32>
    %10 = arith.maximumf %8, %9 : vector<1x8x16x128xf32>
    %c0_7 = arith.constant 0 : index
    %c0_8 = arith.constant 0 : index
    %c0_9 = arith.constant 0 : index
    %c0_10 = arith.constant 0 : index
    %11 = vector.load %arg5[%c0_7, %c0_8, %c0_9, %c0_10] : memref<1x8x16x128xf32, #tpu.memory_space<vmem>>, vector<1x8x16x128xf32>
    tpu.vector_store %arg5[%c0_7, %c0_8, %c0_9, %c0_10], %10 {strides = array<i32>} : memref<1x8x16x128xf32, #tpu.memory_space<vmem>>, vector<1x8x16x128xf32>,
    return
  }
  func.func @transform_0(%arg0: i32, %arg1: i32) -> (i32, i32, i32, i32) {
    %c0_i32 = arith.constant 0 : i32
    %c0_i32_0 = arith.constant 0 : i32
    %c0_i32_1 = arith.constant 0 : i32
    return %arg0, %arg1, %c0_i32, %c0_i32_0 : i32, i32, i32, i32
  }
  func.func @transform_1(%arg0: i32, %arg1: i32) -> (i32, i32) {
    %c0_i32 = arith.constant 0 : i32
    %c0_i32_0 = arith.constant 0 : i32
    %c0_i32_1 = arith.constant 0 : i32
    return %c0_i32, %c0_i32_0 : i32, i32
  }
  func.func @transform_2(%arg0: i32, %arg1: i32) -> (i32, i32) {
    %c0_i32 = arith.constant 0 : i32
    %c0_i32_0 = arith.constant 0 : i32
    %c0_i32_1 = arith.constant 0 : i32
    return %c0_i32, %c0_i32_0 : i32, i32
  }
  func.func @transform_3(%arg0: i32, %arg1: i32) -> (i32, i32, i32, i32) {
    %c0_i32 = arith.constant 0 : i32
    %c0_i32_0 = arith.constant 0 : i32
    %c0_i32_1 = arith.constant 0 : i32
    return %arg0, %arg1, %c0_i32, %c0_i32_0 : i32, i32, i32, i32
  }
}

module attributes {stable_mosaic.version = 11 : i64} {
  func.func @kernel(%arg0: i32, %arg1: i32, %arg2: memref<1x8x16x128xf32, #tpu.memory_space<vmem>>, %arg3: memref<1x1x16x128xf32, #tpu.memory_space<vmem>>, %arg4: memref<1x1x16x128xf32, #tpu.memory_space<vmem>>, %arg5: memref<1152x128xbf16, #tpu.memory_space<vmem>>, %arg6: memref<1x128xf32, #tpu.memory_space<vmem>>, %arg7: memref<1x128xf32, #tpu.memory_space<vmem>>, %arg8: memref<1x8x16x128xf32, #tpu.memory_space<vmem>>, %arg9: memref<1x1x2x128xf32, #tpu.memory_space<vmem>>, %arg10: memref<10x18x128xbf16, #tpu.memory_space<vmem>>, %arg11: memref<128x1152xbf16, #tpu.memory_space<vmem>>) attributes {dimension_semantics = [#tpu.dimension_semantics<parallel>, #tpu.dimension_semantics<parallel>], iteration_bounds = array<i64: 2, 2>, scalar_prefetch = 0 : i64, scratch_operands = 2 : i64, tpu.core_type = #tpu.core_type<tc>, window_params = [{transform_indices = @transform_0, window_bounds = array<i64: 1, 8, 16, 128>}, {transform_indices = @transform_1, window_bounds = array<i64: 1, 1, 16, 128>}, {transform_indices = @transform_2, window_bounds = array<i64: 1, 1, 16, 128>}, {pipeline_mode = #tpu.pipeline_mode<synchronous>, transform_indices = @transform_3, window_bounds = array<i64: 1152, 128>}, {pipeline_mode = #tpu.pipeline_mode<synchronous>, transform_indices = @transform_4, window_bounds = array<i64: 1, 128>}, {pipeline_mode = #tpu.pipeline_mode<synchronous>, transform_indices = @transform_5, window_bounds = array<i64: 1, 128>}, {transform_indices = @transform_6, window_bounds = array<i64: 1, 8, 16, 128>}, {transform_indices = @transform_7, window_bounds = array<i64: 1, 1, 2, 128>}]} {
    %c0 = arith.constant 0 : index
    %c0_0 = arith.constant 0 : index
    %0 = vector.load %arg6[%c0, %c0_0] : memref<1x128xf32, #tpu.memory_space<vmem>>, vector<1x128xf32>
    %1 = vector.shape_cast %0 : vector<1x128xf32> to vector<1x1x128xf32>
    %c0_1 = arith.constant 0 : index
    %c0_2 = arith.constant 0 : index
    %2 = vector.load %arg7[%c0_1, %c0_2] : memref<1x128xf32, #tpu.memory_space<vmem>>, vector<1x128xf32>
    %3 = vector.shape_cast %2 : vector<1x128xf32> to vector<1x1x128xf32>
    %cst = arith.constant 0.000000e+00 : bf16
    %4 = vector.broadcast %cst : bf16 to vector<10x1x128xbf16>
    %c0_3 = arith.constant 0 : index
    %c0_4 = arith.constant 0 : index
    %c0_5 = arith.constant 0 : index
    %5 = vector.load %arg10[%c0_3, %c0_4, %c0_5] : memref<10x18x128xbf16, #tpu.memory_space<vmem>>, vector<10x1x128xbf16>
    tpu.vector_store %arg10[%c0_3, %c0_4, %c0_5], %4 {strides = array<i32>} : memref<10x18x128xbf16, #tpu.memory_space<vmem>>, vector<10x1x128xbf16>,
    %c0_6 = arith.constant 0 : index
    %c17 = arith.constant 17 : index
    %c0_7 = arith.constant 0 : index
    %6 = vector.load %arg10[%c0_6, %c17, %c0_7] : memref<10x18x128xbf16, #tpu.memory_space<vmem>>, vector<10x1x128xbf16>
    tpu.vector_store %arg10[%c0_6, %c17, %c0_7], %4 {strides = array<i32>} : memref<10x18x128xbf16, #tpu.memory_space<vmem>>, vector<10x1x128xbf16>,
    %c0_8 = arith.constant 0 : index
    %c0_9 = arith.constant 0 : index
    %c0_10 = arith.constant 0 : index
    %c0_11 = arith.constant 0 : index
    %7 = vector.load %arg2[%c0_8, %c0_9, %c0_10, %c0_11] : memref<1x8x16x128xf32, #tpu.memory_space<vmem>>, vector<1x8x16x128xf32>
    %8 = vector.shape_cast %7 : vector<1x8x16x128xf32> to vector<8x16x128xf32>
    %9 = vector.broadcast %1 : vector<1x1x128xf32> to vector<8x16x128xf32>
    %10 = arith.mulf %8, %9 : vector<8x16x128xf32>
    %11 = vector.broadcast %3 : vector<1x1x128xf32> to vector<8x16x128xf32>
    %12 = arith.addf %10, %11 : vector<8x16x128xf32>
    %cst_12 = arith.constant 0.000000e+00 : f32
    %13 = vector.broadcast %cst_12 : f32 to vector<8x16x128xf32>
    %14 = arith.maximumf %12, %13 : vector<8x16x128xf32>
    %15 = arith.truncf %14 : vector<8x16x128xf32> to vector<8x16x128xbf16>
    %c1 = arith.constant 1 : index
    %c1_13 = arith.constant 1 : index
    %c0_14 = arith.constant 0 : index
    %16 = vector.load %arg10[%c1, %c1_13, %c0_14] : memref<10x18x128xbf16, #tpu.memory_space<vmem>>, vector<8x16x128xbf16>
    tpu.vector_store %arg10[%c1, %c1_13, %c0_14], %15 {strides = array<i32>} : memref<10x18x128xbf16, #tpu.memory_space<vmem>>, vector<8x16x128xbf16>,
    %c0_i32 = arith.constant 0 : i32
    %17 = arith.cmpi sgt, %arg1, %c0_i32 : i32
    %18 = arith.extui %17 : i1 to i32
    %c0_i32_15 = arith.constant 0 : i32
    %19 = arith.cmpi ne, %18, %c0_i32_15 : i32
    scf.if %19 {
      %c0_76 = arith.constant 0 : index
      %c0_77 = arith.constant 0 : index
      %c0_78 = arith.constant 0 : index
      %c0_79 = arith.constant 0 : index
      %70 = vector.load %arg3[%c0_76, %c0_77, %c0_78, %c0_79] : memref<1x1x16x128xf32, #tpu.memory_space<vmem>>, vector<1x1x16x128xf32>
      %71 = vector.shape_cast %70 : vector<1x1x16x128xf32> to vector<1x16x128xf32>
      %72 = vector.broadcast %1 : vector<1x1x128xf32> to vector<1x16x128xf32>
      %73 = arith.mulf %71, %72 : vector<1x16x128xf32>
      %74 = vector.broadcast %3 : vector<1x1x128xf32> to vector<1x16x128xf32>
      %75 = arith.addf %73, %74 : vector<1x16x128xf32>
      %cst_80 = arith.constant 0.000000e+00 : f32
      %76 = vector.broadcast %cst_80 : f32 to vector<1x16x128xf32>
      %77 = arith.maximumf %75, %76 : vector<1x16x128xf32>
      %78 = arith.truncf %77 : vector<1x16x128xf32> to vector<1x16x128xbf16>
      %c0_81 = arith.constant 0 : index
      %c1_82 = arith.constant 1 : index
      %c0_83 = arith.constant 0 : index
      %79 = vector.load %arg10[%c0_81, %c1_82, %c0_83] : memref<10x18x128xbf16, #tpu.memory_space<vmem>>, vector<1x16x128xbf16>
      tpu.vector_store %arg10[%c0_81, %c1_82, %c0_83], %78 {strides = array<i32>} : memref<10x18x128xbf16, #tpu.memory_space<vmem>>, vector<1x16x128xbf16>,
    } else {
    }
    %c0_i32_16 = arith.constant 0 : i32
    %20 = arith.cmpi eq, %arg1, %c0_i32_16 : i32
    %21 = arith.extui %20 : i1 to i32
    %c0_i32_17 = arith.constant 0 : i32
    %22 = arith.cmpi ne, %21, %c0_i32_17 : i32
    scf.if %22 {
      %cst_76 = arith.constant 0.000000e+00 : bf16
      %70 = vector.broadcast %cst_76 : bf16 to vector<1x16x128xbf16>
      %c0_77 = arith.constant 0 : index
      %c1_78 = arith.constant 1 : index
      %c0_79 = arith.constant 0 : index
      %71 = vector.load %arg10[%c0_77, %c1_78, %c0_79] : memref<10x18x128xbf16, #tpu.memory_space<vmem>>, vector<1x16x128xbf16>
      tpu.vector_store %arg10[%c0_77, %c1_78, %c0_79], %70 {strides = array<i32>} : memref<10x18x128xbf16, #tpu.memory_space<vmem>>, vector<1x16x128xbf16>,
    } else {
    }
    %c1_i32 = arith.constant 1 : i32
    %23 = arith.cmpi slt, %arg1, %c1_i32 : i32
    %24 = arith.extui %23 : i1 to i32
    %c0_i32_18 = arith.constant 0 : i32
    %25 = arith.cmpi ne, %24, %c0_i32_18 : i32
    scf.if %25 {
      %c0_76 = arith.constant 0 : index
      %c0_77 = arith.constant 0 : index
      %c0_78 = arith.constant 0 : index
      %c0_79 = arith.constant 0 : index
      %70 = vector.load %arg4[%c0_76, %c0_77, %c0_78, %c0_79] : memref<1x1x16x128xf32, #tpu.memory_space<vmem>>, vector<1x1x16x128xf32>
      %71 = vector.shape_cast %70 : vector<1x1x16x128xf32> to vector<1x16x128xf32>
      %72 = vector.broadcast %1 : vector<1x1x128xf32> to vector<1x16x128xf32>
      %73 = arith.mulf %71, %72 : vector<1x16x128xf32>
      %74 = vector.broadcast %3 : vector<1x1x128xf32> to vector<1x16x128xf32>
      %75 = arith.addf %73, %74 : vector<1x16x128xf32>
      %cst_80 = arith.constant 0.000000e+00 : f32
      %76 = vector.broadcast %cst_80 : f32 to vector<1x16x128xf32>
      %77 = arith.maximumf %75, %76 : vector<1x16x128xf32>
      %78 = arith.truncf %77 : vector<1x16x128xf32> to vector<1x16x128xbf16>
      %c9 = arith.constant 9 : index
      %c1_81 = arith.constant 1 : index
      %c0_82 = arith.constant 0 : index
      %79 = vector.load %arg10[%c9, %c1_81, %c0_82] : memref<10x18x128xbf16, #tpu.memory_space<vmem>>, vector<1x16x128xbf16>
      tpu.vector_store %arg10[%c9, %c1_81, %c0_82], %78 {strides = array<i32>} : memref<10x18x128xbf16, #tpu.memory_space<vmem>>, vector<1x16x128xbf16>,
    } else {
    }
    %c1_i32_19 = arith.constant 1 : i32
    %26 = arith.cmpi eq, %arg1, %c1_i32_19 : i32
    %27 = arith.extui %26 : i1 to i32
    %c0_i32_20 = arith.constant 0 : i32
    %28 = arith.cmpi ne, %27, %c0_i32_20 : i32
    scf.if %28 {
      %cst_76 = arith.constant 0.000000e+00 : bf16
      %70 = vector.broadcast %cst_76 : bf16 to vector<1x16x128xbf16>
      %c9 = arith.constant 9 : index
      %c1_77 = arith.constant 1 : index
      %c0_78 = arith.constant 0 : index
      %71 = vector.load %arg10[%c9, %c1_77, %c0_78] : memref<10x18x128xbf16, #tpu.memory_space<vmem>>, vector<1x16x128xbf16>
      tpu.vector_store %arg10[%c9, %c1_77, %c0_78], %70 {strides = array<i32>} : memref<10x18x128xbf16, #tpu.memory_space<vmem>>, vector<1x16x128xbf16>,
    } else {
    }
    %c0_21 = arith.constant 0 : index
    %c0_22 = arith.constant 0 : index
    %c0_23 = arith.constant 0 : index
    %29 = vector.load %arg10[%c0_21, %c0_22, %c0_23] : memref<10x18x128xbf16, #tpu.memory_space<vmem>>, vector<8x16x128xbf16>
    %30 = vector.shape_cast %29 : vector<8x16x128xbf16> to vector<128x128xbf16>
    %c0_24 = arith.constant 0 : index
    %c0_25 = arith.constant 0 : index
    %31 = vector.load %arg11[%c0_24, %c0_25] : memref<128x1152xbf16, #tpu.memory_space<vmem>>, vector<128x128xbf16>
    tpu.vector_store %arg11[%c0_24, %c0_25], %30 {strides = array<i32>} : memref<128x1152xbf16, #tpu.memory_space<vmem>>, vector<128x128xbf16>,
    %c0_26 = arith.constant 0 : index
    %c1_27 = arith.constant 1 : index
    %c0_28 = arith.constant 0 : index
    %32 = vector.load %arg10[%c0_26, %c1_27, %c0_28] : memref<10x18x128xbf16, #tpu.memory_space<vmem>>, vector<8x16x128xbf16>
    %33 = vector.shape_cast %32 : vector<8x16x128xbf16> to vector<128x128xbf16>
    %c0_29 = arith.constant 0 : index
    %c128 = arith.constant 128 : index
    %34 = vector.load %arg11[%c0_29, %c128] : memref<128x1152xbf16, #tpu.memory_space<vmem>>, vector<128x128xbf16>
    tpu.vector_store %arg11[%c0_29, %c128], %33 {strides = array<i32>} : memref<128x1152xbf16, #tpu.memory_space<vmem>>, vector<128x128xbf16>,
    %c0_30 = arith.constant 0 : index
    %c2 = arith.constant 2 : index
    %c0_31 = arith.constant 0 : index
    %35 = vector.load %arg10[%c0_30, %c2, %c0_31] : memref<10x18x128xbf16, #tpu.memory_space<vmem>>, vector<8x16x128xbf16>
    %36 = vector.shape_cast %35 : vector<8x16x128xbf16> to vector<128x128xbf16>
    %c0_32 = arith.constant 0 : index
    %c256 = arith.constant 256 : index
    %37 = vector.load %arg11[%c0_32, %c256] : memref<128x1152xbf16, #tpu.memory_space<vmem>>, vector<128x128xbf16>
    tpu.vector_store %arg11[%c0_32, %c256], %36 {strides = array<i32>} : memref<128x1152xbf16, #tpu.memory_space<vmem>>, vector<128x128xbf16>,
    %c1_33 = arith.constant 1 : index
    %c0_34 = arith.constant 0 : index
    %c0_35 = arith.constant 0 : index
    %38 = vector.load %arg10[%c1_33, %c0_34, %c0_35] : memref<10x18x128xbf16, #tpu.memory_space<vmem>>, vector<8x16x128xbf16>
    %39 = vector.shape_cast %38 : vector<8x16x128xbf16> to vector<128x128xbf16>
    %c0_36 = arith.constant 0 : index
    %c384 = arith.constant 384 : index
    %40 = vector.load %arg11[%c0_36, %c384] : memref<128x1152xbf16, #tpu.memory_space<vmem>>, vector<128x128xbf16>
    tpu.vector_store %arg11[%c0_36, %c384], %39 {strides = array<i32>} : memref<128x1152xbf16, #tpu.memory_space<vmem>>, vector<128x128xbf16>,
    %c1_37 = arith.constant 1 : index
    %c1_38 = arith.constant 1 : index
    %c0_39 = arith.constant 0 : index
    %41 = vector.load %arg10[%c1_37, %c1_38, %c0_39] : memref<10x18x128xbf16, #tpu.memory_space<vmem>>, vector<8x16x128xbf16>
    %42 = vector.shape_cast %41 : vector<8x16x128xbf16> to vector<128x128xbf16>
    %c0_40 = arith.constant 0 : index
    %c512 = arith.constant 512 : index
    %43 = vector.load %arg11[%c0_40, %c512] : memref<128x1152xbf16, #tpu.memory_space<vmem>>, vector<128x128xbf16>
    tpu.vector_store %arg11[%c0_40, %c512], %42 {strides = array<i32>} : memref<128x1152xbf16, #tpu.memory_space<vmem>>, vector<128x128xbf16>,
    %c1_41 = arith.constant 1 : index
    %c2_42 = arith.constant 2 : index
    %c0_43 = arith.constant 0 : index
    %44 = vector.load %arg10[%c1_41, %c2_42, %c0_43] : memref<10x18x128xbf16, #tpu.memory_space<vmem>>, vector<8x16x128xbf16>
    %45 = vector.shape_cast %44 : vector<8x16x128xbf16> to vector<128x128xbf16>
    %c0_44 = arith.constant 0 : index
    %c640 = arith.constant 640 : index
    %46 = vector.load %arg11[%c0_44, %c640] : memref<128x1152xbf16, #tpu.memory_space<vmem>>, vector<128x128xbf16>
    tpu.vector_store %arg11[%c0_44, %c640], %45 {strides = array<i32>} : memref<128x1152xbf16, #tpu.memory_space<vmem>>, vector<128x128xbf16>,
    %c2_45 = arith.constant 2 : index
    %c0_46 = arith.constant 0 : index
    %c0_47 = arith.constant 0 : index
    %47 = vector.load %arg10[%c2_45, %c0_46, %c0_47] : memref<10x18x128xbf16, #tpu.memory_space<vmem>>, vector<8x16x128xbf16>
    %48 = vector.shape_cast %47 : vector<8x16x128xbf16> to vector<128x128xbf16>
    %c0_48 = arith.constant 0 : index
    %c768 = arith.constant 768 : index
    %49 = vector.load %arg11[%c0_48, %c768] : memref<128x1152xbf16, #tpu.memory_space<vmem>>, vector<128x128xbf16>
    tpu.vector_store %arg11[%c0_48, %c768], %48 {strides = array<i32>} : memref<128x1152xbf16, #tpu.memory_space<vmem>>, vector<128x128xbf16>,
    %c2_49 = arith.constant 2 : index
    %c1_50 = arith.constant 1 : index
    %c0_51 = arith.constant 0 : index
    %50 = vector.load %arg10[%c2_49, %c1_50, %c0_51] : memref<10x18x128xbf16, #tpu.memory_space<vmem>>, vector<8x16x128xbf16>
    %51 = vector.shape_cast %50 : vector<8x16x128xbf16> to vector<128x128xbf16>
    %c0_52 = arith.constant 0 : index
    %c896 = arith.constant 896 : index
    %52 = vector.load %arg11[%c0_52, %c896] : memref<128x1152xbf16, #tpu.memory_space<vmem>>, vector<128x128xbf16>
    tpu.vector_store %arg11[%c0_52, %c896], %51 {strides = array<i32>} : memref<128x1152xbf16, #tpu.memory_space<vmem>>, vector<128x128xbf16>,
    %c2_53 = arith.constant 2 : index
    %c2_54 = arith.constant 2 : index
    %c0_55 = arith.constant 0 : index
    %53 = vector.load %arg10[%c2_53, %c2_54, %c0_55] : memref<10x18x128xbf16, #tpu.memory_space<vmem>>, vector<8x16x128xbf16>
    %54 = vector.shape_cast %53 : vector<8x16x128xbf16> to vector<128x128xbf16>
    %c0_56 = arith.constant 0 : index
    %c1024 = arith.constant 1024 : index
    %55 = vector.load %arg11[%c0_56, %c1024] : memref<128x1152xbf16, #tpu.memory_space<vmem>>, vector<128x128xbf16>
    tpu.vector_store %arg11[%c0_56, %c1024], %54 {strides = array<i32>} : memref<128x1152xbf16, #tpu.memory_space<vmem>>, vector<128x128xbf16>,
    %c0_57 = arith.constant 0 : index
    %c0_58 = arith.constant 0 : index
    %56 = vector.load %arg11[%c0_57, %c0_58] : memref<128x1152xbf16, #tpu.memory_space<vmem>>, vector<128x1152xbf16>
    %c0_59 = arith.constant 0 : index
    %c0_60 = arith.constant 0 : index
    %57 = vector.load %arg5[%c0_59, %c0_60] : memref<1152x128xbf16, #tpu.memory_space<vmem>>, vector<1152x128xbf16>
    %cst_61 = arith.constant dense<0.000000e+00> : vector<128x128xf32>
    %58 = tpu.matmul %56, %57, %cst_61 {dimension_numbers = #tpu.dot_dimension_numbers<[1], [0], [0], [1], [0, 0, 1, 1], [], []>} : vector<128x1152xbf16>, vector<1152x128xbf16>, vector<128x128xf32> -> vector<128x128xf32>
    %59 = vector.shape_cast %58 : vector<128x128xf32> to vector<1x8x16x128xf32>
    %c0_62 = arith.constant 0 : index
    %c0_63 = arith.constant 0 : index
    %c0_64 = arith.constant 0 : index
    %c0_65 = arith.constant 0 : index
    %60 = vector.load %arg8[%c0_62, %c0_63, %c0_64, %c0_65] : memref<1x8x16x128xf32, #tpu.memory_space<vmem>>, vector<1x8x16x128xf32>
    tpu.vector_store %arg8[%c0_62, %c0_63, %c0_64, %c0_65], %59 {strides = array<i32>} : memref<1x8x16x128xf32, #tpu.memory_space<vmem>>, vector<1x8x16x128xf32>,
    %cst_66 = arith.constant dense<0.000000e+00> : vector<128xf32>
    %61 = vector.multi_reduction <add>, %58, %cst_66 [0] : vector<128x128xf32> to vector<128xf32>
    %62 = vector.shape_cast %61 : vector<128xf32> to vector<1x128xf32>
    %63 = arith.mulf %58, %58 : vector<128x128xf32>
    %cst_67 = arith.constant dense<0.000000e+00> : vector<128xf32>
    %64 = vector.multi_reduction <add>, %63, %cst_67 [0] : vector<128x128xf32> to vector<128xf32>
    %65 = vector.shape_cast %64 : vector<128xf32> to vector<1x128xf32>
    %66 = vector.shape_cast %62 : vector<1x128xf32> to vector<1x1x1x128xf32>
    %c0_68 = arith.constant 0 : index
    %c0_69 = arith.constant 0 : index
    %c0_70 = arith.constant 0 : index
    %c0_71 = arith.constant 0 : index
    %67 = vector.load %arg9[%c0_68, %c0_69, %c0_70, %c0_71] : memref<1x1x2x128xf32, #tpu.memory_space<vmem>>, vector<1x1x1x128xf32>
    tpu.vector_store %arg9[%c0_68, %c0_69, %c0_70, %c0_71], %66 {strides = array<i32>} : memref<1x1x2x128xf32, #tpu.memory_space<vmem>>, vector<1x1x1x128xf32>,
    %68 = vector.shape_cast %65 : vector<1x128xf32> to vector<1x1x1x128xf32>
    %c0_72 = arith.constant 0 : index
    %c0_73 = arith.constant 0 : index
    %c1_74 = arith.constant 1 : index
    %c0_75 = arith.constant 0 : index
    %69 = vector.load %arg9[%c0_72, %c0_73, %c1_74, %c0_75] : memref<1x1x2x128xf32, #tpu.memory_space<vmem>>, vector<1x1x1x128xf32>
    tpu.vector_store %arg9[%c0_72, %c0_73, %c1_74, %c0_75], %68 {strides = array<i32>} : memref<1x1x2x128xf32, #tpu.memory_space<vmem>>, vector<1x1x1x128xf32>,
    return
  }
  func.func @transform_0(%arg0: i32, %arg1: i32) -> (i32, i32, i32, i32) {
    %c0_i32 = arith.constant 0 : i32
    %c0_i32_0 = arith.constant 0 : i32
    %c0_i32_1 = arith.constant 0 : i32
    return %arg0, %arg1, %c0_i32, %c0_i32_0 : i32, i32, i32, i32
  }
  func.func @transform_1(%arg0: i32, %arg1: i32) -> (i32, i32, i32, i32) {
    %c8_i32 = arith.constant 8 : i32
    %0 = arith.muli %arg1, %c8_i32 : i32
    %c1_i32 = arith.constant 1 : i32
    %1 = arith.subi %0, %c1_i32 : i32
    %c0_i32 = arith.constant 0 : i32
    %2 = arith.maxsi %1, %c0_i32 : i32
    %c0_i32_0 = arith.constant 0 : i32
    %c0_i32_1 = arith.constant 0 : i32
    %c0_i32_2 = arith.constant 0 : i32
    return %arg0, %2, %c0_i32_0, %c0_i32_1 : i32, i32, i32, i32
  }
  func.func @transform_2(%arg0: i32, %arg1: i32) -> (i32, i32, i32, i32) {
    %c8_i32 = arith.constant 8 : i32
    %0 = arith.muli %arg1, %c8_i32 : i32
    %c8_i32_0 = arith.constant 8 : i32
    %1 = arith.addi %0, %c8_i32_0 : i32
    %c15_i32 = arith.constant 15 : i32
    %2 = arith.minsi %1, %c15_i32 : i32
    %c0_i32 = arith.constant 0 : i32
    %c0_i32_1 = arith.constant 0 : i32
    %c0_i32_2 = arith.constant 0 : i32
    return %arg0, %2, %c0_i32, %c0_i32_1 : i32, i32, i32, i32
  }
  func.func @transform_3(%arg0: i32, %arg1: i32) -> (i32, i32) {
    %c0_i32 = arith.constant 0 : i32
    %c0_i32_0 = arith.constant 0 : i32
    %c0_i32_1 = arith.constant 0 : i32
    return %c0_i32, %c0_i32_0 : i32, i32
  }
  func.func @transform_4(%arg0: i32, %arg1: i32) -> (i32, i32) {
    %c0_i32 = arith.constant 0 : i32
    %c0_i32_0 = arith.constant 0 : i32
    %c0_i32_1 = arith.constant 0 : i32
    return %c0_i32, %c0_i32_0 : i32, i32
  }
  func.func @transform_5(%arg0: i32, %arg1: i32) -> (i32, i32) {
    %c0_i32 = arith.constant 0 : i32
    %c0_i32_0 = arith.constant 0 : i32
    %c0_i32_1 = arith.constant 0 : i32
    return %c0_i32, %c0_i32_0 : i32, i32
  }
  func.func @transform_6(%arg0: i32, %arg1: i32) -> (i32, i32, i32, i32) {
    %c0_i32 = arith.constant 0 : i32
    %c0_i32_0 = arith.constant 0 : i32
    %c0_i32_1 = arith.constant 0 : i32
    return %arg0, %arg1, %c0_i32, %c0_i32_0 : i32, i32, i32, i32
  }
  func.func @transform_7(%arg0: i32, %arg1: i32) -> (i32, i32, i32, i32) {
    %c0_i32 = arith.constant 0 : i32
    %c0_i32_0 = arith.constant 0 : i32
    %c0_i32_1 = arith.constant 0 : i32
    return %arg0, %arg1, %c0_i32, %c0_i32_0 : i32, i32, i32, i32
  }
}

</mosaic_0001>

<bundles_post_ra>
// kernel: double_conv.5
= control target key start
LH: loop header
LB: loop body
LE: loop exit
PB: predicated region body
PF: predicated region fallthrough
CT: control target
= control target key end

     0   :  { %s525_s12 = smov 0   ;;  %s527_s13 = smov 0   ;;  %s654_s0 = inlined_call_operand.vmem [shape: f32[2,16,16,128], index: 0, kind: input, shape index: {}]   ;;  %s655_s1 = inlined_call_operand.vmem [shape: f32[1,128], index: 1, kind: input, shape index: {}]   ;;  %s656_s2 = inlined_call_operand.vmem [shape: f32[1,128], index: 2, kind: input, shape index: {}]   ;;  %s657_s3 = inlined_call_operand.vmem [shape: f32[2,16,16,128], index: 3, kind: output, shape index: {}]  }
   0x1   :  { %s529_s14 = smov 0   ;;  %s531_s15 = smov 0  }
   0x2   :  { %s533_s16 = smov 0  }
   0x3 LB: > { %s22_s17 = sadd.s32 1, %s495_s14  ;;  %s25_s18 = sadd.s32 1, %s499_s15  ;;  %s503_s16 = sphi %s533_s16, %s13_s16   ;;  %s499_s15 = sphi %s531_s15, %s661_s15   ;;  %s495_s14 = sphi %s529_s14, %s660_s14   ;;  %s491_s13 = sphi %s527_s13, %s659_s13   ;;  %s487_s12 = sphi %s525_s12, %s658_s12  }
   0x4   : > { %p23_p0 = scmp.ge.s32.totalorder %s22_s17, 2  ;;  %p412_p1 = scmp.ge.s32.totalorder %s503_s16, 1 }
   0x5   : > { %p159_p2 = scmp.lt.s32.totalorder %s503_s16, 5 }
   0x6   : > { %s663_s17 = smov (%p23_p0, %s22_s17), 0  ;;  %s665_s18 = smov (!%p23_p0, %s25_s18), %s499_s15 }
   0x7   : > { %p160_p3 = pnand %p412_p1, %p159_p2  ;;  %p27_p4 = scmp.ge.s32.totalorder %s665_s18, 2 }
   0x8   : > { %s413_s19 = sshll.u32 (!%p160_p3), %s487_s12, 3  ;;  %p194_p5 = scmp.lt.s32.totalorder (!%p160_p3), %s491_s13, 1  ;;  %v558_v0 = vld [vmem:[%s655_s1] ss:$0 sm:$0xff] (!%p160_p3) }
   0x9   : > { %s667_s18 = smov (%p27_p4, %s665_s18), 0  ;;  %163 = sbr.rel (%p160_p3) target bundleno = 39 (0x27), region = 32 }
   0xa   : > { %p196_p6 = scmp.lt.s32.totalorder (!%p160_p3), %s413_s19, 15  ;;  %v568_v1 = vld [vmem:[%s656_s2] ss:$0 sm:$0xff] (!%p160_p3) }
  0x10   : > { %s669_s13 = smov (!%p194_p5, %s491_s13), 1  ;;  %s671_s19 = smov (!%p196_p6, %s413_s19), 15 }
  0x11   : > { %s415_s20 = sshll.u32 %s669_s13, 5  ;;  %s414_s21 = sshll.u32 %s671_s19, 1 }
  0x12   : > { %s200_s22 = sadd.s32 %s415_s20, %s414_s21 }
  0x13   : > { %s416_s23 = sshll.u32 %s200_s22, 3 }
  0x14   : > { %s563_s28 = scalar_lea.vmem %s654_s0, %s416_s23  ;;  %s591_s6 = scalar_lea.vmem %s657_s3, %s416_s23 }
  0x15   : > { %v217_v2 = vld [vmem:[%s563_s28] sm:$0xff]  ;;  %v218_v3 = vld [vmem:[%s563_s28 + $0x8] sm:$0xff]  ;;  %v219_v4 = vld [vmem:[%s563_s28 + $0x10] sm:$0xff] }
  0x16   : > { %v239_v5 = vmul.f32 %v558_v0, %v217_v2  ;;  %v240_v6 = vmul.f32 %v558_v0, %v218_v3  ;;  %v241_v7 = vmul.f32 %v558_v0, %v219_v4  ;;  %v220_v8 = vld [vmem:[%s563_s28 + $0x18] sm:$0xff]  ;;  %v221_v9 = vld [vmem:[%s563_s28 + $0x20] sm:$0xff]  ;;  %v222_v10 = vld [vmem:[%s563_s28 + $0x28] sm:$0xff] }
  0x17   : > { %v242_v11 = vmul.f32 %v558_v0, %v220_v8  ;;  %v243_v12 = vmul.f32 %v558_v0, %v221_v9  ;;  %v244_v13 = vmul.f32 %v558_v0, %v222_v10  ;;  %v223_v14 = vld [vmem:[%s563_s28 + $0x30] sm:$0xff]  ;;  %v224_v15 = vld [vmem:[%s563_s28 + $0x38] sm:$0xff]  ;;  %v225_v24 = vld [vmem:[%s563_s28 + $0x40] sm:$0xff] }
  0x18   : > { %v261_v16 = vadd.f32 %v568_v1, %v239_v5  ;;  %v262_v17 = vadd.f32 %v568_v1, %v240_v6  ;;  %v263_v18 = vadd.f32 %v568_v1, %v241_v7  ;;  %v245_v19 = vmul.f32 %v558_v0, %v223_v14  ;;  %v226_v25 = vld [vmem:[%s563_s28 + $0x48] sm:$0xff]  ;;  %v227_v26 = vld [vmem:[%s563_s28 + $0x50] sm:$0xff]  ;;  %v228_v31 = vld [vmem:[%s563_s28 + $0x58] sm:$0xff] }
  0x19   : > { %v264_v20 = vadd.f32 %v568_v1, %v242_v11  ;;  %v265_v21 = vadd.f32 %v568_v1, %v243_v12  ;;  %v266_v22 = vadd.f32 %v568_v1, %v244_v13  ;;  %v246_v23 = vmul.f32 %v558_v0, %v224_v15  ;;  %v229_v32 = vld [vmem:[%s563_s28 + $0x60] sm:$0xff]  ;;  %v230_v33 = vld [vmem:[%s563_s28 + $0x68] sm:$0xff]  ;;  %v231_v38 = vld [vmem:[%s563_s28 + $0x70] sm:$0xff] }
  0x1a   : > { %v277_v27 = vmax.f32 %v261_v16, 0.0  ;;  %v278_v28 = vmax.f32 %v262_v17, 0.0  ;;  %v279_v29 = vmax.f32 %v263_v18, 0.0  ;;  %v267_v30 = vadd.f32 %v568_v1, %v245_v19  ;;  %v232_v43 = vld [vmem:[%s563_s28 + $0x78] sm:$0xff] }
  0x1b   : > { %v280_v34 = vmax.f32 %v264_v20, 0.0  ;;  %v281_v35 = vmax.f32 %v265_v21, 0.0  ;;  %v282_v36 = vmax.f32 %v266_v22, 0.0  ;;  %v268_v37 = vadd.f32 %v568_v1, %v246_v23 }
  0x1c   : > { %293 = vst [vmem:[%s591_s6] sm:$0xff] %v277_v27  ;;  %294 = vst [vmem:[%s591_s6 + $0x8] sm:$0xff] %v278_v28  ;;  %v283_v39 = vmax.f32 %v267_v30, 0.0  ;;  %v247_v40 = vmul.f32 %v558_v0, %v225_v24  ;;  %v248_v41 = vmul.f32 %v558_v0, %v226_v25  ;;  %v249_v42 = vmul.f32 %v558_v0, %v227_v26 }
  0x1d   : > { %295 = vst [vmem:[%s591_s6 + $0x10] sm:$0xff] %v279_v29  ;;  %296 = vst [vmem:[%s591_s6 + $0x18] sm:$0xff] %v280_v34  ;;  %v284_v44 = vmax.f32 %v268_v37, 0.0  ;;  %v250_v45 = vmul.f32 %v558_v0, %v228_v31  ;;  %v251_v46 = vmul.f32 %v558_v0, %v229_v32  ;;  %v252_v47 = vmul.f32 %v558_v0, %v230_v33 }
  0x1e   : > { %297 = vst [vmem:[%s591_s6 + $0x20] sm:$0xff] %v281_v35  ;;  %298 = vst [vmem:[%s591_s6 + $0x28] sm:$0xff] %v282_v36  ;;  %v269_v48 = vadd.f32 %v568_v1, %v247_v40  ;;  %v270_v49 = vadd.f32 %v568_v1, %v248_v41  ;;  %v271_v50 = vadd.f32 %v568_v1, %v249_v42 }
  0x1f   : > { %299 = vst [vmem:[%s591_s6 + $0x30] sm:$0xff] %v283_v39  ;;  %v253_v51 = vmul.f32 %v558_v0, %v231_v38  ;;  %300 = vst [vmem:[%s591_s6 + $0x38] sm:$0xff] %v284_v44  ;;  %v272_v52 = vadd.f32 %v568_v1, %v250_v45  ;;  %v273_v53 = vadd.f32 %v568_v1, %v251_v46 }
  0x20   : > { %v274_v54 = vadd.f32 %v568_v1, %v252_v47  ;;  %v254_v55 = vmul.f32 %v558_v0, %v232_v43  ;;  %v285_v56 = vmax.f32 %v269_v48, 0.0  ;;  %v286_v57 = vmax.f32 %v270_v49, 0.0 }
  0x21   : > { %v287_v58 = vmax.f32 %v271_v50, 0.0  ;;  %v275_v59 = vadd.f32 %v568_v1, %v253_v51  ;;  %v288_v60 = vmax.f32 %v272_v52, 0.0  ;;  %v289_v61 = vmax.f32 %v273_v53, 0.0 }
  0x22   : > { %v290_v62 = vmax.f32 %v274_v54, 0.0  ;;  %v276_v63 = vadd.f32 %v568_v1, %v254_v55  ;;  %301 = vst [vmem:[%s591_s6 + $0x40] sm:$0xff] %v285_v56  ;;  %302 = vst [vmem:[%s591_s6 + $0x48] sm:$0xff] %v286_v57 }
  0x23   : > { %303 = vst [vmem:[%s591_s6 + $0x50] sm:$0xff] %v287_v58  ;;  %v291_v2 = vmax.f32 %v275_v59, 0.0  ;;  %304 = vst [vmem:[%s591_s6 + $0x58] sm:$0xff] %v288_v60 }
  0x24   : > { %305 = vst [vmem:[%s591_s6 + $0x60] sm:$0xff] %v289_v61  ;;  %306 = vst [vmem:[%s591_s6 + $0x68] sm:$0xff] %v290_v62  ;;  %v292_v0 = vmax.f32 %v276_v63, 0.0 }
  0x25   : > { %307 = vst [vmem:[%s591_s6 + $0x70] sm:$0xff] %v291_v2 }
  0x26   : > { %308 = vst [vmem:[%s591_s6 + $0x78] sm:$0xff] %v292_v0 }
  0x27 PF: > { %s13_s16 = sadd.s32 1, %s503_s16   ;;  %s658_s12 = smov %s495_s14 }
  0x28   : > { %p10_p7 = scmp.ge.s32.totalorder %s13_s16, 6   ;;  %s659_s13 = smov %s499_s15 }
  0x29   : > { %s660_s14 = smov %s663_s17  ;;  %s661_s15 = smov %s667_s18 }
  0x2a   :  { %12 = sbr.rel (!%p10_p7) target bundleno = 3 (0x3), region = 62 }

// kernel: double_conv.3
= control target key start
LH: loop header
LB: loop body
LE: loop exit
PB: predicated region body
PF: predicated region fallthrough
CT: control target
= control target key end

     0   :  { %s4016_s18 = smov 0   ;;  %s4018_s19 = smov 0   ;;  %s4740_s0 = inlined_call_operand.vmem [shape: bf16[2,18,18,128], index: 0, kind: input, shape index: {}, may-alias: {0,1,2}]   ;;  %s4741_s1 = inlined_call_operand.vmem [shape: bf16[2,18,18,128], index: 1, kind: input, shape index: {}, may-alias: {0,1,2}]   ;;  %s4742_s2 = inlined_call_operand.vmem [shape: bf16[2,18,18,128], index: 2, kind: input, shape index: {}, may-alias: {0,1,2}]   ;;  %s4743_s3 = inlined_call_operand.vmem [shape: bf16[1152,128], index: 3, kind: input, shape index: {}]   ;;  %s4744_s4 = inlined_call_operand.vmem [shape: f32[2,16,16,128], index: 4, kind: output, shape index: {0}]   ;;  %s4745_s5 = inlined_call_operand.vmem [shape: f32[2,2,2,128], index: 5, kind: output, shape index: {1}]  }
   0x1   :  { %s4020_s20 = smov 0   ;;  %s4022_s21 = smov 0  }
   0x2   :  { %s4024_s22 = smov 0  }
   0x3 LB: > { %s25_s23 = sadd.s32 1, %s3976_s20  ;;  %s28_s24 = sadd.s32 1, %s3980_s21  ;;  %s3984_s22 = sphi %s4024_s22, %s16_s22   ;;  %s3980_s21 = sphi %s4022_s21, %s4755_s21   ;;  %s3976_s20 = sphi %s4020_s20, %s4754_s20   ;;  %s3972_s19 = sphi %s4018_s19, %s4753_s19   ;;  %s3968_s18 = sphi %s4016_s18, %s4752_s18  }
   0x4   : > { %p26_p0 = scmp.ge.s32.totalorder %s25_s23, 2  ;;  %p3303_p1 = scmp.ge.s32.totalorder %s3984_s22, 1 }
   0x5   : > { %p272_p2 = scmp.lt.s32.totalorder %s3984_s22, 5 }
   0x6   : > { %s4757_s23 = smov (%p26_p0, %s25_s23), 0  ;;  %s4759_s24 = smov (!%p26_p0, %s28_s24), %s3980_s21 }
   0x7   : > { %p273_p3 = pnand %p3303_p1, %p272_p2  ;;  %p30_p4 = scmp.ge.s32.totalorder %s4759_s24, 2 }
   0x8   : > { %v3850_v0 = vld [vmem:[%s4743_s3 + $0x40] sm:$0xff] (!%p273_p3)   ;;  %v3854_v4 = vld [vmem:[%s4743_s3 + $0x48] sm:$0xff] (!%p273_p3)   ;;  %v3858_v8 = vld [vmem:[%s4743_s3 + $0x50] sm:$0xff] (!%p273_p3)   ;;  %s4078_s25 = sshll.u32 (!%p273_p3), %s3968_s18, 3  ;;  %p351_p5 = scmp.lt.s32.totalorder (!%p273_p3), %s3972_s19, 1  ;;  %vm853_vm0 = vcmask (!%p273_p3), 1042432  }
   0x9   : > { %s4761_s24 = smov (%p30_p4, %s4759_s24), 0  ;;  %276 = sbr.rel (%p273_p3) target bundleno = 444 (0x1bc), region = 36 }
   0xa   : > { %v3851_v1 = vld [vmem:[%s4743_s3 + $0xc0] sm:$0xff] (!%p273_p3)   ;;  %3486 = vmatprep.subr.bf16.mxu0 (!%p273_p3), %v3850_v0  ;;  %v3855_v5 = vld [vmem:[%s4743_s3 + $0xc8] sm:$0xff] (!%p273_p3)   ;;  %v3859_v9 = vld [vmem:[%s4743_s3 + $0xd0] sm:$0xff] (!%p273_p3)   ;;  %p353_p6 = scmp.lt.s32.totalorder (!%p273_p3), %s4078_s25, 17  ;;  %vm854_vm1 = vcmask (!%p273_p3), 1046532   ;;  %s380_s11 = sadd.s32 (!%p273_p3), 9, %s4078_s25 }
   0xb   : > { %v3852_v2 = vld [vmem:[%s4743_s3] sm:$0xff] (!%p273_p3)   ;;  %3550 = vmatprep.subr.bf16.mxu1 (!%p273_p3), %v3851_v1  ;;  %v3856_v6 = vld [vmem:[%s4743_s3 + $0x8] sm:$0xff] (!%p273_p3)   ;;  %v3860_v10 = vld [vmem:[%s4743_s3 + $0x10] sm:$0xff] (!%p273_p3)   ;;  %vm570_vm2 = vsmask.f32 (!%p273_p3), 3328  ;;  %p4373_p8 = scmp.lt.s32.totalorder (!%p273_p3), %s380_s11, 17 }
   0xc   : > { %v3853_v3 = vld [vmem:[%s4743_s3 + $0x80] sm:$0xff] (!%p273_p3)   ;;  %3487 = vmatpush3.bf16.msra.mxu0 (!%p273_p3), %v3852_v2  ;;  %v3857_v7 = vld [vmem:[%s4743_s3 + $0x88] sm:$0xff] (!%p273_p3)   ;;  %v3861_v11 = vld [vmem:[%s4743_s3 + $0x90] sm:$0xff] (!%p273_p3)   ;;  %vm571_vm3 = vsmask.f32 (!%p273_p3), 7440  ;;  %p395_p9 = scmp.lt.s32.totalorder (!%p273_p3), %s4078_s25, 15 }
   0xd   : > { %3551 = vmatpush3.bf16.msra.mxu1 (!%p273_p3), %v3853_v3  ;;  %3488 = vmatprep.subr.bf16.mxu0 (!%p273_p3), %v3854_v4  ;;  %v3862_v12 = vld [vmem:[%s4743_s3 + $0x58] sm:$0xff] (!%p273_p3)   ;;  %v3866_v16 = vld [vmem:[%s4743_s3 + $0x60] sm:$0xff] (!%p273_p3)   ;;  %v3870_v20 = vld [vmem:[%s4743_s3 + $0x68] sm:$0xff] (!%p273_p3)   ;;  %p405_p10 = scmp.lt.s32.totalorder (!%p273_p3), %s3968_s18, 1 }
   0xe   : > { %3552 = vmatprep.subr.bf16.mxu1 (!%p273_p3), %v3855_v5  ;;  %v3863_v13 = vld [vmem:[%s4743_s3 + $0xd8] sm:$0xff] (!%p273_p3)   ;;  %v3867_v17 = vld [vmem:[%s4743_s3 + $0xe0] sm:$0xff] (!%p273_p3)   ;;  %v3871_v21 = vld [vmem:[%s4743_s3 + $0xe8] sm:$0xff] (!%p273_p3)  }
   0xf   : > { %v3864_v14 = vld [vmem:[%s4743_s3 + $0x18] sm:$0xff] (!%p273_p3)   ;;  %v3868_v18 = vld [vmem:[%s4743_s3 + $0x20] sm:$0xff] (!%p273_p3)   ;;  %v3872_v22 = vld [vmem:[%s4743_s3 + $0x28] sm:$0xff] (!%p273_p3)  }
  0x10   : > { %3489 = vmatpush3.bf16.msra.mxu0 %v3856_v6  ;;  %s4763_s19 = smov (!%p351_p5, %s3972_s19), 1  ;;  %v3865_v15 = vld [vmem:[%s4743_s3 + $0x98] sm:$0xff]   ;;  %v3869_v19 = vld [vmem:[%s4743_s3 + $0xa0] sm:$0xff]   ;;  %v3873_v23 = vld [vmem:[%s4743_s3 + $0xa8] sm:$0xff]   ;;  %s4767_s11 = smov (!%p4373_p8, %s380_s11), 17 }
  0x11   : > { %3553 = vmatpush3.bf16.msra.mxu1 %v3857_v7  ;;  %3490 = vmatprep.subr.bf16.mxu0 %v3858_v8  ;;  %s354_s15 = scalar_select %p353_p6, %s4078_s25, 17  ;;  %v3874_v24 = vld [vmem:[%s4743_s3 + $0x70] sm:$0xff]   ;;  %v3878_v28 = vld [vmem:[%s4743_s3 + $0x78] sm:$0xff]   ;;  %v3884_v35 = vld [vmem:[%s4743_s3 + $0x140] sm:$0xff]  }
  0x12   : > { %3554 = vmatprep.subr.bf16.mxu1 %v3859_v9  ;;  %s4117_s30 = smul.u32 54, %s4763_s19  ;;  %v3875_v25 = vld [vmem:[%s4743_s3 + $0xf0] sm:$0xff]   ;;  %v3879_v29 = vld [vmem:[%s4743_s3 + $0xf8] sm:$0xff]   ;;  %vm4177_vm4 = vmor %vm853_vm0, %vm854_vm1  ;;  %s3312_s13 = sshll.u32 %s4763_s19, 5 }
  0x13   : > { %s3806_s8 = smul.u32 3, %s354_s15  ;;  %v3876_v26 = vld [vmem:[%s4743_s3 + $0x30] sm:$0xff]   ;;  %v3880_v30 = vld [vmem:[%s4743_s3 + $0x38] sm:$0xff]   ;;  %vm4189_vm5 = vmor %vm570_vm2, %vm571_vm3  ;;  %s4771_s18 = smov (!%p405_p10, %s3968_s18), 1 }
  0x14   : > { %3491 = vmatpush3.bf16.msra.mxu0 %v3860_v10  ;;  %v3877_v27 = vld [vmem:[%s4743_s3 + $0xb0] sm:$0xff]   ;;  %v3881_v31 = vld [vmem:[%s4743_s3 + $0xb8] sm:$0xff]   ;;  %v3885_v9 = vld [vmem:[%s4743_s3 + $0x100] sm:$0xff]   ;;  %s3314_s16 = sshll.u32 %s4763_s19, 1 }
  0x15   : > { %3555 = vmatpush3.bf16.msra.mxu1 %v3861_v11  ;;  %3492 = vmatprep.subr.bf16.mxu0 %v3862_v12  ;;  %s357_s15 = sadd.s32 %s4117_s30, %s3806_s8  ;;  %s3809_s8 = smul.u32 3, %s4767_s11 }
  0x16   : > { %3556 = vmatprep.subr.bf16.mxu1 %v3863_v13  ;;  %s3305_s9 = sshll.u32 %s357_s15, 2  ;;  %s408_s17 = sadd.s32 %s3314_s16, %s4771_s18 }
  0x17   : > { %s4156_s26 = scalar_lea.vmem %s4740_s0, %s3305_s9  ;;  %s367_s9 = sadd.s32 8, %s4078_s25 }
  0x18   : > { %3493 = vmatpush3.bf16.msra.mxu0 %v3864_v14  ;;  %v412_v32 = vld [vmem:[%s4156_s26] sm:$0xff]   ;;  %v414_v33 = vld [vmem:[%s4156_s26 + $0x8] sm:$0x1]  ;;  %v415_v34 = vld [vmem:[%s4156_s26 + $0xc] sm:$0xff]   ;;  %p4183_p7 = scmp.lt.s32.totalorder %s367_s9, 17  ;;  %s4424_s10 = sadd.s32 %s3809_s8, %s4117_s30 }
  0x19   : > { %3557 = vmatpush3.bf16.msra.mxu1 %v3865_v15  ;;  %3494 = vmatprep.subr.bf16.mxu0 %v3866_v16  ;;  %436 = vst [vmem:[#allocation2] sm:$0xff] %v412_v32   ;;  %438 = vst [vmem:[#allocation2 + $0x8] sm:$0x1] %v414_v33  ;;  %v417_v36 = vld [vmem:[%s4156_s26 + $0x14] sm:$0x1]  ;;  %v418_v37 = vld [vmem:[%s4156_s26 + $0x18] sm:$0xff]  }
  0x1a   : > { %3558 = vmatprep.subr.bf16.mxu1 %v3867_v17  ;;  %439 = vst [vmem:[#allocation2 + $0xc] sm:$0xff] %v415_v34   ;;  %441 = vst [vmem:[#allocation2 + $0x14] sm:$0x1] %v417_v36  ;;  %v420_v38 = vld [vmem:[%s4156_s26 + $0x20] sm:$0x1]  ;;  %v421_v39 = vld [vmem:[%s4156_s26 + $0x24] sm:$0xff]  }
  0x1b   : > { %442 = vst [vmem:[#allocation2 + $0x18] sm:$0xff] %v418_v37   ;;  %444 = vst [vmem:[#allocation2 + $0x20] sm:$0x1] %v420_v38  ;;  %v3889_v33 = vld [vmem:[%s4743_s3 + $0x108] sm:$0xff]   ;;  %s4765_s9 = smov (!%p4183_p7, %s367_s9), 17  ;;  %s4769_s25 = smov (!%p395_p9, %s4078_s25), 15 }
  0x1c   : > { %3495 = vmatpush3.bf16.msra.mxu0 %v3868_v18  ;;  %445 = vst [vmem:[#allocation2 + $0x24] sm:$0xff] %v421_v39   ;;  %s3808_s14 = smul.u32 3, %s4765_s9  ;;  %s3315_s15 = sshll.u32 %s408_s17, 1 }
  0x1d   : > { %3559 = vmatpush3.bf16.msra.mxu1 %v3869_v19  ;;  %3496 = vmatprep.subr.bf16.mxu0 %v3870_v20  ;;  %s410_s29 = scalar_lea.vmem %s4745_s5, %s3315_s15 }
  0x1e   : > { %3560 = vmatprep.subr.bf16.mxu1 %v3871_v21  ;;  %s4316_s6 = sadd.s32 %s3808_s14, %s4117_s30  ;;  %s3309_s30 = sshll.u32 %s4424_s10, 2 }
  0x1f   : > { %s3307_s9 = sshll.u32 %s4316_s6, 2  ;;  %s4459_s28 = scalar_lea.vmem %s4742_s2, %s3309_s30 }
  0x20   : > { %3497 = vmatpush3.bf16.msra.mxu0 %v3872_v22  ;;  %v546_v40 = vld [vmem:[#allocation2] sm:$0xf]  ;;  %v547_v41 = vld [vmem:[#allocation2 + $0x4] sm:$0xf]  ;;  %v548_v42 = vld [vmem:[#allocation2 + $0x8] sm:$0x1]  ;;  %s376_s27 = scalar_lea.vmem %s4741_s1, %s3307_s9 }
  0x21   : > { %3561 = vmatpush3.bf16.msra.mxu1 %v3873_v23  ;;  %3498 = vmatprep.subr.bf16.mxu0 %v3874_v24  ;;  %v574_v43 = vshrl.u32 %v546_v40, 16  ;;  %v577_v44 = vshll.u32 %v546_v40, 16  ;;  %v583_v45 = vshll.u32 %v547_v41, 16  ;;  %v587_v46 = vshrl.u32 %v547_v41, 16  ;;  %v3882_v48 = vld [vmem:[#allocation2 + $0xc] sm:$0xff]   ;;  %v3883_v6 = vld [vmem:[#allocation2] sm:$0xff]  }
  0x22   : > { %3562 = vmatprep.subr.bf16.mxu1 %v3875_v25  ;;  %v593_v47 = vshll.u32 %v548_v42, 16  ;;  %2675 = vmatprep.mubr.bf16.mxu1 %v3882_v48  ;;  %v805_v54 = vld [vmem:[#allocation2] sm:$0xe]  ;;  %v806_v55 = vld [vmem:[#allocation2 + $0x4] sm:$0xf]  ;;  %v3886_v18 = vld [vmem:[#allocation2 + $0x18] sm:$0xff]  }
  0x23   : > { %v576_v49 = vrot.slane %v574_v43, 4  ;;  %v579_v50 = vrot.slane %v577_v44, 5  ;;  %v585_v51 = vrot.slane %v583_v45, 5  ;;  %v589_v52 = vrot.slane %v587_v46, 4  ;;  %v807_v59 = vld [vmem:[#allocation2 + $0x8] sm:$0x1] }
  0x24   : > { %3499 = vmatpush3.bf16.msra.mxu0 %v3876_v26  ;;  %v595_v53 = vrot.slane %v593_v47, 5  ;;  %v3332_v60 = vrot.slane %v805_v54, 9  ;;  %v858_v61 = vrot.slane %v806_v55, 5  ;;  %v549_v62 = vld [vmem:[#allocation2 + $0xc] sm:$0xf]  ;;  %v861_v0 = vrot.slane %v807_v59, 5 }
  0x25   : > { %3563 = vmatpush3.bf16.msra.mxu1 %v3877_v27  ;;  %3500 = vmatprep.subr.bf16.mxu0 %v3878_v28  ;;  %v580_v57 = vor.u32 %v579_v50, %v576_v49  ;;  %v590_v58 = vor.u32 %v589_v52, %v585_v51  ;;  %v550_v1 = vld [vmem:[#allocation2 + $0x10] sm:$0xf]  ;;  %v551_v2 = vld [vmem:[#allocation2 + $0x14] sm:$0x1]  ;;  %v598_v3 = vshrl.u32 %v549_v62, 16  ;;  %v601_v11 = vshll.u32 %v549_v62, 16 }
  0x26   : > { %3564 = vmatprep.subr.bf16.mxu1 %v3879_v29  ;;  %v859_v7 = vsel %vm4177_vm4, %v3332_v60, %v858_v61  ;;  %v860_v8 = vrot.slane %v858_v61, 4  ;;  %v607_v12 = vshll.u32 %v550_v1, 16  ;;  %v611_v13 = vshrl.u32 %v550_v1, 16  ;;  %v808_v23 = vld [vmem:[#allocation2 + $0xc] sm:$0xe]  ;;  %v3892_v41 = vld [vmem:[%s4743_s3 + $0x150] sm:$0xff]  }
  0x27   : > { %v581_v4 = vrot.slane %v580_v57, 4  ;;  %v591_v5 = vrot.slane %v590_v58, 4  ;;  %v600_v10 = vrot.slane %v598_v3, 4  ;;  %v617_v17 = vshll.u32 %v551_v2, 16  ;;  %v809_v24 = vld [vmem:[#allocation2 + $0x10] sm:$0xf] }
  0x28   : > { %3501 = vmatpush3.bf16.msra.mxu0 %v3880_v30  ;;  %v862_v16 = vsel %vm4177_vm4, %v860_v8, %v861_v0  ;;  %v603_v21 = vrot.slane %v601_v11, 5  ;;  %v609_v22 = vrot.slane %v607_v12, 5  ;;  %v613_v25 = vrot.slane %v611_v13, 4  ;;  %v810_v26 = vld [vmem:[#allocation2 + $0x14] sm:$0x1]  ;;  %v3888_v29 = vld [vmem:[%s4743_s3 + $0x148] sm:$0xff]  }
  0x29   : > { %3565 = vmatpush3.bf16.msra.mxu1 %v3881_v31  ;;  %3614 = vmatprep.subr.bf16.mxu0 %v3884_v35  ;;  %v586_v14 = vsel %vm4189_vm5, %v581_v4, %v585_v51  ;;  %v596_v15 = vsel %vm4189_vm5, %v591_v5, %v595_v53  ;;  %v3340_v20 = vcombine.low %v859_v7, %v862_v16  ;;  %v3333_v27 = vrot.slane %v808_v23, 9  ;;  %v552_v34 = vld [vmem:[#allocation2 + $0x18] sm:$0xf]  ;;  %v553_v35 = vld [vmem:[#allocation2 + $0x1c] sm:$0xf]  ;;  %v3887_v47 = vld [vmem:[#allocation2 + $0xc] sm:$0xff]  }
  0x2a   : > { %v3324_v19 = vcombine.low %v586_v14, %v596_v15  ;;  %v865_v28 = vrot.slane %v809_v24, 5  ;;  %v604_v30 = vor.u32 %v603_v21, %v600_v10  ;;  %v619_v31 = vrot.slane %v617_v17, 5  ;;  %v554_v39 = vld [vmem:[#allocation2 + $0x20] sm:$0x1]  ;;  %v3890_v51 = vld [vmem:[#allocation2 + $0x24] sm:$0xff]   ;;  %v424_v14 = vld [vmem:[%s4156_s26 + $0x30] sm:$0xff]  }
  0x2b   : > { %v868_v32 = vrot.slane %v810_v26, 5  ;;  %v614_v36 = vor.u32 %v613_v25, %v609_v22  ;;  %v622_v40 = vshrl.u32 %v552_v34, 16  ;;  %v625_v43 = vshll.u32 %v552_v34, 16  ;;  %v811_v57 = vld [vmem:[#allocation2 + $0x18] sm:$0xe]  ;;  %v3895_v10 = vld [vmem:[%s4743_s3 + $0x180] sm:$0xff]  }
  0x2c   : > { %2578 = vmatprep.mubr.bf16.mxu0 %v3324_v19  ;;  %2676 = vmatmul.mubr.bf16.vlgmr.msra.gmra.mrb[0].mxu1 %v3340_v20  ;;  %v866_v37 = vsel %vm4177_vm4, %v3333_v27, %v865_v28  ;;  %v867_v38 = vrot.slane %v865_v28, 4  ;;  %v605_v42 = vrot.slane %v604_v30, 4  ;;  %v631_v44 = vshll.u32 %v553_v35, 16  ;;  %v812_v61 = vld [vmem:[#allocation2 + $0x1c] sm:$0xf]  ;;  %448 = vst [vmem:[#allocation2 + $0x30] sm:$0xff] %v424_v14  }
  0x2d   : > { %2579 = vmatmul.mubr.bf16.vlgmr.msra.gmra.mrb[0].mxu0 %v3883_v6  ;;  %2683 = vmatprep.mubr.bf16.mxu1 %v3886_v18  ;;  %v635_v45 = vshrl.u32 %v553_v35, 16  ;;  %v615_v46 = vrot.slane %v614_v36, 4  ;;  %v624_v49 = vrot.slane %v622_v40, 4  ;;  %v641_v50 = vshll.u32 %v554_v39, 16  ;;  %v813_v62 = vld [vmem:[#allocation2 + $0x20] sm:$0x1] }
  0x2e   : > { %3615 = vmatpush3.bf16.msra.mxu0 %v3885_v9  ;;  %v869_v48 = vsel %vm4177_vm4, %v867_v38, %v868_v32  ;;  %v610_v52 = vsel %vm4189_vm5, %v605_v42, %v609_v22  ;;  %v627_v54 = vrot.slane %v625_v43, 5  ;;  %v633_v55 = vrot.slane %v631_v44, 5  ;;  %v3893_v6 = vld [vmem:[%s4743_s3 + $0x1c0] sm:$0xff]   ;;  %v3894_v9 = vld [vmem:[%s4743_s3 + $0x110] sm:$0xff]   ;;  %v423_v13 = vld [vmem:[%s4156_s26 + $0x2c] sm:$0x1] }
  0x2f   : > { %3616 = vmatprep.subr.bf16.mxu0 %v3888_v29  ;;  %v3341_v53 = vcombine.low %v866_v37, %v869_v48  ;;  %v620_v58 = vsel %vm4189_vm5, %v615_v46, %v619_v31  ;;  %v637_v59 = vrot.slane %v635_v45, 4  ;;  %v643_v60 = vrot.slane %v641_v50, 5  ;;  %3678 = vmatprep.subr.bf16.mxu1 %v3893_v6  ;;  %447 = vst [vmem:[#allocation2 + $0x2c] sm:$0x1] %v423_v13  ;;  %v555_v17 = vld [vmem:[#allocation2 + $0x24] sm:$0xf] }
  0x30   : > { %v3325_v0 = vcombine.low %v610_v52, %v620_v58  ;;  %v628_v1 = vor.u32 %v627_v54, %v624_v49  ;;  %v3334_v2 = vrot.slane %v811_v57, 9  ;;  %v872_v3 = vrot.slane %v812_v61, 5  ;;  %v556_v18 = vld [vmem:[#allocation2 + $0x28] sm:$0xf]  ;;  %3679 = vmatpush3.bf16.msra.mxu1 %v3895_v10  ;;  %v3898_v22 = vld [vmem:[%s4743_s3 + $0x158] sm:$0xff]   ;;  %v3906_v13 = vld [vmem:[%s4743_s3 + $0x120] sm:$0xff]  }
  0x31   : > { %v638_v4 = vor.u32 %v637_v59, %v633_v55  ;;  %v875_v5 = vrot.slane %v813_v62, 5  ;;  %v646_v20 = vshrl.u32 %v555_v17, 16  ;;  %v649_v21 = vshll.u32 %v555_v17, 16  ;;  %v814_v27 = vld [vmem:[#allocation2 + $0x24] sm:$0xe]  ;;  %v3891_v29 = vld [vmem:[#allocation2 + $0x18] sm:$0xff]  }
  0x32   : > { %3617 = vmatpush3.bf16.msra.mxu0 %v3889_v33  ;;  %2586 = vmatprep.mubr.bf16.mxu0 %v3325_v0  ;;  %v629_v7 = vrot.slane %v628_v1, 4  ;;  %v874_v8 = vrot.slane %v872_v3, 4  ;;  %v873_v12 = vsel %vm4177_vm4, %v3334_v2, %v872_v3  ;;  %v655_v25 = vshll.u32 %v556_v18, 16  ;;  %v815_v28 = vld [vmem:[#allocation2 + $0x28] sm:$0xf]  ;;  %v3900_v40 = vld [vmem:[%s4743_s3 + $0x118] sm:$0xff]  }
  0x33   : > { %3618 = vmatprep.subr.bf16.mxu0 %v3892_v41  ;;  %v639_v11 = vrot.slane %v638_v4, 4  ;;  %v659_v26 = vshrl.u32 %v556_v18, 16  ;;  %v648_v30 = vrot.slane %v646_v20, 4  ;;  %v651_v31 = vrot.slane %v649_v21, 5  ;;  %v3899_v37 = vld [vmem:[%s4743_s3 + $0x1c8] sm:$0xff]   ;;  %v3896_v43 = vld [vmem:[#allocation2 + $0x30] sm:$0xff]  }
  0x34   : > { %2684 = vmatmul.mubr.bf16.gmra.mrb[4].mxu1 %v3341_v53  ;;  %v634_v15 = vsel %vm4189_vm5, %v629_v7, %v633_v55  ;;  %v876_v16 = vsel %vm4177_vm4, %v874_v8, %v875_v5  ;;  %v879_v32 = vrot.slane %v815_v28, 5  ;;  %v657_v33 = vrot.slane %v655_v25, 5  ;;  %3680 = vmatprep.subr.bf16.mxu1 %v3899_v37  ;;  %v3901_v49 = vld [vmem:[%s4743_s3 + $0x188] sm:$0xff]   ;;  %v426_v50 = vld [vmem:[%s4156_s26 + $0x38] sm:$0x1]  ;;  %v427_v55 = vld [vmem:[%s4156_s26 + $0x3c] sm:$0xff]  }
  0x35   : > { %2587 = vmatmul.mubr.bf16.gmra.mrb[4].mxu0 %v3887_v47  ;;  %2691 = vmatprep.mubr.bf16.mxu1 %v3890_v51  ;;  %v644_v19 = vsel %vm4189_vm5, %v639_v11, %v643_v60  ;;  %v3342_v24 = vcombine.low %v873_v12, %v876_v16  ;;  %v661_v34 = vrot.slane %v659_v26, 4  ;;  %v652_v35 = vor.u32 %v651_v31, %v648_v30  ;;  %v558_v53 = vld [vmem:[#allocation2 + $0x30] sm:$0xf]  ;;  %v559_v54 = vld [vmem:[#allocation2 + $0x34] sm:$0xf]  ;;  %v3897_v57 = vld [vmem:[#allocation2 + $0x24] sm:$0xff]  }
  0x36   : > { %3619 = vmatpush3.bf16.msra.mxu0 %v3894_v9  ;;  %v3326_v23 = vcombine.low %v634_v15, %v644_v19  ;;  %v3335_v36 = vrot.slane %v814_v27, 9  ;;  %v881_v39 = vrot.slane %v879_v32, 4  ;;  %v557_v41 = vld [vmem:[#allocation2 + $0x2c] sm:$0x1]  ;;  %450 = vst [vmem:[#allocation2 + $0x38] sm:$0x1] %v426_v50  ;;  %3681 = vmatpush3.bf16.msra.mxu1 %v3901_v49 }
  0x37   : > { %3620 = vmatprep.subr.bf16.mxu0 %v3898_v22  ;;  %v662_v38 = vor.u32 %v661_v34, %v657_v33  ;;  %v653_v42 = vrot.slane %v652_v35, 4  ;;  %v665_v45 = vshll.u32 %v557_v41, 16  ;;  %v816_v46 = vld [vmem:[#allocation2 + $0x2c] sm:$0x1]  ;;  %v670_v59 = vshrl.u32 %v558_v53, 16  ;;  %451 = vst [vmem:[#allocation2 + $0x3c] sm:$0xff] %v427_v55  }
  0x38   : > { %2594 = vmatprep.mubr.bf16.mxu0 %v3326_v23  ;;  %v880_v47 = vsel %vm4177_vm4, %v3335_v36, %v879_v32  ;;  %v882_v48 = vrot.slane %v816_v46, 5  ;;  %v673_v60 = vshll.u32 %v558_v53, 16  ;;  %v679_v61 = vshll.u32 %v559_v54, 16  ;;  %v817_v2 = vld [vmem:[#allocation2 + $0x30] sm:$0xe]  ;;  %v3904_v3 = vld [vmem:[%s4743_s3 + $0x160] sm:$0xff]  }
  0x39   : > { %v663_v44 = vrot.slane %v662_v38, 4  ;;  %v658_v51 = vsel %vm4189_vm5, %v653_v42, %v657_v33  ;;  %v667_v52 = vrot.slane %v665_v45, 5  ;;  %v683_v1 = vshrl.u32 %v559_v54, 16  ;;  %v818_v8 = vld [vmem:[#allocation2 + $0x34] sm:$0xf]  ;;  %v430_v21 = vld [vmem:[%s4156_s26 + $0x48] sm:$0xff]  }
  0x3a   : > { %3621 = vmatpush3.bf16.msra.mxu0 %v3900_v40  ;;  %v883_v58 = vsel %vm4177_vm4, %v881_v39, %v882_v48  ;;  %v672_v5 = vrot.slane %v670_v59, 4  ;;  %v675_v6 = vrot.slane %v673_v60, 5  ;;  %v681_v7 = vrot.slane %v679_v61, 5  ;;  %v3905_v9 = vld [vmem:[%s4743_s3 + $0x1d0] sm:$0xff]   ;;  %454 = vst [vmem:[#allocation2 + $0x48] sm:$0xff] %v430_v21   ;;  %v3910_v45 = vld [vmem:[%s4743_s3 + $0x168] sm:$0xff]  }
  0x3b   : > { %v668_v62 = vsel %vm4189_vm5, %v663_v44, %v667_v52  ;;  %v3343_v0 = vcombine.low %v880_v47, %v883_v58  ;;  %v685_v10 = vrot.slane %v683_v1, 4  ;;  %v3336_v11 = vrot.slane %v817_v2, 9  ;;  %3622 = vmatprep.subr.bf16.mxu0 %v3904_v3  ;;  %3682 = vmatprep.subr.bf16.mxu1 %v3905_v9  ;;  %v3907_v17 = vld [vmem:[%s4743_s3 + $0x190] sm:$0xff]   ;;  %v429_v30 = vld [vmem:[%s4156_s26 + $0x44] sm:$0x1]  ;;  %v3911_v49 = vld [vmem:[%s4743_s3 + $0x1d8] sm:$0xff]  }
  0x3c   : > { %2692 = vmatmul.mubr.bf16.gmra.mrb[8].mxu1 %v3342_v24  ;;  %v3327_v4 = vcombine.low %v658_v51, %v668_v62  ;;  %v886_v12 = vrot.slane %v818_v8, 5  ;;  %v676_v14 = vor.u32 %v675_v6, %v672_v5  ;;  %453 = vst [vmem:[#allocation2 + $0x44] sm:$0x1] %v429_v30  ;;  %v3912_v55 = vld [vmem:[%s4743_s3 + $0x128] sm:$0xff]   ;;  %v3913_v58 = vld [vmem:[%s4743_s3 + $0x198] sm:$0xff]   ;;  %s3311_s9 = sshll.u32 %s4769_s25, 1 }
  0x3d   : > { %2595 = vmatmul.mubr.bf16.gmra.mrb[8].mxu0 %v3891_v29  ;;  %2699 = vmatprep.mubr.bf16.mxu1 %v3896_v43  ;;  %v686_v15 = vor.u32 %v685_v10, %v681_v7  ;;  %v560_v18 = vld [vmem:[#allocation2 + $0x38] sm:$0x1]  ;;  %v3903_v29 = vld [vmem:[#allocation2 + $0x30] sm:$0xff]   ;;  %s399_s10 = sadd.s32 %s3312_s13, %s3311_s9 }
  0x3e   : > { %2602 = vmatprep.mubr.bf16.mxu0 %v3327_v4  ;;  %v888_v16 = vrot.slane %v886_v12, 4  ;;  %v677_v19 = vrot.slane %v676_v14, 4  ;;  %v819_v20 = vld [vmem:[#allocation2 + $0x38] sm:$0x1]  ;;  %3623 = vmatpush3.bf16.msra.mxu0 %v3906_v13  ;;  %v689_v23 = vshll.u32 %v560_v18, 16  ;;  %v3902_v24 = vld [vmem:[#allocation2 + $0x3c] sm:$0xff]   ;;  %v887_v25 = vsel %vm4177_vm4, %v3336_v11, %v886_v12 }
  0x3f   : > { %v687_v22 = vrot.slane %v686_v15, 4  ;;  %3683 = vmatpush3.bf16.msra.mxu1 %v3907_v17  ;;  %v889_v26 = vrot.slane %v819_v20, 5  ;;  %v561_v31 = vld [vmem:[#allocation2 + $0x3c] sm:$0xf]  ;;  %v562_v33 = vld [vmem:[#allocation2 + $0x40] sm:$0xf]  ;;  %3624 = vmatprep.subr.bf16.mxu0 %v3910_v45 }
  0x40   : > { %v682_v27 = vsel %vm4189_vm5, %v677_v19, %v681_v7  ;;  %v691_v28 = vrot.slane %v689_v23, 5  ;;  %v694_v34 = vshrl.u32 %v561_v31, 16  ;;  %v697_v35 = vshll.u32 %v561_v31, 16  ;;  %v820_v40 = vld [vmem:[#allocation2 + $0x3c] sm:$0xe]  ;;  %3684 = vmatprep.subr.bf16.mxu1 %v3911_v49  ;;  %v433_v62 = vld [vmem:[%s4156_s26 + $0x54] sm:$0xff]  }
  0x41   : > { %v890_v32 = vsel %vm4177_vm4, %v888_v16, %v889_v26  ;;  %v703_v38 = vshll.u32 %v562_v33, 16  ;;  %v707_v39 = vshrl.u32 %v562_v33, 16  ;;  %v821_v44 = vld [vmem:[#allocation2 + $0x40] sm:$0xf]  ;;  %v3908_v51 = vld [vmem:[#allocation2 + $0x48] sm:$0xff]   ;;  %v3337_v52 = vrot.slane %v820_v40, 9 }
  0x42   : > { %v692_v36 = vsel %vm4189_vm5, %v687_v22, %v691_v28  ;;  %v3344_v37 = vcombine.low %v887_v25, %v890_v32  ;;  %v696_v42 = vrot.slane %v694_v34, 4  ;;  %v699_v43 = vrot.slane %v697_v35, 5  ;;  %3625 = vmatpush3.bf16.msra.mxu0 %v3912_v55  ;;  %457 = vst [vmem:[#allocation2 + $0x54] sm:$0xff] %v433_v62   ;;  %v432_v4 = vld [vmem:[%s4156_s26 + $0x50] sm:$0x1]  ;;  %v3909_v7 = vld [vmem:[#allocation2 + $0x3c] sm:$0xff]  }
  0x43   : > { %v3328_v41 = vcombine.low %v682_v27, %v692_v36  ;;  %v705_v46 = vrot.slane %v703_v38, 5  ;;  %v709_v47 = vrot.slane %v707_v39, 4  ;;  %v893_v48 = vrot.slane %v821_v44, 5  ;;  %v563_v59 = vld [vmem:[#allocation2 + $0x44] sm:$0x1]  ;;  %3685 = vmatpush3.bf16.msra.mxu1 %v3913_v58  ;;  %v3918_v35 = vld [vmem:[%s4743_s3 + $0x130] sm:$0xff]  }
  0x44   : > { %2700 = vmatmul.mubr.bf16.gmra.mrb[12].mxu1 %v3343_v0  ;;  %v700_v50 = vor.u32 %v699_v43, %v696_v42  ;;  %v822_v61 = vld [vmem:[#allocation2 + $0x44] sm:$0x1]  ;;  %v713_v0 = vshll.u32 %v563_v59, 16  ;;  %v564_v5 = vld [vmem:[#allocation2 + $0x48] sm:$0xf]  ;;  %v3924_v59 = vld [vmem:[%s4743_s3 + $0x178] sm:$0xff]  }
  0x45   : > { %2603 = vmatmul.mubr.bf16.gmra.mrb[12].mxu0 %v3897_v57  ;;  %2707 = vmatprep.mubr.bf16.mxu1 %v3902_v24  ;;  %v710_v53 = vor.u32 %v709_v47, %v705_v46  ;;  %v895_v54 = vrot.slane %v893_v48, 4  ;;  %v894_v1 = vsel %vm4177_vm4, %v3337_v52, %v893_v48  ;;  %v896_v2 = vrot.slane %v822_v61, 5  ;;  %456 = vst [vmem:[#allocation2 + $0x50] sm:$0x1] %v432_v4  ;;  %v565_v9 = vld [vmem:[#allocation2 + $0x4c] sm:$0xf] }
  0x46   : > { %2610 = vmatprep.mubr.bf16.mxu0 %v3328_v41  ;;  %v701_v57 = vrot.slane %v700_v50, 4  ;;  %v715_v6 = vrot.slane %v713_v0, 5  ;;  %v718_v10 = vshrl.u32 %v564_v5, 16  ;;  %v721_v11 = vshll.u32 %v564_v5, 16  ;;  %v823_v18 = vld [vmem:[#allocation2 + $0x48] sm:$0xe] }
  0x47   : > { %v711_v60 = vrot.slane %v710_v53, 4  ;;  %v897_v8 = vsel %vm4177_vm4, %v895_v54, %v896_v2  ;;  %v727_v13 = vshll.u32 %v565_v9, 16  ;;  %v731_v14 = vshrl.u32 %v565_v9, 16  ;;  %v824_v19 = vld [vmem:[#allocation2 + $0x4c] sm:$0xf]  ;;  %v3916_v24 = vld [vmem:[%s4743_s3 + $0x170] sm:$0xff]  }
  0x48   : > { %v706_v3 = vsel %vm4189_vm5, %v701_v57, %v705_v46  ;;  %v3345_v12 = vcombine.low %v894_v1, %v897_v8  ;;  %v720_v16 = vrot.slane %v718_v10, 4  ;;  %v723_v17 = vrot.slane %v721_v11, 5  ;;  %v3917_v27 = vld [vmem:[%s4743_s3 + $0x1e0] sm:$0xff]   ;;  %3626 = vmatprep.subr.bf16.mxu0 %v3916_v24  ;;  %v3915_v42 = vld [vmem:[#allocation2 + $0x48] sm:$0xff]   ;;  %v435_v47 = vld [vmem:[%s4156_s26 + $0x5c] sm:$0x1] }
  0x49   : > { %v716_v15 = vsel %vm4189_vm5, %v711_v60, %v715_v6  ;;  %v729_v21 = vrot.slane %v727_v13, 5  ;;  %v733_v22 = vrot.slane %v731_v14, 4  ;;  %v3338_v23 = vrot.slane %v823_v18, 9  ;;  %3686 = vmatprep.subr.bf16.mxu1 %v3917_v27  ;;  %3627 = vmatpush3.bf16.msra.mxu0 %v3918_v35  ;;  %v3919_v39 = vld [vmem:[%s4743_s3 + $0x1a0] sm:$0xff]   ;;  %v3920_v44 = vld [vmem:[%s4743_s3 + $0x1e8] sm:$0xff]   ;;  %v3925_v1 = vld [vmem:[%s4743_s3 + $0x1f0] sm:$0xff]  }
  0x4a   : > { %v3329_v20 = vcombine.low %v706_v3, %v716_v15  ;;  %v724_v25 = vor.u32 %v723_v17, %v720_v16  ;;  %v900_v26 = vrot.slane %v824_v19, 5  ;;  %3687 = vmatpush3.bf16.msra.mxu1 %v3919_v39  ;;  %v3921_v46 = vld [vmem:[%s4743_s3 + $0x1a8] sm:$0xff]   ;;  %459 = vst [vmem:[#allocation2 + $0x5c] sm:$0x1] %v435_v47  ;;  %v567_v49 = vld [vmem:[#allocation2 + $0x54] sm:$0xf]  ;;  %3628 = vmatprep.subr.bf16.mxu0 %v3924_v59 }
  0x4b   : > { %v734_v28 = vor.u32 %v733_v22, %v729_v21  ;;  %3688 = vmatprep.subr.bf16.mxu1 %v3920_v44  ;;  %v568_v50 = vld [vmem:[#allocation2 + $0x58] sm:$0xf]  ;;  %v742_v53 = vshrl.u32 %v567_v49, 16  ;;  %v745_v54 = vshll.u32 %v567_v49, 16  ;;  %v462_v57 = vld [vmem:[%s376_s27 + $0x8] sm:$0x1] }
  0x4c   : > { %2708 = vmatmul.mubr.bf16.gmra.mrb[16].mxu1 %v3344_v37  ;;  %v725_v30 = vrot.slane %v724_v25, 4  ;;  %v902_v31 = vrot.slane %v900_v26, 4  ;;  %v566_v32 = vld [vmem:[#allocation2 + $0x50] sm:$0x1]  ;;  %v901_v37 = vsel %vm4177_vm4, %v3338_v23, %v900_v26  ;;  %v751_v55 = vshll.u32 %v568_v50, 16  ;;  %v3928_v23 = vld [vmem:[%s4743_s3 + $0x1f8] sm:$0xff]  }
  0x4d   : > { %2611 = vmatmul.mubr.bf16.gmra.mrb[16].mxu0 %v3903_v29  ;;  %2715 = vmatprep.mubr.bf16.mxu1 %v3908_v51  ;;  %v3914_v29 = vld [vmem:[#allocation2 + $0x54] sm:$0xff]   ;;  %v735_v33 = vrot.slane %v734_v28, 4  ;;  %v825_v34 = vld [vmem:[#allocation2 + $0x50] sm:$0x1]  ;;  %v737_v36 = vshll.u32 %v566_v32, 16  ;;  %v460_v51 = vld [vmem:[%s376_s27] sm:$0xff]  }
  0x4e   : > { %2618 = vmatprep.mubr.bf16.mxu0 %v3329_v20  ;;  %v903_v38 = vrot.slane %v825_v34, 5  ;;  %v730_v40 = vsel %vm4189_vm5, %v725_v30, %v729_v21  ;;  %464 = vst [vmem:[#allocation2 + $0x60] sm:$0xff] %v460_v51   ;;  %v755_v58 = vshrl.u32 %v568_v50, 16  ;;  %466 = vst [vmem:[#allocation2 + $0x68] sm:$0x1] %v462_v57  ;;  %3689 = vmatpush3.bf16.msra.mxu1 %v3921_v46  ;;  %v744_v60 = vrot.slane %v742_v53, 4 }
  0x4f   : > { %v739_v41 = vrot.slane %v737_v36, 5  ;;  %v747_v61 = vrot.slane %v745_v54, 5  ;;  %v753_v62 = vrot.slane %v751_v55, 5  ;;  %v826_v0 = vld [vmem:[#allocation2 + $0x54] sm:$0xe]  ;;  %3690 = vmatprep.subr.bf16.mxu1 %v3925_v1  ;;  %v3929_v26 = vld [vmem:[%s4743_s3 + $0x1b8] sm:$0xff]  }
  0x50   : > { %v904_v43 = vsel %vm4177_vm4, %v902_v31, %v903_v38  ;;  %v757_v2 = vrot.slane %v755_v58, 4  ;;  %v827_v3 = vld [vmem:[#allocation2 + $0x58] sm:$0xf]  ;;  %v3339_v4 = vrot.slane %v826_v0, 9  ;;  %v3927_v21 = vld [vmem:[%s4743_s3 + $0x1b0] sm:$0xff]   ;;  %v4395_v53 = vld [vmem:[%s4743_s3 + $0x200] sm:$0xff]  }
  0x51   : > { %v3346_v45 = vcombine.low %v901_v37, %v904_v43  ;;  %v740_v48 = vsel %vm4189_vm5, %v735_v33, %v739_v41  ;;  %v748_v5 = vor.u32 %v747_v61, %v744_v60  ;;  %v907_v6 = vrot.slane %v827_v3, 5  ;;  %v569_v9 = vld [vmem:[#allocation2 + $0x5c] sm:$0x1]  ;;  %v3923_v20 = vld [vmem:[#allocation2 + $0x54] sm:$0xff]   ;;  %v1281_v27 = vld [vmem:[#allocation2 + $0xc] sm:$0xe] }
  0x52   : > { %v3330_v52 = vcombine.low %v730_v40, %v740_v48  ;;  %v758_v8 = vor.u32 %v757_v2, %v753_v62  ;;  %v828_v11 = vld [vmem:[#allocation2 + $0x5c] sm:$0x1]  ;;  %v761_v14 = vshll.u32 %v569_v9, 16  ;;  %3691 = vmatpush3.bf16.msra.mxu1 %v3927_v21  ;;  %v1282_v28 = vld [vmem:[#allocation2 + $0x10] sm:$0xf]  ;;  %v3364_v31 = vrot.slane %v1281_v27, 9 }
  0x53   : > { %v749_v10 = vrot.slane %v748_v5, 4  ;;  %v908_v16 = vsel %vm4177_vm4, %v3339_v4, %v907_v6  ;;  %v910_v17 = vrot.slane %v828_v11, 5  ;;  %3692 = vmatprep.subr.bf16.mxu1 %v3928_v23  ;;  %v1283_v30 = vld [vmem:[#allocation2 + $0x14] sm:$0x1]  ;;  %v1331_v32 = vrot.slane %v1282_v28, 5  ;;  %s3313_s30 = sshll.u32 %s399_s10, 3 }
  0x54   : > { %2716 = vmatmul.mubr.bf16.gmra.mrb[20].mxu1 %v3345_v12  ;;  %v909_v12 = vrot.slane %v907_v6, 4  ;;  %v759_v13 = vrot.slane %v758_v8, 4  ;;  %v763_v19 = vrot.slane %v761_v14, 5  ;;  %v1498_v33 = vld [vmem:[#allocation2 + $0x18] sm:$0xf]  ;;  %v1334_v34 = vrot.slane %v1283_v30, 5  ;;  %s4672_s14 = scalar_lea.vmem %s4744_s4, %s3313_s30 }
  0x55   : > { %2619 = vmatmul.mubr.bf16.gmra.mrb[20].mxu0 %v3909_v7  ;;  %2723 = vmatprep.mubr.bf16.mxu1 %v3914_v29  ;;  %v3926_v7 = vld [vmem:[%s4743_s3 + $0x138] sm:$0xff]   ;;  %v3922_v15 = vld [vmem:[#allocation2 + $0x60] sm:$0xff]   ;;  %v754_v18 = vsel %vm4189_vm5, %v749_v10, %v753_v62  ;;  %v1523_v37 = vshrl.u32 %v1498_v33, 16  ;;  %v1332_v38 = vsel %vm4177_vm4, %v3364_v31, %v1331_v32  ;;  %v1333_v39 = vrot.slane %v1331_v32, 4  ;;  %v1026_v46 = vld [vmem:[#allocation2 + $0x10] sm:$0xf] }
  0x56   : > { %2626 = vmatprep.mubr.bf16.mxu0 %v3330_v52  ;;  %3629 = vmatpush3.bf16.msra.mxu0 %v3926_v7  ;;  %v911_v22 = vsel %vm4177_vm4, %v909_v12, %v910_v17  ;;  %v764_v24 = vsel %vm4189_vm5, %v759_v13, %v763_v19  ;;  %v1499_v35 = vld [vmem:[#allocation2 + $0x1c] sm:$0xf]  ;;  %v1500_v36 = vld [vmem:[#allocation2 + $0x20] sm:$0x1]  ;;  %v1526_v40 = vshll.u32 %v1498_v33, 16  ;;  %v1059_v60 = vshll.u32 %v1026_v46, 16 }
  0x57   : > { %v3347_v25 = vcombine.low %v908_v16, %v911_v22  ;;  %v3331_v29 = vcombine.low %v754_v18, %v764_v24  ;;  %v1532_v41 = vshll.u32 %v1499_v35, 16  ;;  %3693 = vmatpush3.bf16.msra.mxu1 %v3929_v26  ;;  %v1525_v43 = vrot.slane %v1523_v37, 4  ;;  %v1027_v51 = vld [vmem:[#allocation2 + $0x14] sm:$0x1]  ;;  %3758 = vmatprep.subr.bf16.mxu0 %v4395_v53  ;;  %v1284_v6 = vld [vmem:[#allocation2 + $0x18] sm:$0xe] }
  0x58   : > { %v1536_v44 = vshrl.u32 %v1499_v35, 16  ;;  %v1335_v48 = vsel %vm4177_vm4, %v1333_v39, %v1334_v34  ;;  %v1528_v49 = vrot.slane %v1526_v40, 5  ;;  %v1063_v61 = vshrl.u32 %v1026_v46, 16  ;;  %3790 = vmatprep.subr.bf16.mxu1 %v4395_v53  ;;  %v1285_v9 = vld [vmem:[#allocation2 + $0x1c] sm:$0xf]  ;;  %v3933_v34 = vld [vmem:[%s4743_s3 + $0x208] sm:$0xff]  }
  0x59   : > { %v1534_v50 = vrot.slane %v1532_v41, 5  ;;  %v3372_v54 = vcombine.low %v1332_v38, %v1335_v48  ;;  %v1069_v1 = vshll.u32 %v1027_v51, 16  ;;  %v1061_v4 = vrot.slane %v1059_v60, 5  ;;  %v1286_v10 = vld [vmem:[#allocation2 + $0x20] sm:$0x1]  ;;  %v3930_v18 = vld [vmem:[#allocation2 + $0x18] sm:$0xff]  }
  0x5a   : > { %v1538_v55 = vrot.slane %v1536_v44, 4  ;;  %v1529_v58 = vor.u32 %v1528_v49, %v1525_v43  ;;  %v1065_v5 = vrot.slane %v1063_v61, 4  ;;  %v3365_v14 = vrot.slane %v1284_v6, 9  ;;  %v1502_v16 = vld [vmem:[#allocation2 + $0x28] sm:$0xf]  ;;  %v4418_v43 = vld [vmem:[%s4743_s3 + $0x210] sm:$0xff]  }
  0x5b   : > { %v1071_v8 = vrot.slane %v1069_v1, 5  ;;  %v1338_v19 = vrot.slane %v1285_v9, 5  ;;  %v1503_v21 = vld [vmem:[#allocation2 + $0x2c] sm:$0x1]  ;;  %v1028_v27 = vld [vmem:[#allocation2 + $0x18] sm:$0xf] }
  0x5c   : > { %2724 = vmatmul.mubr.bf16.gmra.mrb[24].mxu1 %v3346_v45  ;;  %v1542_v45 = vshll.u32 %v1500_v36, 16  ;;  %v1539_v62 = vor.u32 %v1538_v55, %v1534_v50  ;;  %v1530_v2 = vrot.slane %v1529_v58, 4  ;;  %v1066_v13 = vor.u32 %v1065_v5, %v1061_v4  ;;  %v1029_v28 = vld [vmem:[#allocation2 + $0x1c] sm:$0xf]  ;;  %v1030_v33 = vld [vmem:[#allocation2 + $0x20] sm:$0x1] }
  0x5d   : > { %2627 = vmatmul.mubr.bf16.gmra.mrb[24].mxu0 %v3915_v42  ;;  %2731 = vmatprep.mubr.bf16.mxu1 %v3922_v15  ;;  %v1025_v42 = vld [vmem:[#allocation2 + $0xc] sm:$0xf]  ;;  %v1501_v15 = vld [vmem:[#allocation2 + $0x24] sm:$0xf]  ;;  %v1340_v30 = vrot.slane %v1338_v19, 4  ;;  %v1556_v32 = vshll.u32 %v1502_v16, 16 }
  0x5e   : > { %2634 = vmatprep.mubr.bf16.mxu0 %v3331_v29  ;;  %v1050_v47 = vshrl.u32 %v1025_v42, 16  ;;  %v1053_v52 = vshll.u32 %v1025_v42, 16  ;;  %v1544_v0 = vrot.slane %v1542_v45, 5  ;;  %v1540_v7 = vrot.slane %v1539_v62, 4  ;;  %v1287_v48 = vld [vmem:[#allocation2 + $0x24] sm:$0xe] }
  0x5f   : > { %v1535_v11 = vsel %vm4189_vm5, %v1530_v2, %v1534_v50  ;;  %v1547_v22 = vshrl.u32 %v1501_v15, 16  ;;  %v1550_v26 = vshll.u32 %v1501_v15, 16  ;;  %v1339_v29 = vsel %vm4177_vm4, %v3365_v14, %v1338_v19  ;;  %v1504_v2 = vld [vmem:[#allocation2 + $0x30] sm:$0xf]  ;;  %v3932_v15 = vld [vmem:[#allocation2 + $0x24] sm:$0xff]  }
  0x60   : > { %v1052_v57 = vrot.slane %v1050_v47, 4  ;;  %v1055_v59 = vrot.slane %v1053_v52, 5  ;;  %v1545_v17 = vsel %vm4189_vm5, %v1540_v7, %v1544_v0  ;;  %v1560_v37 = vshrl.u32 %v1502_v16, 16  ;;  %v1032_v19 = vld [vmem:[#allocation2 + $0x28] sm:$0xf] }
  0x61   : > { %v3388_v23 = vcombine.low %v1535_v11, %v1545_v17  ;;  %v1549_v31 = vrot.slane %v1547_v22, 4  ;;  %v1552_v36 = vrot.slane %v1550_v26, 5  ;;  %v1566_v38 = vshll.u32 %v1503_v21, 16  ;;  %v1506_v11 = vld [vmem:[#allocation2 + $0x38] sm:$0x1] }
  0x62   : > { %v1056_v3 = vor.u32 %v1055_v59, %v1052_v57  ;;  %v1558_v41 = vrot.slane %v1556_v32, 5  ;;  %v1074_v42 = vshrl.u32 %v1028_v27, 16  ;;  %v1562_v46 = vrot.slane %v1560_v37, 4  ;;  %v1289_v59 = vld [vmem:[#allocation2 + $0x2c] sm:$0x1] }
  0x63   : > { %v1553_v45 = vor.u32 %v1552_v36, %v1549_v31  ;;  %v1568_v47 = vrot.slane %v1566_v38, 5  ;;  %v1077_v50 = vshll.u32 %v1028_v27, 16  ;;  %v1083_v51 = vshll.u32 %v1029_v28, 16  ;;  %v1290_v38 = vld [vmem:[#allocation2 + $0x30] sm:$0xe] }
  0x64   : > { %2732 = vmatmul.mubr.bf16.gmra.mrb[28].mxu1 %v3347_v25  ;;  %v1057_v12 = vrot.slane %v1056_v3, 4  ;;  %v1067_v25 = vrot.slane %v1066_v13, 4  ;;  %v1076_v49 = vrot.slane %v1074_v42, 4  ;;  %v1087_v52 = vshrl.u32 %v1029_v28, 16  ;;  %v3937_v13 = vld [vmem:[%s4743_s3 + $0x218] sm:$0xff]  }
  0x65   : > { %2635 = vmatmul.mubr.bf16.gmra.mrb[28].mxu0 %v3923_v20  ;;  %v1341_v20 = vrot.slane %v1286_v10, 5  ;;  %2869 = vmatprep.mubr.bf16.mxu1 %v3388_v23  ;;  %v1554_v55 = vrot.slane %v1553_v45, 4  ;;  %v1563_v57 = vor.u32 %v1562_v46, %v1558_v41  ;;  %v1093_v58 = vshll.u32 %v1030_v33, 16  ;;  %v1292_v45 = vld [vmem:[#allocation2 + $0x38] sm:$0x1] }
  0x66   : > { %2772 = vmatprep.mubr.bf16.mxu0 %v3372_v54  ;;  %v1062_v24 = vsel %vm4189_vm5, %v1057_v12, %v1061_v4  ;;  %v1072_v35 = vsel %vm4189_vm5, %v1067_v25, %v1071_v8  ;;  %v1288_v54 = vld [vmem:[#allocation2 + $0x28] sm:$0xf]  ;;  %v3366_v60 = vrot.slane %v1287_v48, 9  ;;  %v1079_v61 = vrot.slane %v1077_v50, 5  ;;  %v1031_v12 = vld [vmem:[#allocation2 + $0x24] sm:$0xf] }
  0x67   : > { %v3356_v39 = vcombine.low %v1062_v24, %v1072_v35  ;;  %v1342_v40 = vsel %vm4177_vm4, %v1340_v30, %v1341_v20  ;;  %v1085_v62 = vrot.slane %v1083_v51, 5  ;;  %v1089_v0 = vrot.slane %v1087_v52, 4  ;;  %v1033_v24 = vld [vmem:[#allocation2 + $0x2c] sm:$0x1]  ;;  %v1774_v63 = vld [vmem:[#allocation2 + $0x68] sm:$0x1] }
  0x68   : > { %v3373_v44 = vcombine.low %v1339_v29, %v1342_v40  ;;  %v1345_v1 = vrot.slane %v1288_v54, 5  ;;  %v1559_v3 = vsel %vm4189_vm5, %v1554_v55, %v1558_v41  ;;  %v1564_v4 = vrot.slane %v1563_v57, 4  ;;  %v4446_v29 = vld [vmem:[%s4743_s3 + $0x220] sm:$0xff]   ;;  %v4465_v55 = vld [vmem:[%s4743_s3 + $0x228] sm:$0xff]  }
  0x69   : > { %v1095_v5 = vrot.slane %v1093_v58, 5  ;;  %v1348_v6 = vrot.slane %v1289_v59, 5  ;;  %v1080_v7 = vor.u32 %v1079_v61, %v1076_v49  ;;  %v1090_v8 = vor.u32 %v1089_v0, %v1085_v62  ;;  %v1507_v49 = vld [vmem:[#allocation2 + $0x3c] sm:$0xf]  ;;  %v467_v57 = vld [vmem:[%s4459_s28] sm:$0xff]  }
  0x6a   : > { %v1346_v9 = vsel %vm4177_vm4, %v3366_v60, %v1345_v1  ;;  %v1347_v10 = vrot.slane %v1345_v1, 4  ;;  %v1569_v14 = vsel %vm4189_vm5, %v1564_v4, %v1568_v47  ;;  %v1571_v16 = vshrl.u32 %v1504_v2, 16  ;;  %471 = vst [vmem:[#allocation2 + $0x6c] sm:$0xff] %v467_v57  }
  0x6b   : > { %v1574_v17 = vshll.u32 %v1504_v2, 16  ;;  %v3389_v20 = vcombine.low %v1559_v3, %v1569_v14  ;;  %v1081_v21 = vrot.slane %v1080_v7, 4  ;;  %v1091_v22 = vrot.slane %v1090_v8, 4  ;;  %v1509_v3 = vld [vmem:[#allocation2 + $0x44] sm:$0x1] }
  0x6c   : > { %2870 = vmatmul.mubr.bf16.vlgmr.msra.gmra.mrb[32].mxu1 %v3930_v18  ;;  %v1349_v23 = vsel %vm4177_vm4, %v1347_v10, %v1348_v6  ;;  %v1573_v26 = vrot.slane %v1571_v16, 4  ;;  %v1590_v33 = vshll.u32 %v1506_v11, 16  ;;  %v1098_v36 = vshrl.u32 %v1031_v12, 16  ;;  %v1035_v10 = vld [vmem:[#allocation2 + $0x34] sm:$0xf] }
  0x6d   : > { %3798 = vmatpush3.bf16.msra.mxu1 %v4395_v53  ;;  %2773 = vmatmul.mubr.bf16.vlgmr.msra.gmra.mrb[32].mxu0 %v3356_v39  ;;  %v3374_v25 = vcombine.low %v1346_v9, %v1349_v23  ;;  %v1576_v27 = vrot.slane %v1574_v17, 5  ;;  %v1086_v30 = vsel %vm4189_vm5, %v1081_v21, %v1085_v62  ;;  %v1096_v31 = vsel %vm4189_vm5, %v1091_v22, %v1095_v5  ;;  %v1291_v39 = vld [vmem:[#allocation2 + $0x34] sm:$0xf]  ;;  %v1508_v62 = vld [vmem:[#allocation2 + $0x40] sm:$0xf] }
  0x6e   : > { %3791 = vmatprep.subr.bf16.mxu1 %v3933_v34  ;;  %3759 = vmatpush3.bf16.msra.mxu0 %v4395_v53  ;;  %v1505_v53 = vld [vmem:[#allocation2 + $0x34] sm:$0xf]  ;;  %v1101_v37 = vshll.u32 %v1031_v12, 16  ;;  %v1592_v41 = vrot.slane %v1590_v33, 5  ;;  %v1107_v42 = vshll.u32 %v1032_v19, 16  ;;  %v1100_v47 = vrot.slane %v1098_v36, 4 }
  0x6f   : > { %2780 = vmatprep.mubr.bf16.mxu0 %v3373_v44  ;;  %3760 = vmatprep.subr.bf16.mxu0 %v3933_v34  ;;  %v1580_v18 = vshll.u32 %v1505_v53, 16  ;;  %v1584_v32 = vshrl.u32 %v1505_v53, 16  ;;  %v1577_v35 = vor.u32 %v1576_v27, %v1573_v26  ;;  %v1111_v44 = vshrl.u32 %v1032_v19, 16  ;;  %v1034_v5 = vld [vmem:[#allocation2 + $0x30] sm:$0xf] }
  0x70   : > { %2877 = vmatprep.mubr.bf16.mxu1 %v3389_v20  ;;  %v1103_v48 = vrot.slane %v1101_v37, 5  ;;  %v1109_v51 = vrot.slane %v1107_v42, 5  ;;  %v3367_v54 = vrot.slane %v1290_v38, 9  ;;  %v1352_v61 = vrot.slane %v1291_v39, 5  ;;  %v3934_v53 = vld [vmem:[#allocation2 + $0x30] sm:$0xff]  }
  0x71   : > { %3799 = vmatpush3.bf16.msra.mxu1 %v3933_v34  ;;  %v4441_v28 = vrot.slane %v1580_v18, 5  ;;  %v1586_v40 = vrot.slane %v1584_v32, 4  ;;  %v1578_v46 = vrot.slane %v1577_v35, 4  ;;  %v1113_v52 = vrot.slane %v1111_v44, 4  ;;  %v1294_v35 = vld [vmem:[#allocation2 + $0x40] sm:$0xf] }
  0x72   : > { %3792 = vmatprep.subr.bf16.mxu1 %v4418_v43  ;;  %3761 = vmatpush3.bf16.msra.mxu0 %v3933_v34  ;;  %v3357_v34 = vcombine.low %v1086_v30, %v1096_v31  ;;  %v1104_v59 = vor.u32 %v1103_v48, %v1100_v47  ;;  %v1355_v2 = vrot.slane %v1292_v45, 5  ;;  %v1595_v4 = vshrl.u32 %v1507_v49, 16  ;;  %v1293_v30 = vld [vmem:[#allocation2 + $0x3c] sm:$0xe] }
  0x73   : > { %3762 = vmatprep.subr.bf16.mxu0 %v4418_v43  ;;  %v1587_v50 = vor.u32 %v1586_v40, %v4441_v28  ;;  %v1583_v58 = vsel %vm4189_vm5, %v1578_v46, %v4441_v28  ;;  %v1114_v1 = vor.u32 %v1113_v52, %v1109_v51  ;;  %v1353_v7 = vsel %vm4177_vm4, %v3367_v54, %v1352_v61  ;;  %v1295_v40 = vld [vmem:[#allocation2 + $0x44] sm:$0x1]  ;;  %v1510_v46 = vld [vmem:[#allocation2 + $0x48] sm:$0xf] }
  0x74   : > { %2878 = vmatmul.mubr.bf16.gmra.mrb[36].mxu1 %v3932_v15  ;;  %v1105_v6 = vrot.slane %v1104_v59, 4  ;;  %v1354_v8 = vrot.slane %v1352_v61, 4  ;;  %v1598_v9 = vshll.u32 %v1507_v49, 16  ;;  %v1604_v14 = vshll.u32 %v1508_v62, 16  ;;  %v4481_v15 = vld [vmem:[%s4743_s3 + $0x230] sm:$0xff]  }
  0x75   : > { %3800 = vmatpush3.bf16.msra.mxu1 %v4418_v43  ;;  %2781 = vmatmul.mubr.bf16.gmra.mrb[36].mxu0 %v3357_v34  ;;  %v1588_v0 = vrot.slane %v1587_v50, 4  ;;  %v1115_v12 = vrot.slane %v1114_v1, 4  ;;  %v1608_v23 = vshrl.u32 %v1508_v62, 16  ;;  %v1614_v27 = vshll.u32 %v1509_v3, 16  ;;  %v1511_v50 = vld [vmem:[#allocation2 + $0x4c] sm:$0xf] }
  0x76   : > { %3793 = vmatprep.subr.bf16.mxu1 %v3937_v13  ;;  %3763 = vmatpush3.bf16.msra.mxu0 %v4418_v43  ;;  %v1117_v43 = vshll.u32 %v1033_v24, 16  ;;  %v1110_v17 = vsel %vm4189_vm5, %v1105_v6, %v1109_v51  ;;  %v1356_v18 = vsel %vm4177_vm4, %v1354_v8, %v1355_v2  ;;  %v1600_v19 = vrot.slane %v1598_v9, 5  ;;  %v1036_v24 = vld [vmem:[#allocation2 + $0x38] sm:$0x1]  ;;  %v1037_v62 = vld [vmem:[#allocation2 + $0x3c] sm:$0xf] }
  0x77   : > { %3764 = vmatprep.subr.bf16.mxu0 %v3937_v13  ;;  %2788 = vmatprep.mubr.bf16.mxu0 %v3374_v25  ;;  %v1593_v11 = vsel %vm4189_vm5, %v1588_v0, %v1592_v41  ;;  %v3375_v21 = vcombine.low %v1353_v7, %v1356_v18  ;;  %v1606_v22 = vrot.slane %v1604_v14, 5  ;;  %v1122_v28 = vshrl.u32 %v1034_v5, 16  ;;  %v1038_v0 = vld [vmem:[#allocation2 + $0x40] sm:$0xf]  ;;  %v1296_v18 = vld [vmem:[#allocation2 + $0x48] sm:$0xe] }
  0x78   : > { %v1119_v60 = vrot.slane %v1117_v43, 5  ;;  %v3390_v16 = vcombine.low %v1583_v58, %v1593_v11  ;;  %v1610_v31 = vrot.slane %v1608_v23, 4  ;;  %v1125_v32 = vshll.u32 %v1034_v5, 16  ;;  %v1512_v58 = vld [vmem:[#allocation2 + $0x50] sm:$0x1] }
  0x79   : > { %3801 = vmatpush3.bf16.msra.mxu1 %v3937_v13  ;;  %v1131_v33 = vshll.u32 %v1035_v10, 16  ;;  %v1135_v34 = vshrl.u32 %v1035_v10, 16  ;;  %v1616_v37 = vrot.slane %v1614_v27, 5  ;;  %v1124_v38 = vrot.slane %v1122_v28, 4 }
  0x7a   : > { %3794 = vmatprep.subr.bf16.mxu1 %v4446_v29  ;;  %3765 = vmatpush3.bf16.msra.mxu0 %v3937_v13  ;;  %v1597_v13 = vrot.slane %v1595_v4, 4  ;;  %v1120_v20 = vsel %vm4189_vm5, %v1115_v12, %v1119_v60  ;;  %v1141_v39 = vshll.u32 %v1036_v24, 16  ;;  %v1611_v41 = vor.u32 %v1610_v31, %v1606_v22  ;;  %v3936_v4 = vld [vmem:[#allocation2 + $0x3c] sm:$0xff]   ;;  %v1298_v24 = vld [vmem:[#allocation2 + $0x50] sm:$0x1] }
  0x7b   : > { %3766 = vmatprep.subr.bf16.mxu0 %v4446_v29  ;;  %2885 = vmatprep.mubr.bf16.mxu1 %v3390_v16  ;;  %v3358_v25 = vcombine.low %v1110_v17, %v1120_v20  ;;  %v1127_v42 = vrot.slane %v1125_v32, 5  ;;  %v1133_v44 = vrot.slane %v1131_v33, 5  ;;  %v1137_v45 = vrot.slane %v1135_v34, 4 }
  0x7c   : > { %v1601_v26 = vor.u32 %v1600_v19, %v1597_v13  ;;  %2886 = vmatmul.mubr.bf16.gmra.mrb[40].mxu1 %v3934_v53  ;;  %v1143_v48 = vrot.slane %v1141_v39, 5  ;;  %v3368_v43 = vrot.slane %v1293_v30, 9  ;;  %v1359_v49 = vrot.slane %v1294_v35, 5  ;;  %v1039_v13 = vld [vmem:[#allocation2 + $0x44] sm:$0x1] }
  0x7d   : > { %3802 = vmatpush3.bf16.msra.mxu1 %v4446_v29  ;;  %2789 = vmatmul.mubr.bf16.gmra.mrb[40].mxu0 %v3358_v25  ;;  %v1612_v51 = vrot.slane %v1611_v41, 4  ;;  %v1128_v52 = vor.u32 %v1127_v42, %v1124_v38  ;;  %v1138_v54 = vor.u32 %v1137_v45, %v1133_v44  ;;  %v1362_v57 = vrot.slane %v1295_v40, 5  ;;  %v1297_v19 = vld [vmem:[#allocation2 + $0x4c] sm:$0xf]  ;;  %v1513_v30 = vld [vmem:[#allocation2 + $0x54] sm:$0xf] }
  0x7e   : > { %3795 = vmatprep.subr.bf16.mxu1 %v4465_v55  ;;  %3767 = vmatpush3.bf16.msra.mxu0 %v4446_v29  ;;  %v4496_v29 = vld [vmem:[%s4743_s3 + $0x238] sm:$0xff]   ;;  %v1602_v36 = vrot.slane %v1601_v26, 4  ;;  %v1361_v59 = vrot.slane %v1359_v49, 4  ;;  %v1619_v60 = vshrl.u32 %v1510_v46, 16  ;;  %v1622_v61 = vshll.u32 %v1510_v46, 16 }
  0x7f   : > { %3768 = vmatprep.subr.bf16.mxu0 %v4465_v55  ;;  %2796 = vmatprep.mubr.bf16.mxu0 %v3375_v21  ;;  %v1617_v1 = vsel %vm4189_vm5, %v1612_v51, %v1616_v37  ;;  %v1129_v2 = vrot.slane %v1128_v52, 4  ;;  %v1139_v3 = vrot.slane %v1138_v54, 4  ;;  %v1628_v5 = vshll.u32 %v1511_v50, 16  ;;  %v1514_v35 = vld [vmem:[#allocation2 + $0x58] sm:$0xf] }
  0x80   : > { %v1607_v47 = vsel %vm4189_vm5, %v1602_v36, %v1606_v22  ;;  %v1363_v53 = vsel %vm4177_vm4, %v1361_v59, %v1362_v57  ;;  %v1621_v7 = vrot.slane %v1619_v60, 4  ;;  %v1624_v8 = vrot.slane %v1622_v61, 5  ;;  %v1515_v45 = vld [vmem:[#allocation2 + $0x5c] sm:$0x1]  ;;  %v3938_v57 = vld [vmem:[#allocation2 + $0x48] sm:$0xff]  }
  0x81   : > { %3803 = vmatpush3.bf16.msra.mxu1 %v4465_v55  ;;  %v3391_v6 = vcombine.low %v1607_v47, %v1617_v1  ;;  %v1134_v9 = vsel %vm4189_vm5, %v1129_v2, %v1133_v44  ;;  %v1144_v10 = vsel %vm4189_vm5, %v1139_v3, %v1143_v48  ;;  %v1630_v12 = vrot.slane %v1628_v5, 5  ;;  %v1041_v60 = vld [vmem:[#allocation2 + $0x4c] sm:$0xf]  ;;  %v1042_v2 = vld [vmem:[#allocation2 + $0x50] sm:$0x1] }
  0x82   : > { %3796 = vmatprep.subr.bf16.mxu1 %v4481_v15  ;;  %3769 = vmatpush3.bf16.msra.mxu0 %v4465_v55  ;;  %v1360_v55 = vsel %vm4177_vm4, %v3368_v43, %v1359_v49  ;;  %v3359_v14 = vcombine.low %v1134_v9, %v1144_v10  ;;  %v1632_v16 = vshrl.u32 %v1511_v50, 16  ;;  %v1638_v17 = vshll.u32 %v1512_v58, 16  ;;  %v1040_v43 = vld [vmem:[#allocation2 + $0x48] sm:$0xf] }
  0x83   : > { %3770 = vmatprep.subr.bf16.mxu0 %v4481_v15  ;;  %v3376_v11 = vcombine.low %v1360_v55, %v1363_v53  ;;  %2893 = vmatprep.mubr.bf16.mxu1 %v3391_v6  ;;  %v1146_v20 = vshrl.u32 %v1037_v62, 16  ;;  %v1149_v21 = vshll.u32 %v1037_v62, 16  ;;  %v1155_v22 = vshll.u32 %v1038_v0, 16  ;;  %v1299_v53 = vld [vmem:[#allocation2 + $0x54] sm:$0xe] }
  0x84   : > { %2894 = vmatmul.mubr.bf16.gmra.mrb[44].mxu1 %v3936_v4  ;;  %v1159_v23 = vshrl.u32 %v1038_v0, 16  ;;  %v1634_v26 = vrot.slane %v1632_v16, 4  ;;  %v1640_v27 = vrot.slane %v1638_v17, 5  ;;  %v1165_v28 = vshll.u32 %v1039_v13, 16  ;;  %v1516_v17 = vld [vmem:[#allocation2 + $0x60] sm:$0xf] }
  0x85   : > { %3804 = vmatpush3.bf16.msra.mxu1 %v4481_v15  ;;  %2797 = vmatmul.mubr.bf16.gmra.mrb[44].mxu0 %v3359_v14  ;;  %v1148_v31 = vrot.slane %v1146_v20, 4  ;;  %v1151_v32 = vrot.slane %v1149_v21, 5  ;;  %v1157_v33 = vrot.slane %v1155_v22, 5  ;;  %v3369_v39 = vrot.slane %v1296_v18, 9  ;;  %v1517_v22 = vld [vmem:[#allocation2 + $0x64] sm:$0xf] }
  0x86   : > { %3797 = vmatprep.subr.bf16.mxu1 %v4496_v29  ;;  %3771 = vmatpush3.bf16.msra.mxu0 %v4481_v15  ;;  %v1625_v15 = vor.u32 %v1624_v8, %v1621_v7  ;;  %v1161_v34 = vrot.slane %v1159_v23, 4  ;;  %v1635_v37 = vor.u32 %v1634_v26, %v1630_v12  ;;  %v1167_v38 = vrot.slane %v1165_v28, 5  ;;  %v1300_v7 = vld [vmem:[#allocation2 + $0x58] sm:$0xf] }
  0x87   : > { %3772 = vmatprep.subr.bf16.mxu0 %v4496_v29  ;;  %2804 = vmatprep.mubr.bf16.mxu0 %v3376_v11  ;;  %v1152_v40 = vor.u32 %v1151_v32, %v1148_v31  ;;  %v1366_v41 = vrot.slane %v1297_v19, 5  ;;  %v1369_v42 = vrot.slane %v1298_v24, 5  ;;  %v1643_v46 = vshrl.u32 %v1513_v30, 16 }
  0x88   : > { %v1626_v25 = vrot.slane %v1625_v15, 4  ;;  %v1636_v44 = vrot.slane %v1635_v37, 4  ;;  %v1646_v47 = vshll.u32 %v1513_v30, 16  ;;  %v1652_v48 = vshll.u32 %v1514_v35, 16 }
  0x89   : > { %3805 = vmatpush3.bf16.msra.mxu1 %v4496_v29  ;;  %v1153_v49 = vrot.slane %v1152_v40, 4  ;;  %v1367_v51 = vsel %vm4177_vm4, %v3369_v39, %v1366_v41  ;;  %v1368_v52 = vrot.slane %v1366_v41, 4  ;;  %v1645_v58 = vrot.slane %v1643_v46, 4 }
  0x8a   : > { %3773 = vmatpush3.bf16.msra.mxu0 %v4496_v29  ;;  %v1631_v36 = vsel %vm4189_vm5, %v1626_v25, %v1630_v12  ;;  %v1162_v29 = vor.u32 %v1161_v34, %v1157_v33  ;;  %v1641_v54 = vsel %vm4189_vm5, %v1636_v44, %v1640_v27  ;;  %v1648_v55 = vrot.slane %v1646_v47, 5  ;;  %v1301_v12 = vld [vmem:[#allocation2 + $0x5c] sm:$0x1]  ;;  %v1518_v34 = vld [vmem:[#allocation2 + $0x68] sm:$0x1]  ;;  %v3940_v44 = vld [vmem:[#allocation2 + $0x54] sm:$0xff]  }
  0x8b   : > { %v1654_v59 = vrot.slane %v1652_v48, 5  ;;  %v3392_v61 = vcombine.low %v1631_v36, %v1641_v54  ;;  %v1158_v62 = vsel %vm4189_vm5, %v1153_v49, %v1157_v33  ;;  %v1370_v1 = vsel %vm4177_vm4, %v1368_v52, %v1369_v42  ;;  %v1044_v47 = vld [vmem:[#allocation2 + $0x58] sm:$0xf]  ;;  %v469_v52 = vld [vmem:[%s4459_s28 + $0x8] sm:$0x1] }
  0x8c   : > { %v1163_v50 = vrot.slane %v1162_v29, 4  ;;  %v3377_v4 = vcombine.low %v1367_v51, %v1370_v1  ;;  %v1649_v5 = vor.u32 %v1648_v55, %v1645_v58  ;;  %v1656_v6 = vshrl.u32 %v1514_v35, 16  ;;  %v1043_v29 = vld [vmem:[#allocation2 + $0x54] sm:$0xf]  ;;  %v1045_v51 = vld [vmem:[#allocation2 + $0x5c] sm:$0x1] }
  0x8d   : > { %2901 = vmatprep.mubr.bf16.mxu1 %v3392_v61  ;;  %v1662_v8 = vshll.u32 %v1515_v45, 16  ;;  %v1170_v9 = vshrl.u32 %v1040_v43, 16  ;;  %v1173_v10 = vshll.u32 %v1040_v43, 16  ;;  %v1179_v11 = vshll.u32 %v1041_v60, 16  ;;  %473 = vst [vmem:[#allocation2 + $0x74] sm:$0x1] %v469_v52 }
  0x8e   : > { %v1168_v0 = vsel %vm4189_vm5, %v1163_v50, %v1167_v38  ;;  %2902 = vmatmul.mubr.bf16.gmra.mrb[48].mxu1 %v3938_v57  ;;  %v1650_v13 = vrot.slane %v1649_v5, 4  ;;  %v1658_v14 = vrot.slane %v1656_v6, 4  ;;  %v1183_v15 = vshrl.u32 %v1041_v60, 16  ;;  %v1303_v60 = vld [vmem:[#allocation2 + $0x64] sm:$0xf] }
  0x8f   : > { %v3360_v3 = vcombine.low %v1158_v62, %v1168_v0  ;;  %v1189_v16 = vshll.u32 %v1042_v2, 16  ;;  %v1664_v18 = vrot.slane %v1662_v8, 5  ;;  %v1172_v19 = vrot.slane %v1170_v9, 4  ;;  %v1304_v2 = vld [vmem:[#allocation2 + $0x68] sm:$0x1] }
  0x90   : > { %v1175_v20 = vrot.slane %v1173_v10, 5  ;;  %v1181_v21 = vrot.slane %v1179_v11, 5  ;;  %v1655_v23 = vsel %vm4189_vm5, %v1650_v13, %v1654_v59  ;;  %v1659_v24 = vor.u32 %v1658_v14, %v1654_v59  ;;  %v1302_v59 = vld [vmem:[#allocation2 + $0x60] sm:$0xe]  ;;  %v1520_v11 = vld [vmem:[#allocation2 + $0x70] sm:$0xf] }
  0x91   : > { %2805 = vmatmul.mubr.bf16.gmra.mrb[48].mxu0 %v3360_v3  ;;  %v1185_v25 = vrot.slane %v1183_v15, 4  ;;  %v1191_v26 = vrot.slane %v1189_v16, 5  ;;  %v3370_v28 = vrot.slane %v1299_v53, 9  ;;  %v1373_v30 = vrot.slane %v1300_v7, 5  ;;  %v1519_v53 = vld [vmem:[#allocation2 + $0x6c] sm:$0xf] }
  0x92   : > { %2812 = vmatprep.mubr.bf16.mxu0 %v3377_v4  ;;  %v1176_v27 = vor.u32 %v1175_v20, %v1172_v19  ;;  %v1376_v31 = vrot.slane %v1301_v12, 5  ;;  %v1660_v32 = vrot.slane %v1659_v24, 4  ;;  %v1667_v35 = vshrl.u32 %v1516_v17, 16 }
  0x93   : > { %v1186_v33 = vor.u32 %v1185_v25, %v1181_v21  ;;  %v1670_v36 = vshll.u32 %v1516_v17, 16  ;;  %v1374_v38 = vsel %vm4177_vm4, %v3370_v28, %v1373_v30  ;;  %v1375_v39 = vrot.slane %v1373_v30, 4  ;;  %v1046_v28 = vld [vmem:[#allocation2 + $0x60] sm:$0xf] }
  0x94   : > { %v1177_v37 = vrot.slane %v1176_v27, 4  ;;  %v1676_v40 = vshll.u32 %v1517_v22, 16  ;;  %v1665_v41 = vsel %vm4189_vm5, %v1660_v32, %v1664_v18  ;;  %v1669_v45 = vrot.slane %v1667_v35, 4  ;;  %v3942_v32 = vld [vmem:[#allocation2 + $0x60] sm:$0xff]  }
  0x95   : > { %v1187_v42 = vrot.slane %v1186_v33, 4  ;;  %v1672_v46 = vrot.slane %v1670_v36, 5  ;;  %v3393_v48 = vcombine.low %v1655_v23, %v1665_v41  ;;  %v1377_v49 = vsel %vm4177_vm4, %v1375_v39, %v1376_v31  ;;  %v1521_v33 = vld [vmem:[#allocation2 + $0x74] sm:$0x1] }
  0x96   : > { %v1182_v43 = vsel %vm4189_vm5, %v1177_v37, %v1181_v21  ;;  %v1678_v50 = vrot.slane %v1676_v40, 5  ;;  %v3378_v57 = vcombine.low %v1374_v38, %v1377_v49  ;;  %v1680_v55 = vshrl.u32 %v1517_v22, 16  ;;  %v1047_v40 = vld [vmem:[#allocation2 + $0x64] sm:$0xf] }
  0x97   : > { %v1192_v54 = vsel %vm4189_vm5, %v1187_v42, %v1191_v26  ;;  %v1673_v58 = vor.u32 %v1672_v46, %v1669_v45  ;;  %2909 = vmatprep.mubr.bf16.mxu1 %v3393_v48  ;;  %v1686_v62 = vshll.u32 %v1518_v34, 16  ;;  %v1194_v0 = vshrl.u32 %v1043_v29, 16  ;;  %v1048_v45 = vld [vmem:[#allocation2 + $0x68] sm:$0x1]  ;;  %v1754_v46 = vld [vmem:[#allocation2 + $0x18] sm:$0xe] }
  0x98   : > { %v3361_v61 = vcombine.low %v1182_v43, %v1192_v54  ;;  %v1197_v1 = vshll.u32 %v1043_v29, 16  ;;  %2910 = vmatmul.mubr.bf16.gmra.mrb[52].mxu1 %v3940_v44  ;;  %v1682_v4 = vrot.slane %v1680_v55, 4  ;;  %v1203_v5 = vshll.u32 %v1044_v47, 16  ;;  %v1766_v55 = vld [vmem:[#allocation2 + $0x48] sm:$0xe] }
  0x99   : > { %v1674_v3 = vrot.slane %v1673_v58, 4  ;;  %v1207_v6 = vshrl.u32 %v1044_v47, 16  ;;  %v1688_v7 = vrot.slane %v1686_v62, 5  ;;  %v1196_v8 = vrot.slane %v1194_v0, 4  ;;  %v1767_v0 = vld [vmem:[#allocation2 + $0x4c] sm:$0xf] }
  0x9a   : > { %2813 = vmatmul.mubr.bf16.gmra.mrb[52].mxu0 %v3361_v61  ;;  %v1199_v9 = vrot.slane %v1197_v1, 5  ;;  %v1213_v10 = vshll.u32 %v1045_v51, 16  ;;  %v1683_v13 = vor.u32 %v1682_v4, %v1678_v50  ;;  %v1205_v14 = vrot.slane %v1203_v5, 5  ;;  %v1756_v51 = vld [vmem:[#allocation2 + $0x20] sm:$0x1] }
  0x9b   : > { %2820 = vmatprep.mubr.bf16.mxu0 %v3378_v57  ;;  %v1679_v12 = vsel %vm4189_vm5, %v1674_v3, %v1678_v50  ;;  %v1209_v15 = vrot.slane %v1207_v6, 4  ;;  %v3371_v18 = vrot.slane %v1302_v59, 9  ;;  %v1380_v19 = vrot.slane %v1303_v60, 5  ;;  %v1755_v50 = vld [vmem:[#allocation2 + $0x1c] sm:$0xf] }
  0x9c   : > { %v1200_v16 = vor.u32 %v1199_v9, %v1196_v8  ;;  %v1215_v17 = vrot.slane %v1213_v10, 5  ;;  %v1684_v20 = vrot.slane %v1683_v13, 4  ;;  %v1383_v22 = vrot.slane %v1304_v2, 5  ;;  %v1768_v5 = vld [vmem:[#allocation2 + $0x50] sm:$0x1] }
  0x9d   : > { %v1210_v21 = vor.u32 %v1209_v15, %v1205_v14  ;;  %v1691_v23 = vshrl.u32 %v1519_v53, 16  ;;  %v1381_v25 = vsel %vm4177_vm4, %v3371_v18, %v1380_v19  ;;  %v1382_v26 = vrot.slane %v1380_v19, 4  ;;  %v1757_v9 = vld [vmem:[#allocation2 + $0x24] sm:$0xe]  ;;  %v1759_v15 = vld [vmem:[#allocation2 + $0x2c] sm:$0x1] }
  0x9e   : > { %v1201_v24 = vrot.slane %v1200_v16, 4  ;;  %v1694_v27 = vshll.u32 %v1519_v53, 16  ;;  %v1689_v30 = vsel %vm4189_vm5, %v1684_v20, %v1688_v7  ;;  %v1700_v35 = vshll.u32 %v1520_v11, 16  ;;  %v1769_v20 = vld [vmem:[#allocation2 + $0x54] sm:$0xe] }
  0x9f   : > { %v1211_v31 = vrot.slane %v1210_v21, 4  ;;  %v1693_v34 = vrot.slane %v1691_v23, 4  ;;  %v3394_v36 = vcombine.low %v1679_v12, %v1689_v30  ;;  %v1384_v38 = vsel %vm4177_vm4, %v1382_v26, %v1383_v22  ;;  %v1770_v26 = vld [vmem:[#allocation2 + $0x58] sm:$0xf] }
  0xa0   : > { %v1206_v37 = vsel %vm4189_vm5, %v1201_v24, %v1205_v14  ;;  %v1696_v39 = vrot.slane %v1694_v27, 5  ;;  %v3379_v41 = vcombine.low %v1381_v25, %v1384_v38  ;;  %v1702_v42 = vrot.slane %v1700_v35, 5  ;;  %v1758_v14 = vld [vmem:[#allocation2 + $0x28] sm:$0xf]  ;;  %v3944_v24 = vld [vmem:[#allocation2 + $0x6c] sm:$0xff]  }
  0xa1   : > { %v1216_v29 = vsel %vm4189_vm5, %v1211_v31, %v1215_v17  ;;  %v1704_v44 = vshrl.u32 %v1520_v11, 16  ;;  %2917 = vmatprep.mubr.bf16.mxu1 %v3394_v36  ;;  %v1710_v43 = vshll.u32 %v1521_v33, 16  ;;  %v1218_v49 = vshrl.u32 %v1046_v28, 16  ;;  %v1760_v33 = vld [vmem:[#allocation2 + $0x30] sm:$0xe] }
  0xa2   : > { %v3362_v47 = vcombine.low %v1206_v37, %v1216_v29  ;;  %v1697_v48 = vor.u32 %v1696_v39, %v1693_v34  ;;  %2918 = vmatmul.mubr.bf16.gmra.mrb[56].mxu1 %v3942_v32  ;;  %v1221_v54 = vshll.u32 %v1046_v28, 16  ;;  %v1227_v57 = vshll.u32 %v1047_v40, 16  ;;  %v1771_v32 = vld [vmem:[#allocation2 + $0x5c] sm:$0x1]  ;;  %v1761_v38 = vld [vmem:[#allocation2 + $0x34] sm:$0xf] }
  0xa3   : > { %v1706_v52 = vrot.slane %v1704_v44, 4  ;;  %v1231_v58 = vshrl.u32 %v1047_v40, 16  ;;  %v1712_v60 = vrot.slane %v1710_v43, 5  ;;  %v1220_v61 = vrot.slane %v1218_v49, 4  ;;  %v1762_v39 = vld [vmem:[#allocation2 + $0x38] sm:$0x1] }
  0xa4   : > { %2821 = vmatmul.mubr.bf16.gmra.mrb[56].mxu0 %v3362_v47  ;;  %v1698_v59 = vrot.slane %v1697_v48, 4  ;;  %v1237_v62 = vshll.u32 %v1048_v45, 16  ;;  %v1223_v2 = vrot.slane %v1221_v54, 5  ;;  %v1229_v3 = vrot.slane %v1227_v57, 5  ;;  %v1772_v44 = vld [vmem:[#allocation2 + $0x60] sm:$0xe] }
  0xa5   : > { %2828 = vmatprep.mubr.bf16.mxu0 %v3379_v41  ;;  %v1707_v1 = vor.u32 %v1706_v52, %v1702_v42  ;;  %v1233_v4 = vrot.slane %v1231_v58, 4  ;;  %v3396_v7 = vrot.slane %v1754_v46, 9  ;;  %v1804_v8 = vrot.slane %v1755_v50, 5  ;;  %v1773_v45 = vld [vmem:[#allocation2 + $0x64] sm:$0xf] }
  0xa6   : > { %v1703_v6 = vsel %vm4189_vm5, %v1698_v59, %v1702_v42  ;;  %v1239_v53 = vrot.slane %v1237_v62, 5  ;;  %v1224_v11 = vor.u32 %v1223_v2, %v1220_v61  ;;  %v1807_v13 = vrot.slane %v1756_v51, 5  ;;  %v1763_v54 = vld [vmem:[#allocation2 + $0x3c] sm:$0xe]  ;;  %v1765_v2 = vld [vmem:[#allocation2 + $0x44] sm:$0x1] }
  0xa7   : > { %v1708_v10 = vrot.slane %v1707_v1, 4  ;;  %v1234_v12 = vor.u32 %v1233_v4, %v1229_v3  ;;  %v1805_v16 = vsel %vm4177_vm4, %v3396_v7, %v1804_v8  ;;  %v1806_v17 = vrot.slane %v1804_v8, 4  ;;  %v1776_v7 = vld [vmem:[#allocation2 + $0x70] sm:$0xf]  ;;  %v1777_v8 = vld [vmem:[#allocation2 + $0x74] sm:$0x1] }
  0xa8   : > { %v3400_v18 = vrot.slane %v1766_v55, 9  ;;  %v1832_v19 = vrot.slane %v1767_v0, 5  ;;  %v1225_v22 = vrot.slane %v1224_v11, 4  ;;  %v1835_v25 = vrot.slane %v1768_v5, 5 }
  0xa9   : > { %v1713_v21 = vsel %vm4189_vm5, %v1708_v10, %v1712_v60  ;;  %v1235_v23 = vrot.slane %v1234_v12, 4  ;;  %v1808_v28 = vsel %vm4177_vm4, %v1806_v17, %v1807_v13  ;;  %v3397_v37 = vrot.slane %v1757_v9, 9  ;;  %v1764_v60 = vld [vmem:[#allocation2 + $0x40] sm:$0xf] }
  0xaa   : > { %v3395_v27 = vcombine.low %v1703_v6, %v1713_v21  ;;  %v1833_v30 = vsel %vm4177_vm4, %v3400_v18, %v1832_v19  ;;  %v1834_v31 = vrot.slane %v1832_v19, 4  ;;  %v1230_v34 = vsel %vm4189_vm5, %v1225_v22, %v1229_v3  ;;  %v1775_v3 = vld [vmem:[#allocation2 + $0x6c] sm:$0xe] }
  0xab   : > { %v1240_v35 = vsel %vm4189_vm5, %v1235_v23, %v1239_v53  ;;  %v3404_v36 = vcombine.low %v1805_v16, %v1808_v28  ;;  %v1811_v41 = vrot.slane %v1758_v14, 5  ;;  %v1814_v42 = vrot.slane %v1759_v15, 5 }
  0xac   : > { %2925 = vmatprep.mubr.bf16.mxu1 %v3395_v27  ;;  %v3363_v40 = vcombine.low %v1230_v34, %v1240_v35  ;;  %v1836_v29 = vsel %vm4177_vm4, %v1834_v31, %v1835_v25  ;;  %v3401_v47 = vrot.slane %v1769_v20, 9  ;;  %v1839_v48 = vrot.slane %v1770_v26, 5 }
  0xad   : > { %2926 = vmatmul.mubr.bf16.gmra.mrb[60].mxu1 %v3944_v24  ;;  %v3408_v46 = vcombine.low %v1833_v30, %v1836_v29  ;;  %v1842_v43 = vrot.slane %v1771_v32, 5  ;;  %v1812_v49 = vsel %vm4177_vm4, %v3397_v37, %v1811_v41  ;;  %v1813_v50 = vrot.slane %v1811_v41, 4 }
  0xae   : > { %2829 = vmatmul.mubr.bf16.gmra.mrb[60].mxu0 %v3363_v40  ;;  %v3398_v51 = vrot.slane %v1760_v33, 9  ;;  %v1818_v52 = vrot.slane %v1761_v38, 5  ;;  %v1840_v57 = vsel %vm4177_vm4, %v3401_v47, %v1839_v48  ;;  %v1841_v58 = vrot.slane %v1839_v48, 4 }
  0xaf   : > { %3774 = vmatprep.mubr.bf16.mxu0 %v3404_v36  ;;  %3782 = vmatprep.mubr.bf16.mxu1 %v3408_v46  ;;  %v1821_v55 = vrot.slane %v1762_v39, 5  ;;  %v3402_v59 = vrot.slane %v1772_v44, 9  ;;  %v1815_v61 = vsel %vm4177_vm4, %v1813_v50, %v1814_v42  ;;  %v1846_v1 = vrot.slane %v1773_v45, 5 }
  0xb0   : > { %v1819_v62 = vsel %vm4177_vm4, %v3398_v51, %v1818_v52  ;;  %v1820_v0 = vrot.slane %v1818_v52, 4  ;;  %v3405_v4 = vcombine.low %v1812_v49, %v1815_v61  ;;  %v1843_v5 = vsel %vm4177_vm4, %v1841_v58, %v1842_v43 }
  0xb1   : > { %v1849_v6 = vrot.slane %v1774_v63, 5  ;;  %v3399_v53 = vrot.slane %v1763_v54, 9  ;;  %v3409_v9 = vcombine.low %v1840_v57, %v1843_v5  ;;  %v1847_v11 = vsel %vm4177_vm4, %v3402_v59, %v1846_v1 }
  0xb2   : > { %v1822_v10 = vsel %vm4177_vm4, %v1820_v0, %v1821_v55  ;;  %v1848_v12 = vrot.slane %v1846_v1, 4  ;;  %v1825_v14 = vrot.slane %v1764_v60, 5  ;;  %v1828_v15 = vrot.slane %v1765_v2, 5 }
  0xb3   : > { %v3406_v13 = vcombine.low %v1819_v62, %v1822_v10  ;;  %v3403_v16 = vrot.slane %v1775_v3, 9  ;;  %v1853_v18 = vrot.slane %v1776_v7, 5  ;;  %v1856_v19 = vrot.slane %v1777_v8, 5 }
  0xb4   : > { %v1850_v17 = vsel %vm4177_vm4, %v1848_v12, %v1849_v6  ;;  %v1827_v21 = vrot.slane %v1825_v14, 4  ;;  %v1826_v24 = vsel %vm4177_vm4, %v3399_v53, %v1825_v14 }
  0xb5   : > { %3783 = vmatmul.mubr.bf16.vlgmr.msra.gmra.mrb[64].mxu1 %v3409_v9  ;;  %v3410_v20 = vcombine.low %v1847_v11, %v1850_v17  ;;  %v1854_v22 = vsel %vm4177_vm4, %v3403_v16, %v1853_v18  ;;  %v1855_v23 = vrot.slane %v1853_v18, 4 }
  0xb6   : > { %3775 = vmatmul.mubr.bf16.vlgmr.msra.gmra.mrb[64].mxu0 %v3405_v4  ;;  %v1829_v25 = vsel %vm4177_vm4, %v1827_v21, %v1828_v15 }
  0xb7   : > { %3778 = vmatprep.mubr.bf16.mxu0 %v3406_v13  ;;  %3786 = vmatprep.mubr.bf16.mxu1 %v3410_v20  ;;  %v1857_v26 = vsel %vm4177_vm4, %v1855_v23, %v1856_v19  ;;  %v3407_v28 = vcombine.low %v1826_v24, %v1829_v25 }
  0xb8   : > { %v3411_v27 = vcombine.low %v1854_v22, %v1857_v26 }
  0xbd   : > { %3787 = vmatmul.mubr.bf16.gmra.mrb[68].mxu1 %v3411_v27 }
  0xbe   : > { %3779 = vmatmul.mubr.bf16.gmra.mrb[68].mxu0 %v3407_v28 }
  0xff   : > { %v3566_v30 = vpop.f32.mrb[0].mxu1 }
 0x100   : > { %v3502_v31 = vpop.f32.mrb[0].mxu0  ;;  %v3567_v32 = vpop.f32.mrb[1].mxu1 }
 0x101   : > { %v3503_v33 = vpop.f32.mrb[1].mxu0  ;;  %v3568_v34 = vadd.f32 %v3567_v32, %v3566_v30  ;;  %v3569_v35 = vpop.f32.mrb[2].mxu1 }
 0x102   : > { %v3504_v36 = vadd.f32 %v3503_v33, %v3502_v31  ;;  %v3505_v37 = vpop.f32.mrb[2].mxu0  ;;  %v3570_v38 = vpop.f32.mrb[3].mxu1 }
 0x103   : > { %v3506_v39 = vpop.f32.mrb[3].mxu0  ;;  %v3571_v40 = vadd.f32 %v3570_v38, %v3569_v35 }
 0x104   : > { %v4596_v29 = vadd.f32 %v3568_v34, %v3504_v36  ;;  %v3507_v41 = vadd.f32 %v3506_v39, %v3505_v37 }
 0x106   : > { %v4598_v56 = vadd.f32 %v3571_v40, %v3507_v41 }
 0x107   : > { %v3572_v42 = vpop.f32.mrb[4].mxu1 }
 0x108   : > { %v3508_v44 = vpop.f32.mrb[4].mxu0  ;;  %v3573_v45 = vpop.f32.mrb[5].mxu1 }
 0x109   : > { %v3509_v46 = vpop.f32.mrb[5].mxu0  ;;  %v3574_v47 = vadd.f32 %v3573_v45, %v3572_v42  ;;  %v3575_v48 = vpop.f32.mrb[6].mxu1 }
 0x10a   : > { %v3510_v43 = vadd.f32 %v3509_v46, %v3508_v44  ;;  %v3511_v63 = vpop.f32.mrb[6].mxu0  ;;  %v3576_v49 = vpop.f32.mrb[7].mxu1 }
 0x10b   : > { %v3512_v50 = vpop.f32.mrb[7].mxu0  ;;  %v3577_v51 = vadd.f32 %v3576_v49, %v3575_v48 }
 0x10c   : > { %v4600_v52 = vadd.f32 %v3574_v47, %v3510_v43  ;;  %v3513_v54 = vadd.f32 %v3512_v50, %v3511_v63 }
 0x10e   : > { %v4602_v57 = vadd.f32 %v3577_v51, %v3513_v54 }
 0x10f   : > { %v3578_v58 = vpop.f32.mrb[8].mxu1 }
 0x110   : > { %v3514_v55 = vpop.f32.mrb[8].mxu0  ;;  %v3579_v59 = vpop.f32.mrb[9].mxu1 }
 0x111   : > { %v3515_v60 = vpop.f32.mrb[9].mxu0  ;;  %v3580_v61 = vadd.f32 %v3579_v59, %v3578_v58  ;;  %v3581_v62 = vpop.f32.mrb[10].mxu1 }
 0x112   : > { %v3516_v0 = vadd.f32 %v3515_v60, %v3514_v55  ;;  %v3517_v1 = vpop.f32.mrb[10].mxu0  ;;  %v3582_v2 = vpop.f32.mrb[11].mxu1 }
 0x113   : > { %v3518_v3 = vpop.f32.mrb[11].mxu0  ;;  %v3583_v4 = vadd.f32 %v3582_v2, %v3581_v62 }
 0x114   : > { %v4604_v5 = vadd.f32 %v3580_v61, %v3516_v0  ;;  %v3519_v6 = vadd.f32 %v3518_v3, %v3517_v1 }
 0x116   : > { %v4606_v53 = vadd.f32 %v3583_v4, %v3519_v6 }
 0x117   : > { %v3584_v7 = vpop.f32.mrb[12].mxu1 }
 0x118   : > { %v3585_v8 = vpop.f32.mrb[13].mxu1  ;;  %v3520_v9 = vpop.f32.mrb[12].mxu0 }
 0x119   : > { %v3586_v10 = vadd.f32 %v3585_v8, %v3584_v7  ;;  %v3587_v11 = vpop.f32.mrb[14].mxu1  ;;  %v3521_v12 = vpop.f32.mrb[13].mxu0 }
 0x11a   : > { %v3588_v13 = vpop.f32.mrb[15].mxu1  ;;  %v3522_v14 = vadd.f32 %v3521_v12, %v3520_v9  ;;  %v3523_v15 = vpop.f32.mrb[14].mxu0 }
 0x11b   : > { %v3589_v16 = vadd.f32 %v3588_v13, %v3587_v11  ;;  %v3524_v17 = vpop.f32.mrb[15].mxu0 }
 0x11c   : > { %v4608_v18 = vadd.f32 %v3586_v10, %v3522_v14  ;;  %v3525_v19 = vadd.f32 %v3524_v17, %v3523_v15 }
 0x11e   : > { %v4610_v20 = vadd.f32 %v3589_v16, %v3525_v19 }
 0x11f   : > { %v3590_v21 = vpop.f32.mrb[16].mxu1 }
 0x120   : > { %v3591_v22 = vpop.f32.mrb[17].mxu1  ;;  %v3526_v23 = vpop.f32.mrb[16].mxu0 }
 0x121   : > { %v3592_v24 = vadd.f32 %v3591_v22, %v3590_v21  ;;  %v3593_v25 = vpop.f32.mrb[18].mxu1  ;;  %v3527_v26 = vpop.f32.mrb[17].mxu0 }
 0x122   : > { %v3594_v27 = vpop.f32.mrb[19].mxu1  ;;  %v3528_v28 = vadd.f32 %v3527_v26, %v3526_v23  ;;  %v3529_v30 = vpop.f32.mrb[18].mxu0 }
 0x123   : > { %v3595_v31 = vadd.f32 %v3594_v27, %v3593_v25  ;;  %v3530_v32 = vpop.f32.mrb[19].mxu0 }
 0x124   : > { %v4612_v33 = vadd.f32 %v3592_v24, %v3528_v28  ;;  %v3531_v34 = vadd.f32 %v3530_v32, %v3529_v30 }
 0x126   : > { %v4614_v35 = vadd.f32 %v3595_v31, %v3531_v34 }
 0x127   : > { %v3596_v36 = vpop.f32.mrb[20].mxu1 }
 0x128   : > { %v3597_v37 = vpop.f32.mrb[21].mxu1  ;;  %v3532_v40 = vpop.f32.mrb[20].mxu0 }
 0x129   : > { %v3598_v38 = vadd.f32 %v3597_v37, %v3596_v36  ;;  %v3599_v39 = vpop.f32.mrb[22].mxu1  ;;  %v3533_v42 = vpop.f32.mrb[21].mxu0 }
 0x12a   : > { %v3600_v41 = vpop.f32.mrb[23].mxu1  ;;  %v3534_v45 = vadd.f32 %v3533_v42, %v3532_v40  ;;  %v3535_v46 = vpop.f32.mrb[22].mxu0 }
 0x12b   : > { %v3601_v44 = vadd.f32 %v3600_v41, %v3599_v39  ;;  %v3536_v47 = vpop.f32.mrb[23].mxu0 }
 0x12c   : > { %v4616_v48 = vadd.f32 %v3598_v38, %v3534_v45  ;;  %v3537_v43 = vadd.f32 %v3536_v47, %v3535_v46 }
 0x12e   : > { %v4618_v63 = vadd.f32 %v3601_v44, %v3537_v43 }
 0x12f   : > { %v3602_v49 = vpop.f32.mrb[24].mxu1 }
 0x130   : > { %v3603_v50 = vpop.f32.mrb[25].mxu1  ;;  %v3538_v58 = vpop.f32.mrb[24].mxu0 }
 0x131   : > { %v3604_v51 = vadd.f32 %v3603_v50, %v3602_v49  ;;  %v3605_v54 = vpop.f32.mrb[26].mxu1  ;;  %v3539_v59 = vpop.f32.mrb[25].mxu0 }
 0x132   : > { %v3606_v55 = vpop.f32.mrb[27].mxu1  ;;  %v3540_v61 = vadd.f32 %v3539_v59, %v3538_v58  ;;  %v3541_v62 = vpop.f32.mrb[26].mxu0 }
 0x133   : > { %v3607_v60 = vadd.f32 %v3606_v55, %v3605_v54  ;;  %v3542_v0 = vpop.f32.mrb[27].mxu0 }
 0x134   : > { %v4620_v1 = vadd.f32 %v3604_v51, %v3540_v61  ;;  %v3543_v2 = vadd.f32 %v3542_v0, %v3541_v62 }
 0x136   : > { %v4622_v3 = vadd.f32 %v3607_v60, %v3543_v2 }
 0x137   : > { %v3608_v4 = vpop.f32.mrb[28].mxu1 }
 0x138   : > { %v3609_v6 = vpop.f32.mrb[29].mxu1  ;;  %v3544_v7 = vpop.f32.mrb[28].mxu0 }
 0x139   : > { %v3610_v8 = vadd.f32 %v3609_v6, %v3608_v4  ;;  %v3611_v9 = vpop.f32.mrb[30].mxu1  ;;  %v3545_v10 = vpop.f32.mrb[29].mxu0 }
 0x13a   : > { %v3612_v11 = vpop.f32.mrb[31].mxu1  ;;  %v3546_v12 = vadd.f32 %v3545_v10, %v3544_v7  ;;  %v3547_v13 = vpop.f32.mrb[30].mxu0 }
 0x13b   : > { %v3613_v14 = vadd.f32 %v3612_v11, %v3611_v9  ;;  %v3548_v15 = vpop.f32.mrb[31].mxu0 }
 0x13c   : > { %v4624_v16 = vadd.f32 %v3610_v8, %v3546_v12  ;;  %v3549_v17 = vadd.f32 %v3548_v15, %v3547_v13 }
 0x13e   : > { %v4626_v19 = vadd.f32 %v3613_v14, %v3549_v17 }
 0x13f   : > { %v3694_v21 = vpop.f32.mrb[32].mxu1 }
 0x140   : > { %v3695_v22 = vpop.f32.mrb[33].mxu1  ;;  %v3630_v23 = vpop.f32.mrb[32].mxu0 }
 0x141   : > { %v3696_v24 = vadd.f32 %v3695_v22, %v3694_v21  ;;  %v3697_v25 = vpop.f32.mrb[34].mxu1  ;;  %v3631_v26 = vpop.f32.mrb[33].mxu0 }
 0x142   : > { %v3698_v27 = vpop.f32.mrb[35].mxu1  ;;  %v3632_v28 = vadd.f32 %v3631_v26, %v3630_v23  ;;  %v3633_v30 = vpop.f32.mrb[34].mxu0 }
 0x143   : > { %v3699_v31 = vadd.f32 %v3698_v27, %v3697_v25  ;;  %v3634_v32 = vpop.f32.mrb[35].mxu0 }
 0x144   : > { %v2775_v34 = vadd.f32 %v3632_v28, %v4596_v29  ;;  %v3635_v36 = vadd.f32 %v3634_v32, %v3633_v30 }
 0x146   : > { %v2778_v37 = vadd.f32 %v3635_v36, %v4598_v56  ;;  %v4630_v38 = vadd.f32 %v3696_v24, %v2775_v34 }
 0x147   : > { %v3700_v40 = vpop.f32.mrb[36].mxu1 }
 0x148   : > { %v4632_v39 = vadd.f32 %v3699_v31, %v2778_v37  ;;  %v3701_v41 = vpop.f32.mrb[37].mxu1  ;;  %v3636_v42 = vpop.f32.mrb[36].mxu0 }
 0x149   : > { %v3702_v44 = vadd.f32 %v3701_v41, %v3700_v40  ;;  %v3703_v45 = vpop.f32.mrb[38].mxu1  ;;  %v3637_v46 = vpop.f32.mrb[37].mxu0 }
 0x14a   : > { %v3704_v47 = vpop.f32.mrb[39].mxu1  ;;  %v3638_v43 = vadd.f32 %v3637_v46, %v3636_v42  ;;  %v3639_v49 = vpop.f32.mrb[38].mxu0 }
 0x14b   : > { %v3705_v50 = vadd.f32 %v3704_v47, %v3703_v45  ;;  %v3640_v51 = vpop.f32.mrb[39].mxu0 }
 0x14c   : > { %v2783_v29 = vadd.f32 %v3638_v43, %v4600_v52  ;;  %v3641_v54 = vadd.f32 %v3640_v51, %v3639_v49 }
 0x14e   : > { %v2786_v56 = vadd.f32 %v3641_v54, %v4602_v57  ;;  %v4636_v58 = vadd.f32 %v3702_v44, %v2783_v29 }
 0x14f   : > { %v3706_v59 = vpop.f32.mrb[40].mxu1 }
 0x150   : > { %v4638_v55 = vadd.f32 %v3705_v50, %v2786_v56  ;;  %v3642_v60 = vpop.f32.mrb[40].mxu0  ;;  %v3707_v61 = vpop.f32.mrb[41].mxu1 }
 0x151   : > { %v3643_v62 = vpop.f32.mrb[41].mxu0  ;;  %v3708_v0 = vadd.f32 %v3707_v61, %v3706_v59  ;;  %v3709_v2 = vpop.f32.mrb[42].mxu1 }
 0x152   : > { %v3644_v4 = vadd.f32 %v3643_v62, %v3642_v60  ;;  %v3645_v6 = vpop.f32.mrb[42].mxu0  ;;  %v3710_v7 = vpop.f32.mrb[43].mxu1 }
 0x153   : > { %v3646_v8 = vpop.f32.mrb[43].mxu0  ;;  %v3711_v9 = vadd.f32 %v3710_v7, %v3709_v2 }
 0x154   : > { %v2791_v52 = vadd.f32 %v3644_v4, %v4604_v5  ;;  %v3647_v10 = vadd.f32 %v3646_v8, %v3645_v6 }
 0x156   : > { %v2794_v57 = vadd.f32 %v3647_v10, %v4606_v53  ;;  %v4642_v11 = vadd.f32 %v3708_v0, %v2791_v52 }
 0x157   : > { %v3712_v13 = vpop.f32.mrb[44].mxu1 }
 0x158   : > { %v4644_v12 = vadd.f32 %v3711_v9, %v2794_v57  ;;  %v3648_v14 = vpop.f32.mrb[44].mxu0  ;;  %v3713_v15 = vpop.f32.mrb[45].mxu1 }
 0x159   : > { %v3649_v17 = vpop.f32.mrb[45].mxu0  ;;  %v3714_v21 = vadd.f32 %v3713_v15, %v3712_v13  ;;  %v3715_v22 = vpop.f32.mrb[46].mxu1 }
 0x15a   : > { %v3650_v23 = vadd.f32 %v3649_v17, %v3648_v14  ;;  %v3651_v24 = vpop.f32.mrb[46].mxu0  ;;  %v3716_v25 = vpop.f32.mrb[47].mxu1 }
 0x15b   : > { %v3652_v26 = vpop.f32.mrb[47].mxu0  ;;  %v3717_v27 = vadd.f32 %v3716_v25, %v3715_v22 }
 0x15c   : > { %v2799_v5 = vadd.f32 %v3650_v23, %v4608_v18  ;;  %v3653_v28 = vadd.f32 %v3652_v26, %v3651_v24 }
 0x15e   : > { %v2802_v53 = vadd.f32 %v3653_v28, %v4610_v20  ;;  %v4648_v30 = vadd.f32 %v3714_v21, %v2799_v5 }
 0x160   : > { %v4650_v31 = vadd.f32 %v3717_v27, %v2802_v53 }
 0x161   : > { %v3718_v34 = vpop.f32.mrb[48].mxu1 }
 0x162   : > { %v3719_v37 = vpop.f32.mrb[49].mxu1 }
 0x163   : > { %v3720_v42 = vadd.f32 %v3719_v37, %v3718_v34  ;;  %v3721_v44 = vpop.f32.mrb[50].mxu1 }
 0x164   : > { %v3654_v32 = vpop.f32.mrb[48].mxu0  ;;  %v3722_v46 = vpop.f32.mrb[51].mxu1 }
 0x165   : > { %v3655_v36 = vpop.f32.mrb[49].mxu0  ;;  %v3723_v43 = vadd.f32 %v3722_v46, %v3721_v44 }
 0x166   : > { %v3656_v40 = vadd.f32 %v3655_v36, %v3654_v32  ;;  %v3657_v41 = vpop.f32.mrb[50].mxu0 }
 0x167   : > { %v3658_v45 = vpop.f32.mrb[51].mxu0 }
 0x168   : > { %v2807_v47 = vadd.f32 %v3656_v40, %v4612_v33  ;;  %v3659_v18 = vadd.f32 %v3658_v45, %v3657_v41 }
 0x16a   : > { %v2810_v20 = vadd.f32 %v3659_v18, %v4614_v35  ;;  %v4654_v49 = vadd.f32 %v3720_v42, %v2807_v47 }
 0x16b   : > { %v3724_v51 = vpop.f32.mrb[52].mxu1 }
 0x16c   : > { %v4656_v50 = vadd.f32 %v3723_v43, %v2810_v20  ;;  %v3725_v54 = vpop.f32.mrb[53].mxu1 }
 0x16d   : > { %v3660_v29 = vpop.f32.mrb[52].mxu0  ;;  %v3726_v59 = vadd.f32 %v3725_v54, %v3724_v51  ;;  %v3727_v60 = vpop.f32.mrb[54].mxu1 }
 0x16e   : > { %v3661_v56 = vpop.f32.mrb[53].mxu0  ;;  %v3728_v0 = vpop.f32.mrb[55].mxu1 }
 0x16f   : > { %v3662_v61 = vadd.f32 %v3661_v56, %v3660_v29  ;;  %v3663_v62 = vpop.f32.mrb[54].mxu0  ;;  %v3729_v33 = vadd.f32 %v3728_v0, %v3727_v60 }
 0x170   : > { %v3664_v2 = vpop.f32.mrb[55].mxu0 }
 0x171   : > { %v2815_v4 = vadd.f32 %v3662_v61, %v4616_v48  ;;  %v3665_v6 = vadd.f32 %v3664_v2, %v3663_v62 }
 0x173   : > { %v2818_v35 = vadd.f32 %v3665_v6, %v4618_v63  ;;  %v2912_v7 = vadd.f32 %v3726_v59, %v2815_v4 }
 0x175   : > { %v2915_v8 = vadd.f32 %v3729_v33, %v2818_v35  ;;  %v3730_v9 = vpop.f32.mrb[56].mxu1 }
 0x176   : > { %v3731_v10 = vpop.f32.mrb[57].mxu1 }
 0x177   : > { %v3666_v52 = vpop.f32.mrb[56].mxu0  ;;  %v3732_v13 = vadd.f32 %v3731_v10, %v3730_v9  ;;  %v3733_v14 = vpop.f32.mrb[58].mxu1 }
 0x178   : > { %v3667_v57 = vpop.f32.mrb[57].mxu0  ;;  %v3734_v21 = vpop.f32.mrb[59].mxu1 }
 0x179   : > { %v3668_v15 = vadd.f32 %v3667_v57, %v3666_v52  ;;  %v3669_v17 = vpop.f32.mrb[58].mxu0  ;;  %v3735_v23 = vadd.f32 %v3734_v21, %v3733_v14 }
 0x17a   : > { %v3670_v22 = vpop.f32.mrb[59].mxu0 }
 0x17b   : > { %v2823_v48 = vadd.f32 %v3668_v15, %v4620_v1  ;;  %v3671_v24 = vadd.f32 %v3670_v22, %v3669_v17 }
 0x17d   : > { %v2826_v63 = vadd.f32 %v3671_v24, %v4622_v3  ;;  %v2920_v25 = vadd.f32 %v3732_v13, %v2823_v48 }
 0x17f   : > { %v4665_v26 = vadd.f32 %v3735_v23, %v2826_v63 }
 0x180   : > { %v3736_v27 = vpop.f32.mrb[60].mxu1 }
 0x181   : > { %v3672_v5 = vpop.f32.mrb[60].mxu0  ;;  %v3737_v28 = vpop.f32.mrb[61].mxu1 }
 0x182   : > { %v3673_v53 = vpop.f32.mrb[61].mxu0  ;;  %v3738_v32 = vadd.f32 %v3737_v28, %v3736_v27  ;;  %v3739_v34 = vpop.f32.mrb[62].mxu1 }
 0x183   : > { %v3674_v36 = vadd.f32 %v3673_v53, %v3672_v5  ;;  %v3675_v37 = vpop.f32.mrb[62].mxu0  ;;  %v3740_v40 = vpop.f32.mrb[63].mxu1 }
 0x184   : > { %v3676_v1 = vpop.f32.mrb[63].mxu0  ;;  %v3741_v41 = vadd.f32 %v3740_v40, %v3739_v34 }
 0x185   : > { %v2831_v42 = vadd.f32 %v3674_v36, %v4624_v16  ;;  %v3677_v3 = vadd.f32 %v3676_v1, %v3675_v37 }
 0x187   : > { %v2834_v44 = vadd.f32 %v3677_v3, %v4626_v19  ;;  %v2928_v45 = vadd.f32 %v3738_v32, %v2831_v42 }
 0x188   : > { %v3784_v46 = vpop.f32.mrb[64].mxu1 }
 0x189   : > { %v3776_v47 = vpop.f32.mrb[64].mxu0  ;;  %v4674_v18 = vadd.f32 %v3784_v46, %v2912_v7  ;;  %v3000_v43 = vpop.f32.mrb[65].mxu1  ;;  %v2931_v16 = vadd.f32 %v3741_v41, %v2834_v44 }
 0x18a   : > { %v2977_v20 = vadd.f32 %v3776_v47, %v4636_v58  ;;  %v2968_v19 = vpop.f32.mrb[65].mxu0  ;;  %v4678_v51 = vadd.f32 %v3000_v43, %v4654_v49  ;;  %v3785_v29 = vpop.f32.mrb[66].mxu1 }
 0x18b   : > { %3041 = vst [vmem:[%s4672_s14 + $0x50] sm:$0xff] %v4674_v18  ;;  %v2969_v54 = vadd.f32 %v2968_v19, %v4630_v38  ;;  %v3777_v56 = vpop.f32.mrb[66].mxu0  ;;  %v4683_v59 = vadd.f32 %v3785_v29, %v2915_v8  ;;  %v3003_v60 = vpop.f32.mrb[67].mxu1  ;;  %v3078_v42 = vmul.f32 %v4674_v18, %v4674_v18 }
 0x18c   : > { %3033 = vst [vmem:[%s4672_s14 + $0x10] sm:$0xff] %v2977_v20  ;;  %3039 = vst [vmem:[%s4672_s14 + $0x40] sm:$0xff] %v4678_v51  ;;  %v2980_v58 = vadd.f32 %v3777_v56, %v4638_v55  ;;  %v2971_v61 = vpop.f32.mrb[67].mxu0  ;;  %v3004_v49 = vadd.f32 %v3003_v60, %v4656_v50  ;;  %v3070_v4 = vmul.f32 %v2977_v20, %v2977_v20 }
 0x18d   : > { %3031 = vst [vmem:[%s4672_s14] sm:$0xff] %v2969_v54  ;;  %3042 = vst [vmem:[%s4672_s14 + $0x58] sm:$0xff] %v4683_v59  ;;  %v2972_v62 = vadd.f32 %v2971_v61, %v4632_v39  ;;  %v3068_v38 = vmul.f32 %v2969_v54, %v2969_v54  ;;  %v3076_v37 = vmul.f32 %v4678_v51, %v4678_v51 }
 0x18e   : > { %3034 = vst [vmem:[%s4672_s14 + $0x18] sm:$0xff] %v2980_v58  ;;  %3040 = vst [vmem:[%s4672_s14 + $0x48] sm:$0xff] %v3004_v49  ;;  %v3071_v10 = vmul.f32 %v2980_v58, %v2980_v58  ;;  %v3077_v1 = vmul.f32 %v3004_v49, %v3004_v49 }
 0x18f   : > { %3032 = vst [vmem:[%s4672_s14 + $0x8] sm:$0xff] %v2972_v62  ;;  %v3047_v0 = vadd.f32 %v2972_v62, %v2969_v54  ;;  %v3069_v2 = vmul.f32 %v2972_v62, %v2972_v62 }
 0x190   : > { %v3788_v33 = vpop.f32.mrb[68].mxu1 }
 0x191   : > { %v3048_v6 = vadd.f32 %v3047_v0, %v2977_v20  ;;  %v3084_v55 = vadd.f32 %v3069_v2, %v3068_v38  ;;  %v3780_v35 = vpop.f32.mrb[68].mxu0  ;;  %v3025_v50 = vadd.f32 %v3788_v33, %v2928_v45  ;;  %v3016_v7 = vpop.f32.mrb[69].mxu1  ;;  %v3079_v45 = vmul.f32 %v4683_v59, %v4683_v59 }
 0x192   : > { %v2993_v8 = vadd.f32 %v3780_v35, %v4648_v30  ;;  %v2984_v39 = vpop.f32.mrb[69].mxu0  ;;  %v3017_v9 = vadd.f32 %v3016_v7, %v2920_v25  ;;  %v3789_v52 = vpop.f32.mrb[70].mxu1 }
 0x193   : > { %v3085_v57 = vadd.f32 %v3084_v55, %v3070_v4  ;;  %3045 = vst [vmem:[%s4672_s14 + $0x70] sm:$0xff] %v3025_v50  ;;  %v2985_v13 = vadd.f32 %v2984_v39, %v4642_v11  ;;  %v3049_v14 = vadd.f32 %v3048_v6, %v2980_v58  ;;  %v3781_v15 = vpop.f32.mrb[70].mxu0  ;;  %v3019_v17 = vpop.f32.mrb[71].mxu1  ;;  %v3028_v21 = vadd.f32 %v3789_v52, %v2931_v16 }
 0x194   : > { %3037 = vst [vmem:[%s4672_s14 + $0x30] sm:$0xff] %v2993_v8  ;;  %3043 = vst [vmem:[%s4672_s14 + $0x60] sm:$0xff] %v3017_v9  ;;  %v2996_v30 = vadd.f32 %v3781_v15, %v4650_v31  ;;  %v2987_v22 = vpop.f32.mrb[71].mxu0  ;;  %v3020_v11 = vadd.f32 %v3019_v17, %v4665_v26  ;;  %v3074_v28 = vmul.f32 %v2993_v8, %v2993_v8 }
 0x195   : > { %3035 = vst [vmem:[%s4672_s14 + $0x20] sm:$0xff] %v2985_v13  ;;  %v3050_v23 = vadd.f32 %v3049_v14, %v2985_v13  ;;  %v3072_v48 = vmul.f32 %v2985_v13, %v2985_v13  ;;  %v3086_v24 = vadd.f32 %v3085_v57, %v3071_v10  ;;  %v2988_v63 = vadd.f32 %v2987_v22, %v4644_v12 }
 0x196   : > { %3038 = vst [vmem:[%s4672_s14 + $0x38] sm:$0xff] %v2996_v30  ;;  %3046 = vst [vmem:[%s4672_s14 + $0x78] sm:$0xff] %v3028_v21  ;;  %v3075_v32 = vmul.f32 %v2996_v30, %v2996_v30  ;;  %v3080_v43 = vmul.f32 %v3017_v9, %v3017_v9  ;;  %v3082_v54 = vmul.f32 %v3025_v50, %v3025_v50 }
 0x197   : > { %v3087_v25 = vadd.f32 %v3086_v24, %v3072_v48  ;;  %3036 = vst [vmem:[%s4672_s14 + $0x28] sm:$0xff] %v2988_v63  ;;  %v3051_v27 = vadd.f32 %v3050_v23, %v2988_v63  ;;  %v3073_v5 = vmul.f32 %v2988_v63, %v2988_v63  ;;  %3044 = vst [vmem:[%s4672_s14 + $0x68] sm:$0xff] %v3020_v11 }
 0x199   : > { %v3052_v53 = vadd.f32 %v3051_v27, %v2993_v8  ;;  %v3088_v31 = vadd.f32 %v3087_v25, %v3073_v5 }
 0x19b   : > { %v3053_v34 = vadd.f32 %v3052_v53, %v2996_v30  ;;  %v3089_v36 = vadd.f32 %v3088_v31, %v3074_v28 }
 0x19d   : > { %v3054_v12 = vadd.f32 %v3053_v34, %v4678_v51  ;;  %v3090_v40 = vadd.f32 %v3089_v36, %v3075_v32  ;;  %v3081_v51 = vmul.f32 %v3020_v11, %v3020_v11 }
 0x19f   : > { %v3091_v26 = vadd.f32 %v3090_v40, %v3076_v37  ;;  %v3055_v41 = vadd.f32 %v3054_v12, %v3004_v49 }
 0x1a1   : > { %v3056_v3 = vadd.f32 %v3055_v41, %v4674_v18  ;;  %v3092_v44 = vadd.f32 %v3091_v26, %v3077_v1  ;;  %v3083_v18 = vmul.f32 %v3028_v21, %v3028_v21 }
 0x1a3   : > { %v3057_v46 = vadd.f32 %v3056_v3, %v4683_v59  ;;  %v3093_v47 = vadd.f32 %v3092_v44, %v3078_v42 }
 0x1a5   : > { %v3058_v16 = vadd.f32 %v3057_v46, %v3017_v9  ;;  %v3094_v20 = vadd.f32 %v3093_v47, %v3079_v45 }
 0x1a7   : > { %v3059_v19 = vadd.f32 %v3058_v16, %v3020_v11  ;;  %v3095_v29 = vadd.f32 %v3094_v20, %v3080_v43 }
 0x1a9   : > { %v3060_v56 = vadd.f32 %v3059_v19, %v3025_v50  ;;  %v3096_v60 = vadd.f32 %v3095_v29, %v3081_v51 }
 0x1ab   : > { %v3061_v58 = vadd.f32 %v3060_v56, %v3028_v21  ;;  %v3097_v61 = vadd.f32 %v3096_v60, %v3082_v54 }
 0x1ad   : > { %v3062_v49 = vrot.slane %v3061_v58, 4  ;;  %v3098_v62 = vadd.f32 %v3097_v61, %v3083_v18 }
 0x1af   : > { %v3063_v59 = vadd.f32 %v3062_v49, %v3061_v58  ;;  %v3099_v38 = vrot.slane %v3098_v62, 4 }
 0x1b1   : > { %v3064_v0 = vrot.slane %v3063_v59, 2  ;;  %v3100_v2 = vadd.f32 %v3099_v38, %v3098_v62 }
 0x1b3   : > { %v3065_v33 = vadd.f32 %v3064_v0, %v3063_v59  ;;  %v3101_v4 = vrot.slane %v3100_v2, 2 }
 0x1b5   : > { %v3066_v6 = vrot.slane %v3065_v33, 1  ;;  %v3102_v55 = vadd.f32 %v3101_v4, %v3100_v2 }
 0x1b7   : > { %v3067_v35 = vadd.f32 %v3066_v6, %v3065_v33  ;;  %v3103_v50 = vrot.slane %v3102_v55, 1 }
 0x1b9   : > { %v3104_v7 = vadd.f32 %v3103_v50, %v3102_v55  ;;  %3105 = vst [vmem:[%s410_s29] sm:$0x1] %v3067_v35 }
 0x1bb   : > { %3106 = vst [vmem:[%s410_s29 + $0x1] sm:$0x1] %v3104_v7 }
 0x1bc PF: > { %s16_s22 = sadd.s32 1, %s3984_s22   ;;  %s4752_s18 = smov %s3976_s20 }
 0x1bd   : > { %p13_p11 = scmp.ge.s32.totalorder %s16_s22, 6   ;;  %s4753_s19 = smov %s3980_s21 }
 0x1be   : > { %s4754_s20 = smov %s4757_s23  ;;  %s4755_s21 = smov %s4761_s24 }
 0x1bf   :  { %15 = sbr.rel (!%p13_p11) target bundleno = 3 (0x3), region = 88 }

// kernel: double_conv.4
= control target key start
LH: loop header
LB: loop body
LE: loop exit
PB: predicated region body
PF: predicated region fallthrough
CT: control target
= control target key end

     0   :  { %s4611_s24 = smov 0   ;;  %s4613_s25 = smov 0   ;;  %s5495_s0 = inlined_call_operand.vmem [shape: f32[2,16,16,128], index: 0, kind: input, shape index: {}, may-alias: {0,1,2}]   ;;  %s5496_s1 = inlined_call_operand.vmem [shape: f32[2,16,16,128], index: 1, kind: input, shape index: {}, may-alias: {0,1,2}]   ;;  %s5497_s2 = inlined_call_operand.vmem [shape: f32[2,16,16,128], index: 2, kind: input, shape index: {}, may-alias: {0,1,2}]   ;;  %s5498_s3 = inlined_call_operand.vmem [shape: bf16[1152,128], index: 3, kind: input, shape index: {}]   ;;  %s5499_s4 = inlined_call_operand.vmem [shape: f32[1,128], index: 4, kind: input, shape index: {}]   ;;  %s5500_s5 = inlined_call_operand.vmem [shape: f32[1,128], index: 5, kind: input, shape index: {}]   ;;  %s5501_s6 = inlined_call_operand.vmem [shape: f32[2,16,16,128], index: 6, kind: output, shape index: {0}]   ;;  %s5502_s7 = inlined_call_operand.vmem [shape: f32[2,2,2,128], index: 7, kind: output, shape index: {1}]  }
   0x1   :  { %s4615_s26 = smov 0   ;;  %s4617_s27 = smov 0  }
   0x2   :  { %s4619_s28 = smov 0  }
   0x3 LB: > { %s27_s29 = sadd.s32 1, %s4559_s26  ;;  %s30_s30 = sadd.s32 1, %s4563_s27  ;;  %s4567_s28 = sphi %s4619_s28, %s18_s28   ;;  %s4563_s27 = sphi %s4617_s27, %s5519_s27   ;;  %s4559_s26 = sphi %s4615_s26, %s5518_s26   ;;  %s4555_s25 = sphi %s4613_s25, %s5517_s25   ;;  %s4551_s24 = sphi %s4611_s24, %s5516_s24  }
   0x4   : > { %p28_p0 = scmp.ge.s32.totalorder %s27_s29, 2  ;;  %p3825_p1 = scmp.ge.s32.totalorder %s4567_s28, 1 }
   0x5   : > { %p328_p2 = scmp.lt.s32.totalorder %s4567_s28, 5 }
   0x6   : > { %s5521_s29 = smov (%p28_p0, %s27_s29), 0  ;;  %s5523_s30 = smov (!%p28_p0, %s30_s30), %s4563_s27 }
   0x7   : > { %p329_p3 = pnand %p3825_p1, %p328_p2  ;;  %p32_p4 = scmp.ge.s32.totalorder %s5523_s30, 2 }
   0x8   : > { %vm471_vm0 = vcmask (!%p329_p3), 1040384   ;;  %vm472_vm1 = vsmask.f32 (!%p329_p3), 256  ;;  %v477_v0 = vld [vmem:[#allocation2 + $0xc] sm:$0x1] (!%p329_p3)  ;;  %s4646_s8 = sshll.u32 (!%p329_p3), %s4551_s24, 3 }
   0x9   : > { %s5525_s30 = smov (%p32_p4, %s5523_s30), 0  ;;  %332 = sbr.rel (%p329_p3) target bundleno = 559 (0x22f), region = 44 }
   0xa   : > { %vm4650_vm2 = vmand (!%p329_p3), %vm471_vm0, %vm472_vm1  ;;  %v480_v2 = vld [vmem:[#allocation2 + $0x18] sm:$0x1] (!%p329_p3)  ;;  %v483_v3 = vld [vmem:[#allocation2 + $0x24] sm:$0x1] (!%p329_p3)  ;;  %vm504_vm3 = vsmask.f32 (!%p329_p3), 7938 }
   0xb   : > { %v478_v4 = vsel (!%p329_p3), %vm4650_vm2, 0, %v477_v0  ;;  %v481_v5 = vsel (!%p329_p3), %vm4650_vm2, 0, %v480_v2  ;;  %v484_v6 = vsel (!%p329_p3), %vm4650_vm2, 0, %v483_v3  ;;  %v486_v7 = vld [vmem:[#allocation2 + $0x30] sm:$0x1] (!%p329_p3)  ;;  %p405_p5 = scmp.lt.s32.totalorder (!%p329_p3), %s4555_s25, 1  ;;  %vm4665_vm4 = vmand (!%p329_p3), %vm471_vm0, %vm504_vm3 }
   0xc   : > { %479 = vst [vmem:[#allocation2 + $0xc] sm:$0x1] (!%p329_p3), %v478_v4  ;;  %482 = vst [vmem:[#allocation2 + $0x18] sm:$0x1] (!%p329_p3), %v481_v5  ;;  %v487_v8 = vsel (!%p329_p3), %vm4650_vm2, 0, %v486_v7  ;;  %p407_p6 = scmp.lt.s32.totalorder (!%p329_p3), %s4646_s8, 15 }
   0xd   : > { %485 = vst [vmem:[#allocation2 + $0x24] sm:$0x1] (!%p329_p3), %v484_v6  ;;  %v489_v9 = vld [vmem:[#allocation2 + $0x3c] sm:$0x1] (!%p329_p3)  ;;  %v492_v10 = vld [vmem:[#allocation2 + $0x48] sm:$0x1] (!%p329_p3) }
   0xe   : > { %488 = vst [vmem:[#allocation2 + $0x30] sm:$0x1] (!%p329_p3), %v487_v8  ;;  %v490_v12 = vsel (!%p329_p3), %vm4650_vm2, 0, %v489_v9  ;;  %v493_v13 = vsel (!%p329_p3), %vm4650_vm2, 0, %v492_v10  ;;  %v495_v14 = vld [vmem:[#allocation2 + $0x54] sm:$0x1] (!%p329_p3) }
   0xf   : > { %v498_v15 = vld [vmem:[#allocation2 + $0x60] sm:$0x1] (!%p329_p3)  ;;  %491 = vst [vmem:[#allocation2 + $0x3c] sm:$0x1] (!%p329_p3), %v490_v12  ;;  %494 = vst [vmem:[#allocation2 + $0x48] sm:$0x1] (!%p329_p3), %v493_v13 }
  0x10   : > { %v496_v16 = vsel %vm4650_vm2, 0, %v495_v14  ;;  %v499_v17 = vsel %vm4650_vm2, 0, %v498_v15  ;;  %v509_v18 = vld [vmem:[#allocation2 + $0x14] sm:$0x1]  ;;  %v512_v19 = vld [vmem:[#allocation2 + $0x20] sm:$0x1] }
  0x11   : > { %497 = vst [vmem:[#allocation2 + $0x54] sm:$0x1] %v496_v16  ;;  %500 = vst [vmem:[#allocation2 + $0x60] sm:$0x1] %v499_v17  ;;  %v510_v20 = vsel %vm4665_vm4, 0, %v509_v18  ;;  %v513_v21 = vsel %vm4665_vm4, 0, %v512_v19 }
  0x12   : > { %v515_v22 = vld [vmem:[#allocation2 + $0x2c] sm:$0x1]  ;;  %v518_v23 = vld [vmem:[#allocation2 + $0x38] sm:$0x1]  ;;  %511 = vst [vmem:[#allocation2 + $0x14] sm:$0x1] %v510_v20 }
  0x13   : > { %514 = vst [vmem:[#allocation2 + $0x20] sm:$0x1] %v513_v21  ;;  %v516_v24 = vsel %vm4665_vm4, 0, %v515_v22  ;;  %v519_v25 = vsel %vm4665_vm4, 0, %v518_v23  ;;  %v521_v26 = vld [vmem:[#allocation2 + $0x44] sm:$0x1] }
  0x14   : > { %v524_v27 = vld [vmem:[#allocation2 + $0x50] sm:$0x1]  ;;  %517 = vst [vmem:[#allocation2 + $0x2c] sm:$0x1] %v516_v24  ;;  %520 = vst [vmem:[#allocation2 + $0x38] sm:$0x1] %v519_v25 }
  0x15   : > { %v522_v28 = vsel %vm4665_vm4, 0, %v521_v26  ;;  %v525_v29 = vsel %vm4665_vm4, 0, %v524_v27  ;;  %v527_v30 = vld [vmem:[#allocation2 + $0x5c] sm:$0x1]  ;;  %v530_v31 = vld [vmem:[#allocation2 + $0x68] sm:$0x1] }
  0x16   : > { %523 = vst [vmem:[#allocation2 + $0x44] sm:$0x1] %v522_v28  ;;  %526 = vst [vmem:[#allocation2 + $0x50] sm:$0x1] %v525_v29  ;;  %v528_v32 = vsel %vm4665_vm4, 0, %v527_v30  ;;  %v531_v33 = vsel %vm4665_vm4, 0, %v530_v31 }
  0x17   : > { %v474_v34 = vld [vmem:[#allocation2] sm:$0x1]  ;;  %v501_v35 = vld [vmem:[#allocation2 + $0x6c] sm:$0x1]  ;;  %529 = vst [vmem:[#allocation2 + $0x5c] sm:$0x1] %v528_v32 }
  0x18   : > { %532 = vst [vmem:[#allocation2 + $0x68] sm:$0x1] %v531_v33  ;;  %v475_v36 = vsel %vm4650_vm2, 0, %v474_v34  ;;  %v502_v37 = vsel %vm4650_vm2, 0, %v501_v35  ;;  %v506_v38 = vld [vmem:[#allocation2 + $0x8] sm:$0x1] }
  0x19   : > { %v533_v39 = vld [vmem:[#allocation2 + $0x74] sm:$0x1]  ;;  %476 = vst [vmem:[#allocation2] sm:$0x1] %v475_v36  ;;  %503 = vst [vmem:[#allocation2 + $0x6c] sm:$0x1] %v502_v37 }
  0x1a   : > { %v507_v40 = vsel %vm4665_vm4, 0, %v506_v38  ;;  %v534_v41 = vsel %vm4665_vm4, 0, %v533_v39  ;;  %s5527_s25 = smov (!%p405_p5, %s4555_s25), 1  ;;  %s3831_s11 = sadd.s32 4294967295, %s4646_s8  ;;  %v4722_v42 = vld [vmem:[%s5499_s4] ss:$0 sm:$0xff] }
  0x1b   : > { %508 = vst [vmem:[#allocation2 + $0x8] sm:$0x1] %v507_v40  ;;  %535 = vst [vmem:[#allocation2 + $0x74] sm:$0x1] %v534_v41  ;;  %s408_s9 = scalar_select %p407_p6, %s4646_s8, 15  ;;  %vm823_vm5 = vcmask 1043456  }
  0x1c   : > { %s4711_s10 = sshll.u32 %s5527_s25, 5  ;;  %p417_p7 = scmp.gt.s32.totalorder %s3831_s11, 0  ;;  %v4738_v43 = vld [vmem:[%s5500_s5] ss:$0 sm:$0xff]  ;;  %vm660_vm6 = vsmask.f32 4368  ;;  %vm4799_vm7 = vmand %vm823_vm5, %vm504_vm3 }
  0x1d   : > { %s3827_s12 = sshll.u32 %s408_s9, 1  ;;  %p3832_p8 = scmp.lt.s32.totalorder %s3831_s11, 15  ;;  %v825_v23 = vld [vmem:[#allocation2 + $0xc] sm:$0xf]  ;;  %v832_v31 = vld [vmem:[#allocation2 + $0x18] sm:$0xf]  ;;  %vm4805_vm8 = vmor %vm472_vm1, %vm660_vm6 }
  0x1e   : > { %s4715_s13 = sadd.s32 %s4711_s10, %s3827_s12  ;;  %s433_s15 = sadd.s32 8, %s4646_s8  ;;  %v829_v35 = vld [vmem:[#allocation2 + $0x14] sm:$0x1] }
  0x1f   : > { %s3829_s14 = sshll.u32 %s4715_s13, 3  ;;  %p4731_p9 = scmp.lt.s32.totalorder %s433_s15, 15 }
  0x20   : > { %s4729_s20 = scalar_lea.vmem %s5495_s0, %s3829_s14  ;;  %s4768_s16 = scalar_lea.vmem %s5501_s6, %s3829_s14 }
  0x21   : > { %s418_s8 = scalar_select %p417_p7, %s3831_s11, 0  ;;  %v536_v44 = vld [vmem:[%s4729_s20] sm:$0xff]  ;;  %v537_v45 = vld [vmem:[%s4729_s20 + $0x8] sm:$0xff]  ;;  %v538_v46 = vld [vmem:[%s4729_s20 + $0x10] sm:$0xff] }
  0x22   : > { %s5529_s15 = smov (!%p4731_p9, %s433_s15), 15  ;;  %v558_v47 = vmul.f32 %v4722_v42, %v536_v44  ;;  %v559_v48 = vmul.f32 %v4722_v42, %v537_v45  ;;  %v560_v49 = vmul.f32 %v4722_v42, %v538_v46  ;;  %v539_v50 = vld [vmem:[%s4729_s20 + $0x18] sm:$0xff]  ;;  %v540_v51 = vld [vmem:[%s4729_s20 + $0x20] sm:$0xff]  ;;  %v541_v52 = vld [vmem:[%s4729_s20 + $0x28] sm:$0xff]  ;;  %p462_p10 = scmp.lt.s32.totalorder %s4551_s24, 1 }
  0x23   : > { %s5531_s8 = smov (!%p3832_p8, %s418_s8), 15  ;;  %v561_v53 = vmul.f32 %v4722_v42, %v539_v50  ;;  %v562_v54 = vmul.f32 %v4722_v42, %v540_v51  ;;  %v563_v55 = vmul.f32 %v4722_v42, %v541_v52  ;;  %v542_v56 = vld [vmem:[%s4729_s20 + $0x30] sm:$0xff]  ;;  %v543_v57 = vld [vmem:[%s4729_s20 + $0x38] sm:$0xff]  ;;  %s5533_s15 = smov (!%p4731_p9, %s5529_s15), 15  ;;  %v836_v46 = vld [vmem:[#allocation2 + $0x20] sm:$0x1] }
  0x24   : > { %v580_v58 = vadd.f32 %v4738_v43, %v558_v47  ;;  %v581_v59 = vadd.f32 %v4738_v43, %v559_v48  ;;  %v582_v60 = vadd.f32 %v4738_v43, %v560_v49  ;;  %v564_v61 = vmul.f32 %v4722_v42, %v542_v56  ;;  %s3837_s9 = sshll.u32 %s5531_s8, 1  ;;  %s3844_s18 = sshll.u32 %s5533_s15, 1  ;;  %v545_v56 = vld [vmem:[%s4729_s20 + $0x48] sm:$0xff] }
  0x25   : > { %v583_v62 = vadd.f32 %v4738_v43, %v561_v53  ;;  %v584_v63 = vadd.f32 %v4738_v43, %v562_v54  ;;  %v585_v0 = vadd.f32 %v4738_v43, %v563_v55  ;;  %v565_v2 = vmul.f32 %v4722_v42, %v543_v57  ;;  %s425_s17 = sadd.s32 %s3837_s9, %s4711_s10  ;;  %s442_s14 = sadd.s32 %s3844_s18, %s4711_s10  ;;  %v544_v55 = vld [vmem:[%s4729_s20 + $0x40] sm:$0xff] }
  0x26   : > { %v596_v3 = vmax.f32 %v580_v58, 0.0  ;;  %v597_v4 = vmax.f32 %v581_v59, 0.0  ;;  %v598_v5 = vmax.f32 %v582_v60, 0.0  ;;  %v4776_v6 = vadd.f32 %v4738_v43, %v564_v61  ;;  %s3839_s13 = sshll.u32 %s425_s17, 3  ;;  %s3846_s22 = sshll.u32 %s442_s14, 3 }
  0x27   : > { %v599_v7 = vmax.f32 %v583_v62, 0.0  ;;  %v600_v8 = vmax.f32 %v584_v63, 0.0  ;;  %v601_v9 = vmax.f32 %v585_v0, 0.0  ;;  %v4780_v10 = vadd.f32 %v4738_v43, %v565_v2  ;;  %s4785_s15 = scalar_lea.vmem %s5496_s1, %s3839_s13  ;;  %s4791_s8 = scalar_lea.vmem %s5497_s2, %s3846_s22  ;;  %v839_v60 = vld [vmem:[#allocation2 + $0x24] sm:$0xf] }
  0x28   : > { %v4051_v11 = vpack.c.bf16 %v596_v3, %v596_v3  ;;  %v4052_v12 = vpack.c.bf16 %v597_v4, %v597_v4  ;;  %v4053_v13 = vpack.c.bf16 %v598_v5, %v598_v5  ;;  %v602_v14 = vmax.f32 %v4776_v6, 0.0  ;;  %s3851_s9 = sshll.u32 %s5527_s25, 1  ;;  %v843_v0 = vld [vmem:[#allocation2 + $0x2c] sm:$0x1]  ;;  %p3871_p11 = scmp.le.s32.totalorder %s4551_s24, 0 }
  0x29   : > { %v4054_v15 = vpack.c.bf16 %v599_v7, %v599_v7  ;;  %v4055_v16 = vpack.c.bf16 %v600_v8, %v600_v8  ;;  %v4056_v17 = vpack.c.bf16 %v601_v9, %v601_v9  ;;  %v603_v18 = vmax.f32 %v4780_v10, 0.0  ;;  %s463_s11 = scalar_select %p462_p10, %s4551_s24, 1  ;;  %v546_v8 = vld [vmem:[%s4729_s20 + $0x50] sm:$0xff] }
  0x2a   : > { %v663_v19 = vshrl.u32 %v4051_v11, 16  ;;  %v666_v20 = vshll.u32 %v4051_v11, 16  ;;  %v671_v21 = vshrl.u32 %v4052_v12, 16  ;;  %v674_v22 = vshll.u32 %v4052_v12, 16 }
  0x2b   : > { %v680_v24 = vshrl.u32 %v4053_v13, 16  ;;  %v683_v25 = vshll.u32 %v4053_v13, 16  ;;  %v688_v26 = vshrl.u32 %v4054_v15, 16  ;;  %v691_v27 = vshll.u32 %v4054_v15, 16  ;;  %s465_s25 = sadd.s32 %s3851_s9, %s463_s11  ;;  %v547_v13 = vld [vmem:[%s4729_s20 + $0x58] sm:$0xff]  ;;  %v548_v15 = vld [vmem:[%s4729_s20 + $0x60] sm:$0xff] }
  0x2c   : > { %v665_v28 = vrot.slane %v663_v19, 7  ;;  %v673_v30 = vrot.slane %v671_v21, 7  ;;  %v697_v32 = vshrl.u32 %v4055_v16, 16  ;;  %v700_v33 = vshll.u32 %v4055_v16, 16  ;;  %s3852_s12 = sshll.u32 %s465_s25, 1  ;;  %v549_v16 = vld [vmem:[%s4729_s20 + $0x68] sm:$0xff] }
  0x2d   : > { %v682_v36 = vrot.slane %v680_v24, 7  ;;  %v690_v37 = vrot.slane %v688_v26, 7  ;;  %v705_v38 = vshrl.u32 %v4056_v17, 16  ;;  %v708_v39 = vshll.u32 %v4056_v17, 16  ;;  %s4812_s13 = scalar_lea.vmem %s5502_s7, %s3852_s12  ;;  %v846_v24 = vld [vmem:[#allocation2 + $0x30] sm:$0xf] }
  0x2e   : > { %v668_v40 = vor.u32 %v666_v20, %v665_v28  ;;  %v669_v41 = vrot.slane %v665_v28, 4  ;;  %v676_v44 = vor.u32 %v674_v22, %v673_v30  ;;  %v678_v45 = vrot.slane %v673_v30, 4 }
  0x2f   : > { %v685_v47 = vor.u32 %v683_v25, %v682_v36  ;;  %v686_v48 = vrot.slane %v682_v36, 4  ;;  %v693_v49 = vor.u32 %v691_v27, %v690_v37  ;;  %v695_v50 = vrot.slane %v690_v37, 4  ;;  %v850_v25 = vld [vmem:[#allocation2 + $0x38] sm:$0x1] }
  0x30   : > { %v826_v51 = vsel %vm4799_vm7, %v668_v40, %v825_v23  ;;  %v677_v52 = vsel %vm4805_vm8, %v669_v41, %v676_v44  ;;  %v830_v53 = vsel %vm4650_vm2, %v678_v45, %v829_v35  ;;  %v699_v54 = vrot.slane %v697_v32, 7  ;;  %v550_v40 = vld [vmem:[%s4729_s20 + $0x70] sm:$0xff] }
  0x31   : > { %827 = vst [vmem:[#allocation2 + $0xc] sm:$0xf] %v826_v51  ;;  %828 = vst [vmem:[#allocation2 + $0x10] sm:$0xf] %v677_v52  ;;  %v833_v57 = vsel %vm4799_vm7, %v685_v47, %v832_v31  ;;  %v694_v58 = vsel %vm4805_vm8, %v686_v48, %v693_v49  ;;  %v837_v59 = vsel %vm4650_vm2, %v695_v50, %v836_v46  ;;  %v707_v61 = vrot.slane %v705_v38, 7 }
  0x32   : > { %831 = vst [vmem:[#allocation2 + $0x14] sm:$0x1] %v830_v53  ;;  %834 = vst [vmem:[#allocation2 + $0x18] sm:$0xf] %v833_v57  ;;  %v702_v62 = vor.u32 %v700_v33, %v699_v54  ;;  %v703_v63 = vrot.slane %v699_v54, 4  ;;  %v4057_v2 = vpack.c.bf16 %v602_v14, %v602_v14  ;;  %v4058_v3 = vpack.c.bf16 %v603_v18, %v603_v18 }
  0x33   : > { %835 = vst [vmem:[#allocation2 + $0x1c] sm:$0xf] %v694_v58  ;;  %838 = vst [vmem:[#allocation2 + $0x20] sm:$0x1] %v837_v59  ;;  %v710_v4 = vor.u32 %v708_v39, %v707_v61  ;;  %v712_v5 = vrot.slane %v707_v61, 4  ;;  %v566_v6 = vmul.f32 %v4722_v42, %v544_v55  ;;  %v567_v7 = vmul.f32 %v4722_v42, %v545_v56 }
  0x34   : > { %v840_v9 = vsel %vm4799_vm7, %v702_v62, %v839_v60  ;;  %v714_v10 = vshrl.u32 %v4057_v2, 16  ;;  %v717_v11 = vshll.u32 %v4057_v2, 16  ;;  %v722_v12 = vshrl.u32 %v4058_v3, 16  ;;  %v853_v59 = vld [vmem:[#allocation2 + $0x3c] sm:$0xf] }
  0x35   : > { %841 = vst [vmem:[#allocation2 + $0x24] sm:$0xf] %v840_v9  ;;  %v711_v14 = vsel %vm4805_vm8, %v703_v63, %v710_v4  ;;  %v844_v17 = vsel %vm4650_vm2, %v712_v5, %v843_v0  ;;  %v725_v18 = vshll.u32 %v4058_v3, 16  ;;  %v588_v19 = vadd.f32 %v4738_v43, %v566_v6  ;;  %v857_v5 = vld [vmem:[#allocation2 + $0x44] sm:$0x1] }
  0x36   : > { %842 = vst [vmem:[#allocation2 + $0x28] sm:$0xf] %v711_v14  ;;  %845 = vst [vmem:[#allocation2 + $0x2c] sm:$0x1] %v844_v17  ;;  %v716_v20 = vrot.slane %v714_v10, 7  ;;  %v724_v21 = vrot.slane %v722_v12, 7  ;;  %v589_v22 = vadd.f32 %v4738_v43, %v567_v7  ;;  %v568_v23 = vmul.f32 %v4722_v42, %v546_v8 }
  0x37   : > { %v604_v26 = vmax.f32 %v588_v19, 0.0  ;;  %v569_v27 = vmul.f32 %v4722_v42, %v547_v13  ;;  %v570_v28 = vmul.f32 %v4722_v42, %v548_v15  ;;  %v571_v30 = vmul.f32 %v4722_v42, %v549_v16  ;;  %v860_v15 = vld [vmem:[#allocation2 + $0x48] sm:$0xf] }
  0x38   : > { %v719_v31 = vor.u32 %v717_v11, %v716_v20  ;;  %v720_v32 = vrot.slane %v716_v20, 4  ;;  %v727_v33 = vor.u32 %v725_v18, %v724_v21  ;;  %v729_v35 = vrot.slane %v724_v21, 4 }
  0x39   : > { %v4059_v36 = vpack.c.bf16 %v604_v26, %v604_v26  ;;  %v605_v37 = vmax.f32 %v589_v22, 0.0  ;;  %v590_v38 = vadd.f32 %v4738_v43, %v568_v23  ;;  %v591_v39 = vadd.f32 %v4738_v43, %v569_v27  ;;  %v864_v23 = vld [vmem:[#allocation2 + $0x50] sm:$0x1] }
  0x3a   : > { %v847_v41 = vsel %vm4799_vm7, %v719_v31, %v846_v24  ;;  %v728_v44 = vsel %vm4805_vm8, %v720_v32, %v727_v33  ;;  %v851_v45 = vsel %vm4650_vm2, %v729_v35, %v850_v25  ;;  %v592_v46 = vadd.f32 %v4738_v43, %v570_v28  ;;  %v867_v24 = vld [vmem:[#allocation2 + $0x54] sm:$0xf]  ;;  %v551_v25 = vld [vmem:[%s4729_s20 + $0x78] sm:$0xff] }
  0x3b   : > { %848 = vst [vmem:[#allocation2 + $0x30] sm:$0xf] %v847_v41  ;;  %849 = vst [vmem:[#allocation2 + $0x34] sm:$0xf] %v728_v44  ;;  %v731_v47 = vshrl.u32 %v4059_v36, 16  ;;  %v734_v48 = vshll.u32 %v4059_v36, 16  ;;  %v4060_v49 = vpack.c.bf16 %v605_v37, %v605_v37  ;;  %v593_v53 = vadd.f32 %v4738_v43, %v571_v30 }
  0x3c   : > { %852 = vst [vmem:[#allocation2 + $0x38] sm:$0x1] %v851_v45  ;;  %v606_v50 = vmax.f32 %v590_v38, 0.0  ;;  %v607_v51 = vmax.f32 %v591_v39, 0.0  ;;  %v608_v52 = vmax.f32 %v592_v46, 0.0  ;;  %v572_v54 = vmul.f32 %v4722_v42, %v550_v40 }
  0x3d   : > { %v733_v55 = vrot.slane %v731_v47, 7  ;;  %v739_v56 = vshrl.u32 %v4060_v49, 16  ;;  %v742_v57 = vshll.u32 %v4060_v49, 16  ;;  %v609_v62 = vmax.f32 %v593_v53, 0.0  ;;  %v871_v44 = vld [vmem:[#allocation2 + $0x5c] sm:$0x1] }
  0x3e   : > { %v4061_v58 = vpack.c.bf16 %v606_v50, %v606_v50  ;;  %v4062_v60 = vpack.c.bf16 %v607_v51, %v607_v51  ;;  %v4063_v61 = vpack.c.bf16 %v608_v52, %v608_v52  ;;  %v594_v63 = vadd.f32 %v4738_v43, %v572_v54  ;;  %v874_v54 = vld [vmem:[#allocation2 + $0x60] sm:$0xf] }
  0x3f   : > { %v736_v0 = vor.u32 %v734_v48, %v733_v55  ;;  %v737_v2 = vrot.slane %v733_v55, 4  ;;  %v741_v3 = vrot.slane %v739_v56, 7  ;;  %v4064_v18 = vpack.c.bf16 %v609_v62, %v609_v62  ;;  %v878_v62 = vld [vmem:[#allocation2 + $0x68] sm:$0x1] }
  0x40   : > { %v748_v4 = vshrl.u32 %v4061_v58, 16  ;;  %v751_v6 = vshll.u32 %v4061_v58, 16  ;;  %v756_v7 = vshrl.u32 %v4062_v60, 16  ;;  %v759_v8 = vshll.u32 %v4062_v60, 16 }
  0x41   : > { %v765_v9 = vshrl.u32 %v4063_v61, 16  ;;  %v854_v10 = vsel %vm4799_vm7, %v736_v0, %v853_v59  ;;  %v744_v11 = vor.u32 %v742_v57, %v741_v3  ;;  %v746_v12 = vrot.slane %v741_v3, 4 }
  0x42   : > { %v750_v13 = vrot.slane %v748_v4, 7  ;;  %855 = vst [vmem:[#allocation2 + $0x3c] sm:$0xf] %v854_v10  ;;  %v758_v16 = vrot.slane %v756_v7, 7  ;;  %v768_v17 = vshll.u32 %v4063_v61, 16  ;;  %v773_v31 = vshrl.u32 %v4064_v18, 16 }
  0x43   : > { %v767_v14 = vrot.slane %v765_v9, 7  ;;  %v745_v19 = vsel %vm4805_vm8, %v737_v2, %v744_v11  ;;  %v858_v20 = vsel %vm4650_vm2, %v746_v12, %v857_v5  ;;  %v776_v32 = vshll.u32 %v4064_v18, 16  ;;  %v885_v4 = vld [vmem:[%s4785_s15] sm:$0xff] (!%p3871_p11)  ;;  %v886_v5 = vld [vmem:[%s4785_s15 + $0x8] sm:$0xff] (!%p3871_p11) }
  0x44   : > { %v753_v21 = vor.u32 %v751_v6, %v750_v13  ;;  %v754_v22 = vrot.slane %v750_v13, 4  ;;  %856 = vst [vmem:[#allocation2 + $0x40] sm:$0xf] %v745_v19  ;;  %859 = vst [vmem:[#allocation2 + $0x44] sm:$0x1] %v858_v20  ;;  %v761_v26 = vor.u32 %v759_v8, %v758_v16  ;;  %v763_v27 = vrot.slane %v758_v16, 4 }
  0x45   : > { %v770_v28 = vor.u32 %v768_v17, %v767_v14  ;;  %v610_v33 = vmax.f32 %v594_v63, 0.0  ;;  %v573_v38 = vmul.f32 %v4722_v42, %v551_v25  ;;  %v771_v39 = vrot.slane %v767_v14, 4  ;;  %v919_v20 = vld [vmem:[#allocation2] sm:$0xf] (!%p3871_p11) }
  0x46   : > { %v861_v30 = vsel %vm4799_vm7, %v753_v21, %v860_v15  ;;  %v762_v35 = vsel %vm4805_vm8, %v754_v22, %v761_v26  ;;  %v865_v36 = vsel %vm4650_vm2, %v763_v27, %v864_v23  ;;  %v775_v40 = vrot.slane %v773_v31, 7  ;;  %v923_v21 = vld [vmem:[#allocation2 + $0x8] sm:$0x1] (!%p3871_p11) }
  0x47   : > { %862 = vst [vmem:[#allocation2 + $0x48] sm:$0xf] %v861_v30  ;;  %v868_v37 = vsel %vm4799_vm7, %v770_v28, %v867_v24  ;;  %863 = vst [vmem:[#allocation2 + $0x4c] sm:$0xf] %v762_v35  ;;  %v4065_v41 = vpack.c.bf16 %v610_v33, %v610_v33  ;;  %v595_v45 = vadd.f32 %v4738_v43, %v573_v38 }
  0x48   : > { %866 = vst [vmem:[#allocation2 + $0x50] sm:$0x1] %v865_v36  ;;  %869 = vst [vmem:[#allocation2 + $0x54] sm:$0xf] %v868_v37  ;;  %v778_v46 = vor.u32 %v776_v32, %v775_v40  ;;  %v780_v47 = vrot.slane %v775_v40, 4  ;;  %v887_v6 = vmul.f32 (!%p3871_p11), %v4722_v42, %v885_v4  ;;  %v888_v7 = vmul.f32 (!%p3871_p11), %v4722_v42, %v886_v5 }
  0x49   : > { %v782_v48 = vshrl.u32 %v4065_v41, 16  ;;  %v785_v49 = vshll.u32 %v4065_v41, 16  ;;  %v611_v50 = vmax.f32 %v595_v45, 0.0 }
  0x4a   : > { %v779_v51 = vsel %vm4805_vm8, %v771_v39, %v778_v46  ;;  %v872_v52 = vsel %vm4650_vm2, %v780_v47, %v871_v44  ;;  %v889_v8 = vadd.f32 (!%p3871_p11), %v4738_v43, %v887_v6  ;;  %v890_v9 = vadd.f32 (!%p3871_p11), %v4738_v43, %v888_v7 }
  0x4b   : > { %v784_v53 = vrot.slane %v782_v48, 7  ;;  %870 = vst [vmem:[#allocation2 + $0x58] sm:$0xf] %v779_v51  ;;  %873 = vst [vmem:[#allocation2 + $0x5c] sm:$0x1] %v872_v52  ;;  %v4066_v55 = vpack.c.bf16 %v611_v50, %v611_v50 }
  0x4c   : > { %v891_v10 = vmax.f32 (!%p3871_p11), %v889_v8, 0.0  ;;  %v892_v11 = vmax.f32 (!%p3871_p11), %v890_v9, 0.0 }
  0x4d   : > { %v787_v56 = vor.u32 %v785_v49, %v784_v53  ;;  %v790_v57 = vshrl.u32 %v4066_v55, 16  ;;  %v793_v58 = vshll.u32 %v4066_v55, 16  ;;  %v788_v60 = vrot.slane %v784_v53, 4 }
  0x4e   : > { %884 = sbr.rel (%p3871_p11) target bundleno = 89 (0x59), region = 48  ;;  %v4067_v12 = vpack.c.bf16 (!%p3871_p11), %v891_v10, %v891_v10  ;;  %v4068_v13 = vpack.c.bf16 (!%p3871_p11), %v892_v11, %v892_v11 }
  0x4f   : > { %v875_v59 = vsel %vm4799_vm7, %v787_v56, %v874_v54  ;;  %v792_v61 = vrot.slane %v790_v57, 7 }
  0x50   : > { %876 = vst [vmem:[#allocation2 + $0x60] sm:$0xf] %v875_v59  ;;  %v900_v15 = vshrl.u32 (!%p3871_p11), %v4067_v12, 16  ;;  %v903_v16 = vshll.u32 (!%p3871_p11), %v4067_v12, 16  ;;  %v908_v14 = vshrl.u32 (!%p3871_p11), %v4068_v13, 16  ;;  %v911_v17 = vshll.u32 (!%p3871_p11), %v4068_v13, 16 }
  0x51   : > { %v795_v63 = vor.u32 %v793_v58, %v792_v61  ;;  %v797_v0 = vrot.slane %v792_v61, 4 }
  0x52   : > { %v902_v18 = vrot.slane (!%p3871_p11), %v900_v15, 7  ;;  %v910_v19 = vrot.slane (!%p3871_p11), %v908_v14, 7 }
  0x53   : > { %v796_v2 = vsel %vm4805_vm8, %v788_v60, %v795_v63  ;;  %v879_v3 = vsel %vm4650_vm2, %v797_v0, %v878_v62 }
  0x54   : > { %877 = vst [vmem:[#allocation2 + $0x64] sm:$0xf] %v796_v2  ;;  %880 = vst [vmem:[#allocation2 + $0x68] sm:$0x1] %v879_v3  ;;  %v905_v22 = vor.u32 (!%p3871_p11), %v903_v16, %v902_v18  ;;  %v906_v23 = vrot.slane (!%p3871_p11), %v902_v18, 4  ;;  %v913_v24 = vor.u32 (!%p3871_p11), %v911_v17, %v910_v19  ;;  %v915_v25 = vrot.slane (!%p3871_p11), %v910_v19, 4 }
  0x56   : > { %v920_v26 = vsel %vm4799_vm7, %v905_v22, %v919_v20  ;;  %v914_v27 = vsel %vm4805_vm8, %v906_v23, %v913_v24  ;;  %v924_v28 = vsel %vm4650_vm2, %v915_v25, %v923_v21 }
  0x57   : > { %921 = vst [vmem:[#allocation2] sm:$0xf] %v920_v26  ;;  %922 = vst [vmem:[#allocation2 + $0x4] sm:$0xf] %v914_v27 }
  0x58   : > { %925 = vst [vmem:[#allocation2 + $0x8] sm:$0x1] %v924_v28 }
  0x59 PF: > { %p3874_p12 = scmp.ne.s32.totalorder %s4551_s24, 0 }
  0x5a   : > { %v4569_v33 = vmov (!%p3874_p12), 0  }
  0x5b   : > { %929 = sbr.rel (%p3874_p12) target bundleno = 98 (0x62), region = 52  ;;  %933 = vst [vmem:[#allocation2 + $0x4] sm:$0xf] (!%p3874_p12), %v4569_v33 }
  0x5e   : > { %v930_v30 = vld [vmem:[#allocation2] sm:$0xf] (!%p3874_p12) }
  0x5f   : > { %v934_v31 = vld [vmem:[#allocation2 + $0x8] sm:$0x1] (!%p3874_p12)  ;;  %v931_v32 = vsel (!%p3874_p12), %vm4799_vm7, 0, %v930_v30 }
  0x60   : > { %v935_v35 = vsel (!%p3874_p12), %vm4650_vm2, 0, %v934_v31  ;;  %932 = vst [vmem:[#allocation2] sm:$0xf] (!%p3874_p12), %v931_v32 }
  0x61   : > { %936 = vst [vmem:[#allocation2 + $0x8] sm:$0x1] (!%p3874_p12), %v935_v35 }
  0x62 PF: > { %p3875_p13 = scmp.ge.s32.totalorder %s4551_s24, 1 }
  0x63   : > { %v941_v36 = vld [vmem:[%s4791_s8] sm:$0xff] (!%p3875_p13)  ;;  %v942_v37 = vld [vmem:[%s4791_s8 + $0x8] sm:$0xff] (!%p3875_p13)  ;;  %v980_v55 = vld [vmem:[#allocation2 + $0x74] sm:$0x1] (!%p3875_p13) }
  0x64   : > { %940 = sbr.rel (%p3875_p13) target bundleno = 117 (0x75), region = 56  ;;  %v943_v38 = vmul.f32 (!%p3875_p13), %v4722_v42, %v941_v36  ;;  %v944_v39 = vmul.f32 (!%p3875_p13), %v4722_v42, %v942_v37  ;;  %v976_v54 = vld [vmem:[#allocation2 + $0x6c] sm:$0xf] (!%p3875_p13) }
  0x66   : > { %v945_v40 = vadd.f32 (!%p3875_p13), %v4738_v43, %v943_v38  ;;  %v946_v41 = vadd.f32 (!%p3875_p13), %v4738_v43, %v944_v39 }
  0x68   : > { %v947_v44 = vmax.f32 (!%p3875_p13), %v945_v40, 0.0  ;;  %v948_v45 = vmax.f32 (!%p3875_p13), %v946_v41, 0.0 }
  0x6a   : > { %v4069_v46 = vpack.c.bf16 (!%p3875_p13), %v947_v44, %v947_v44  ;;  %v4070_v47 = vpack.c.bf16 (!%p3875_p13), %v948_v45, %v948_v45 }
  0x6c   : > { %v956_v48 = vshrl.u32 %v4069_v46, 16  ;;  %v959_v49 = vshll.u32 %v4069_v46, 16  ;;  %v964_v50 = vshrl.u32 %v4070_v47, 16  ;;  %v967_v51 = vshll.u32 %v4070_v47, 16 }
  0x6e   : > { %v958_v52 = vrot.slane %v956_v48, 7  ;;  %v966_v53 = vrot.slane %v964_v50, 7 }
  0x70   : > { %v961_v56 = vor.u32 %v959_v49, %v958_v52  ;;  %v962_v57 = vrot.slane %v958_v52, 4  ;;  %v969_v58 = vor.u32 %v967_v51, %v966_v53  ;;  %v971_v42 = vrot.slane %v966_v53, 4 }
  0x72   : > { %v977_v59 = vsel %vm4799_vm7, %v961_v56, %v976_v54  ;;  %v970_v43 = vsel %vm4805_vm8, %v962_v57, %v969_v58  ;;  %v981_v60 = vsel %vm4650_vm2, %v971_v42, %v980_v55 }
  0x73   : > { %978 = vst [vmem:[#allocation2 + $0x6c] sm:$0xf] %v977_v59  ;;  %979 = vst [vmem:[#allocation2 + $0x70] sm:$0xf] %v970_v43 }
  0x74   : > { %982 = vst [vmem:[#allocation2 + $0x74] sm:$0x1] %v981_v60 }
  0x75 PF: > { %p3878_p0 = scmp.ne.s32.totalorder %s4551_s24, 1 }
  0x76   : > { %v4570_v0 = vmov (!%p3878_p0), 0  }
  0x77   : > { %986 = sbr.rel (%p3878_p0) target bundleno = 126 (0x7e), region = 60  ;;  %991 = vst [vmem:[#allocation2 + $0x70] sm:$0xf] (!%p3878_p0), %v4570_v0 }
  0x7a   : > { %v988_v61 = vld [vmem:[#allocation2 + $0x6c] sm:$0xf] (!%p3878_p0) }
  0x7b   : > { %v992_v62 = vld [vmem:[#allocation2 + $0x74] sm:$0x1] (!%p3878_p0)  ;;  %v989_v63 = vsel (!%p3878_p0), %vm4799_vm7, 0, %v988_v61 }
  0x7c   : > { %v993_v34 = vsel (!%p3878_p0), %vm4650_vm2, 0, %v992_v62  ;;  %990 = vst [vmem:[#allocation2 + $0x6c] sm:$0xf] (!%p3878_p0), %v989_v63 }
  0x7d   : > { %994 = vst [vmem:[#allocation2 + $0x74] sm:$0x1] (!%p3878_p0), %v993_v34 }
  0x7e PF: > { %v4433_v2 = vld [vmem:[%s5498_s3 + $0x40] sm:$0xff]   ;;  %v4437_v4 = vld [vmem:[%s5498_s3 + $0x48] sm:$0xff]   ;;  %v4441_v8 = vld [vmem:[%s5498_s3 + $0x50] sm:$0xff]   ;;  %vm1374_vm9 = vcmask 1042432   ;;  %vm1375_vm10 = vcmask 1046532  }
  0x7f   : > { %v4434_v3 = vld [vmem:[%s5498_s3 + $0xc0] sm:$0xff]   ;;  %4071 = vmatprep.subr.bf16.mxu0 %v4433_v2  ;;  %v4438_v5 = vld [vmem:[%s5498_s3 + $0xc8] sm:$0xff]   ;;  %v4442_v9 = vld [vmem:[%s5498_s3 + $0xd0] sm:$0xff]   ;;  %vm1091_vm11 = vsmask.f32 3328 }
  0x80   : > { %v4435_v29 = vld [vmem:[%s5498_s3] sm:$0xff]   ;;  %4135 = vmatprep.subr.bf16.mxu1 %v4434_v3  ;;  %v4439_v6 = vld [vmem:[%s5498_s3 + $0x8] sm:$0xff]   ;;  %v4443_v10 = vld [vmem:[%s5498_s3 + $0x10] sm:$0xff]   ;;  %vm1092_vm12 = vsmask.f32 7440 }
  0x81   : > { %v4436_v1 = vld [vmem:[%s5498_s3 + $0x80] sm:$0xff]   ;;  %4072 = vmatpush3.bf16.msra.mxu0 %v4435_v29  ;;  %v4440_v7 = vld [vmem:[%s5498_s3 + $0x88] sm:$0xff]   ;;  %v4444_v11 = vld [vmem:[%s5498_s3 + $0x90] sm:$0xff]  }
  0x82   : > { %4136 = vmatpush3.bf16.msra.mxu1 %v4436_v1  ;;  %4073 = vmatprep.subr.bf16.mxu0 %v4437_v4  ;;  %v4445_v12 = vld [vmem:[%s5498_s3 + $0x58] sm:$0xff]   ;;  %v4449_v14 = vld [vmem:[%s5498_s3 + $0x60] sm:$0xff]   ;;  %v4453_v20 = vld [vmem:[%s5498_s3 + $0x68] sm:$0xff]  }
  0x83   : > { %4137 = vmatprep.subr.bf16.mxu1 %v4438_v5  ;;  %v4446_v13 = vld [vmem:[%s5498_s3 + $0xd8] sm:$0xff]   ;;  %v4450_v17 = vld [vmem:[%s5498_s3 + $0xe0] sm:$0xff]   ;;  %v4454_v21 = vld [vmem:[%s5498_s3 + $0xe8] sm:$0xff]  }
  0x84   : > { %v4447_v15 = vld [vmem:[%s5498_s3 + $0x18] sm:$0xff]   ;;  %v4451_v18 = vld [vmem:[%s5498_s3 + $0x20] sm:$0xff]   ;;  %v4455_v22 = vld [vmem:[%s5498_s3 + $0x28] sm:$0xff]  }
  0x85   : > { %4074 = vmatpush3.bf16.msra.mxu0 %v4439_v6  ;;  %v4448_v16 = vld [vmem:[%s5498_s3 + $0x98] sm:$0xff]   ;;  %v4452_v19 = vld [vmem:[%s5498_s3 + $0xa0] sm:$0xff]   ;;  %v4456_v23 = vld [vmem:[%s5498_s3 + $0xa8] sm:$0xff]  }
  0x86   : > { %4138 = vmatpush3.bf16.msra.mxu1 %v4440_v7  ;;  %4075 = vmatprep.subr.bf16.mxu0 %v4441_v8  ;;  %v4457_v24 = vld [vmem:[%s5498_s3 + $0x70] sm:$0xff]   ;;  %v4461_v28 = vld [vmem:[%s5498_s3 + $0x78] sm:$0xff]   ;;  %v1067_v33 = vld [vmem:[#allocation2] sm:$0xf] }
  0x87   : > { %4139 = vmatprep.subr.bf16.mxu1 %v4442_v9  ;;  %v4458_v25 = vld [vmem:[%s5498_s3 + $0xf0] sm:$0xff]   ;;  %v4462_v30 = vld [vmem:[%s5498_s3 + $0xf8] sm:$0xff]   ;;  %v1068_v35 = vld [vmem:[#allocation2 + $0x4] sm:$0xf]  ;;  %v1095_v37 = vshrl.u32 %v1067_v33, 16  ;;  %v1098_v38 = vshll.u32 %v1067_v33, 16 }
  0x88   : > { %v4459_v26 = vld [vmem:[%s5498_s3 + $0x30] sm:$0xff]   ;;  %v4463_v31 = vld [vmem:[%s5498_s3 + $0x38] sm:$0xff]   ;;  %v1069_v36 = vld [vmem:[#allocation2 + $0x8] sm:$0x1]  ;;  %v1104_v39 = vshll.u32 %v1068_v35, 16  ;;  %v1108_v40 = vshrl.u32 %v1068_v35, 16 }
  0x89   : > { %4076 = vmatpush3.bf16.msra.mxu0 %v4443_v10  ;;  %v4460_v27 = vld [vmem:[%s5498_s3 + $0xb0] sm:$0xff]   ;;  %v4464_v32 = vld [vmem:[%s5498_s3 + $0xb8] sm:$0xff]   ;;  %v1114_v41 = vshll.u32 %v1069_v36, 16  ;;  %v1097_v45 = vrot.slane %v1095_v37, 4  ;;  %v1100_v46 = vrot.slane %v1098_v38, 5  ;;  %vm5020_vm13 = vmor %vm1374_vm9, %vm1375_vm10 }
  0x8a   : > { %4140 = vmatpush3.bf16.msra.mxu1 %v4444_v11  ;;  %4077 = vmatprep.subr.bf16.mxu0 %v4445_v12  ;;  %v4465_v44 = vld [vmem:[#allocation2 + $0xc] sm:$0xff]   ;;  %v1106_v47 = vrot.slane %v1104_v39, 5  ;;  %v1110_v48 = vrot.slane %v1108_v40, 4  ;;  %v1326_v52 = vld [vmem:[#allocation2] sm:$0xe]  ;;  %vm5026_vm14 = vmor %vm1091_vm11, %vm1092_vm12 }
  0x8b   : > { %4141 = vmatprep.subr.bf16.mxu1 %v4446_v13  ;;  %v1116_v49 = vrot.slane %v1114_v41, 5  ;;  %3195 = vmatprep.mubr.bf16.mxu1 %v4465_v44  ;;  %v1101_v51 = vor.u32 %v1100_v46, %v1097_v45  ;;  %v1327_v53 = vld [vmem:[#allocation2 + $0x4] sm:$0xf]  ;;  %v1328_v54 = vld [vmem:[#allocation2 + $0x8] sm:$0x1]  ;;  %v3895_v57 = vrot.slane %v1326_v52, 9 }
  0x8c   : > { %v1111_v56 = vor.u32 %v1110_v48, %v1106_v47  ;;  %v1379_v58 = vrot.slane %v1327_v53, 5  ;;  %v1382_v42 = vrot.slane %v1328_v54, 5  ;;  %v4467_v59 = vld [vmem:[%s5498_s3 + $0x140] sm:$0xff]   ;;  %v1070_v0 = vld [vmem:[#allocation2 + $0xc] sm:$0xf]  ;;  %v4469_v13 = vld [vmem:[#allocation2 + $0x18] sm:$0xff]  }
  0x8d   : > { %4078 = vmatpush3.bf16.msra.mxu0 %v4447_v15  ;;  %v1102_v43 = vrot.slane %v1101_v51, 4  ;;  %v4466_v61 = vld [vmem:[#allocation2] sm:$0xff]   ;;  %v1071_v2 = vld [vmem:[#allocation2 + $0x10] sm:$0xf]  ;;  %v1072_v3 = vld [vmem:[#allocation2 + $0x14] sm:$0x1] }
  0x8e   : > { %4142 = vmatpush3.bf16.msra.mxu1 %v4448_v16  ;;  %4079 = vmatprep.subr.bf16.mxu0 %v4449_v14  ;;  %v1112_v60 = vrot.slane %v1111_v56, 4  ;;  %v1380_v62 = vsel %vm5020_vm13, %v3895_v57, %v1379_v58  ;;  %v1381_v63 = vrot.slane %v1379_v58, 4  ;;  %v1119_v29 = vshrl.u32 %v1070_v0, 16  ;;  %v4468_v10 = vld [vmem:[%s5498_s3 + $0x100] sm:$0xff]   ;;  %v1073_v35 = vld [vmem:[#allocation2 + $0x18] sm:$0xf] }
  0x8f   : > { %4143 = vmatprep.subr.bf16.mxu1 %v4450_v17  ;;  %v1107_v34 = vsel %vm5026_vm14, %v1102_v43, %v1106_v47  ;;  %v1122_v1 = vshll.u32 %v1070_v0, 16  ;;  %v1128_v6 = vshll.u32 %v1071_v2, 16  ;;  %v1132_v7 = vshrl.u32 %v1071_v2, 16  ;;  %v4471_v17 = vld [vmem:[%s5498_s3 + $0x148] sm:$0xff]   ;;  %v1074_v37 = vld [vmem:[#allocation2 + $0x1c] sm:$0xf] }
  0x90   : > { %v1117_v4 = vsel %vm5026_vm14, %v1112_v60, %v1116_v49  ;;  %v1383_v5 = vsel %vm5020_vm13, %v1381_v63, %v1382_v42  ;;  %v1121_v11 = vrot.slane %v1119_v29, 4  ;;  %v1138_v14 = vshll.u32 %v1072_v3, 16  ;;  %v1075_v38 = vld [vmem:[#allocation2 + $0x20] sm:$0x1]  ;;  %v4473_v52 = vld [vmem:[#allocation2 + $0x24] sm:$0xff]   ;;  %v4475_v57 = vld [vmem:[%s5498_s3 + $0x150] sm:$0xff]  }
  0x91   : > { %4080 = vmatpush3.bf16.msra.mxu0 %v4451_v18  ;;  %v3887_v8 = vcombine.low %v1107_v34, %v1117_v4  ;;  %v3903_v9 = vcombine.low %v1380_v62, %v1383_v5  ;;  %v1124_v12 = vrot.slane %v1122_v1, 5  ;;  %v1130_v15 = vrot.slane %v1128_v6, 5  ;;  %v1332_v42 = vld [vmem:[#allocation2 + $0x18] sm:$0xe]  ;;  %v1334_v43 = vld [vmem:[#allocation2 + $0x20] sm:$0x1] }
  0x92   : > { %4144 = vmatpush3.bf16.msra.mxu1 %v4452_v19  ;;  %4081 = vmatprep.subr.bf16.mxu0 %v4453_v20  ;;  %v1134_v16 = vrot.slane %v1132_v7, 4  ;;  %v1329_v19 = vld [vmem:[#allocation2 + $0xc] sm:$0xe]  ;;  %v1330_v20 = vld [vmem:[#allocation2 + $0x10] sm:$0xf]  ;;  %v1143_v39 = vshrl.u32 %v1073_v35, 16 }
  0x93   : > { %4145 = vmatprep.subr.bf16.mxu1 %v4454_v21  ;;  %3098 = vmatprep.mubr.bf16.mxu0 %v3887_v8  ;;  %v1125_v18 = vor.u32 %v1124_v12, %v1121_v11  ;;  %v1331_v21 = vld [vmem:[#allocation2 + $0x14] sm:$0x1]  ;;  %v1146_v40 = vshll.u32 %v1073_v35, 16  ;;  %v1152_v45 = vshll.u32 %v1074_v37, 16  ;;  %v1156_v46 = vshrl.u32 %v1074_v37, 16  ;;  %v4476_v0 = vld [vmem:[%s5498_s3 + $0x1c0] sm:$0xff]  }
  0x94   : > { %v1145_v49 = vrot.slane %v1143_v39, 4  ;;  %v1162_v56 = vshll.u32 %v1075_v38, 16  ;;  %v3897_v62 = vrot.slane %v1332_v42, 9  ;;  %v1396_v2 = vrot.slane %v1334_v43, 5  ;;  %v4474_v29 = vld [vmem:[#allocation2 + $0x18] sm:$0xff]   ;;  %v4477_v6 = vld [vmem:[%s5498_s3 + $0x110] sm:$0xff]  }
  0x95   : > { %4082 = vmatpush3.bf16.msra.mxu0 %v4455_v22  ;;  %v1135_v22 = vor.u32 %v1134_v16, %v1130_v15  ;;  %v1148_v51 = vrot.slane %v1146_v40, 5  ;;  %v1154_v53 = vrot.slane %v1152_v45, 5  ;;  %v1158_v54 = vrot.slane %v1156_v46, 4  ;;  %v4482_v38 = vld [vmem:[%s5498_s3 + $0x1c8] sm:$0xff]   ;;  %v4483_v46 = vld [vmem:[%s5498_s3 + $0x118] sm:$0xff]  }
  0x96   : > { %4146 = vmatpush3.bf16.msra.mxu1 %v4456_v23  ;;  %4083 = vmatprep.subr.bf16.mxu0 %v4457_v24  ;;  %v1140_v23 = vrot.slane %v1138_v14, 5  ;;  %v3896_v24 = vrot.slane %v1329_v19, 9  ;;  %v4480_v40 = vld [vmem:[#allocation2 + $0x24] sm:$0xff]  }
  0x97   : > { %4147 = vmatprep.subr.bf16.mxu1 %v4458_v25  ;;  %v1386_v25 = vrot.slane %v1330_v20, 5  ;;  %v1149_v58 = vor.u32 %v1148_v51, %v1145_v49  ;;  %v1159_v60 = vor.u32 %v1158_v54, %v1154_v53  ;;  %v4479_v20 = vld [vmem:[#allocation2 + $0x30] sm:$0xff]   ;;  %v4484_v49 = vld [vmem:[%s5498_s3 + $0x188] sm:$0xff]  }
  0x98   : > { %v1079_v51 = vld [vmem:[#allocation2 + $0x30] sm:$0xf]  ;;  %v1080_v54 = vld [vmem:[#allocation2 + $0x34] sm:$0xf] }
  0x99   : > { %4084 = vmatpush3.bf16.msra.mxu0 %v4459_v26  ;;  %v4472_v26 = vld [vmem:[%s5498_s3 + $0x108] sm:$0xff]   ;;  %v1388_v33 = vrot.slane %v1386_v25, 4  ;;  %v1150_v34 = vrot.slane %v1149_v58, 4  ;;  %v1160_v3 = vrot.slane %v1159_v60, 4  ;;  %v1194_v58 = vshll.u32 %v1079_v51, 16  ;;  %v4485_v60 = vld [vmem:[#allocation2 + $0x3c] sm:$0xff]  }
  0x9a   : > { %4148 = vmatpush3.bf16.msra.mxu1 %v4460_v27  ;;  %4085 = vmatprep.subr.bf16.mxu0 %v4461_v28  ;;  %v1126_v27 = vrot.slane %v1125_v18, 4  ;;  %v1389_v28 = vrot.slane %v1331_v21, 5  ;;  %v1200_v42 = vshll.u32 %v1080_v54, 16 }
  0x9b   : > { %4149 = vmatprep.subr.bf16.mxu1 %v4462_v30  ;;  %v1136_v30 = vrot.slane %v1135_v22, 4  ;;  %v1155_v5 = vsel %vm5026_vm14, %v1150_v34, %v1154_v53 }
  0x9c   : > { %v1131_v36 = vsel %vm5026_vm14, %v1126_v27, %v1130_v15  ;;  %v1390_v44 = vsel %vm5020_vm13, %v1388_v33, %v1389_v28  ;;  %v1078_v15 = vld [vmem:[#allocation2 + $0x2c] sm:$0x1]  ;;  %v1335_v27 = vld [vmem:[#allocation2 + $0x24] sm:$0xe]  ;;  %v1336_v28 = vld [vmem:[#allocation2 + $0x28] sm:$0xf] }
  0x9d   : > { %4086 = vmatpush3.bf16.msra.mxu0 %v4463_v31  ;;  %v4470_v31 = vld [vmem:[#allocation2 + $0xc] sm:$0xff]   ;;  %v1141_v41 = vsel %vm5026_vm14, %v1136_v30, %v1140_v23  ;;  %v1186_v19 = vshll.u32 %v1078_v15, 16  ;;  %v1400_v33 = vrot.slane %v1336_v28, 5 }
  0x9e   : > { %4150 = vmatpush3.bf16.msra.mxu1 %v4464_v32  ;;  %4199 = vmatprep.subr.bf16.mxu0 %v4467_v59  ;;  %v1387_v32 = vsel %vm5020_vm13, %v3896_v24, %v1386_v25  ;;  %v3888_v47 = vcombine.low %v1131_v36, %v1141_v41  ;;  %v1333_v59 = vld [vmem:[#allocation2 + $0x1c] sm:$0xf]  ;;  %v1337_v30 = vld [vmem:[#allocation2 + $0x2c] sm:$0x1] }
  0x9f   : > { %v3904_v48 = vcombine.low %v1387_v32, %v1390_v44  ;;  %v1393_v63 = vrot.slane %v1333_v59, 5  ;;  %4263 = vmatprep.subr.bf16.mxu1 %v4476_v0  ;;  %v1188_v25 = vrot.slane %v1186_v19, 5  ;;  %v3898_v32 = vrot.slane %v1335_v27, 9  ;;  %v4481_v36 = vld [vmem:[%s5498_s3 + $0x158] sm:$0xff]   ;;  %v4490_v19 = vld [vmem:[%s5498_s3 + $0x190] sm:$0xff]  }
  0xa0   : > { %3099 = vmatmul.mubr.bf16.vlgmr.msra.gmra.mrb[0].mxu0 %v4466_v61  ;;  %v1164_v61 = vrot.slane %v1162_v56, 5  ;;  %v1403_v35 = vrot.slane %v1337_v30, 5  ;;  %v1402_v44 = vrot.slane %v1400_v33, 4  ;;  %v1081_v56 = vld [vmem:[#allocation2 + $0x38] sm:$0x1]  ;;  %v1204_v59 = vshrl.u32 %v1080_v54, 16 }
  0xa1   : > { %3196 = vmatmul.mubr.bf16.vlgmr.msra.gmra.mrb[0].mxu1 %v3903_v9  ;;  %4200 = vmatpush3.bf16.msra.mxu0 %v4468_v10  ;;  %v1394_v1 = vsel %vm5020_vm13, %v3897_v62, %v1393_v63  ;;  %v1395_v4 = vrot.slane %v1393_v63, 4  ;;  %v4478_v9 = vld [vmem:[%s5498_s3 + $0x180] sm:$0xff]   ;;  %v1401_v41 = vsel %vm5020_vm13, %v3898_v32, %v1400_v33  ;;  %v1210_v43 = vshll.u32 %v1081_v56, 16 }
  0xa2   : > { %3203 = vmatprep.mubr.bf16.mxu1 %v4469_v13  ;;  %4201 = vmatprep.subr.bf16.mxu0 %v4471_v17  ;;  %v1165_v7 = vsel %vm5026_vm14, %v1160_v3, %v1164_v61  ;;  %v1076_v10 = vld [vmem:[#allocation2 + $0x24] sm:$0xf]  ;;  %v1077_v13 = vld [vmem:[#allocation2 + $0x28] sm:$0xf]  ;;  %v1196_v62 = vrot.slane %v1194_v58, 5  ;;  %v1202_v63 = vrot.slane %v1200_v42, 5 }
  0xa3   : > { %3106 = vmatprep.mubr.bf16.mxu0 %v3888_v47  ;;  %v1397_v8 = vsel %vm5020_vm13, %v1395_v4, %v1396_v2  ;;  %v3889_v11 = vcombine.low %v1155_v5, %v1165_v7  ;;  %v1167_v16 = vshrl.u32 %v1076_v10, 16  ;;  %v1170_v14 = vshll.u32 %v1076_v10, 16  ;;  %4264 = vmatpush3.bf16.msra.mxu1 %v4478_v9  ;;  %v1338_v3 = vld [vmem:[#allocation2 + $0x30] sm:$0xe]  ;;  %v4495_v58 = vld [vmem:[%s5498_s3 + $0x128] sm:$0xff]  }
  0xa4   : > { %v3905_v12 = vcombine.low %v1394_v1, %v1397_v8  ;;  %v1176_v17 = vshll.u32 %v1077_v13, 16  ;;  %v1180_v18 = vshrl.u32 %v1077_v13, 16  ;;  %4265 = vmatprep.subr.bf16.mxu1 %v4482_v38  ;;  %v1206_v0 = vrot.slane %v1204_v59, 4  ;;  %v1340_v1 = vld [vmem:[#allocation2 + $0x38] sm:$0x1]  ;;  %v4487_v8 = vld [vmem:[%s5498_s3 + $0x160] sm:$0xff]  }
  0xa5   : > { %4202 = vmatpush3.bf16.msra.mxu0 %v4472_v26  ;;  %v1169_v21 = vrot.slane %v1167_v16, 4  ;;  %v1172_v22 = vrot.slane %v1170_v14, 5  ;;  %v1212_v34 = vrot.slane %v1210_v43, 5  ;;  %v3899_v5 = vrot.slane %v1338_v3, 9  ;;  %v4488_v10 = vld [vmem:[%s5498_s3 + $0x1d0] sm:$0xff]   ;;  %v4489_v14 = vld [vmem:[%s5498_s3 + $0x120] sm:$0xff]  }
  0xa6   : > { %4203 = vmatprep.subr.bf16.mxu0 %v4475_v57  ;;  %v1178_v23 = vrot.slane %v1176_v17, 5  ;;  %v1182_v24 = vrot.slane %v1180_v18, 4  ;;  %v1191_v57 = vshrl.u32 %v1079_v51, 16  ;;  %v1207_v4 = vor.u32 %v1206_v0, %v1202_v63  ;;  %v4494_v51 = vld [vmem:[%s5498_s3 + $0x1d8] sm:$0xff]   ;;  %v1087_v0 = vld [vmem:[#allocation2 + $0x50] sm:$0x1] }
  0xa7   : > { %v1173_v26 = vor.u32 %v1172_v22, %v1169_v21  ;;  %4266 = vmatpush3.bf16.msra.mxu1 %v4484_v49  ;;  %v1410_v7 = vrot.slane %v1340_v1, 5  ;;  %v4496_v43 = vld [vmem:[%s5498_s3 + $0x198] sm:$0xff]   ;;  %v1258_v1 = vshll.u32 %v1087_v0, 16 }
  0xa8   : > { %3107 = vmatmul.mubr.bf16.gmra.mrb[4].mxu0 %v4470_v31  ;;  %v1183_v31 = vor.u32 %v1182_v24, %v1178_v23  ;;  %v1193_v61 = vrot.slane %v1191_v57, 4  ;;  %4267 = vmatprep.subr.bf16.mxu1 %v4488_v10  ;;  %v1084_v24 = vld [vmem:[#allocation2 + $0x44] sm:$0x1]  ;;  %v4506_v0 = vld [vmem:[#allocation2 + $0x54] sm:$0xff]  }
  0xa9   : > { %3204 = vmatmul.mubr.bf16.gmra.mrb[4].mxu1 %v3904_v48  ;;  %4204 = vmatpush3.bf16.msra.mxu0 %v4477_v6  ;;  %v1174_v37 = vrot.slane %v1173_v26, 4  ;;  %v1404_v48 = vsel %vm5020_vm13, %v1402_v44, %v1403_v35  ;;  %v1234_v30 = vshll.u32 %v1084_v24, 16 }
  0xaa   : > { %3211 = vmatprep.mubr.bf16.mxu1 %v4473_v52  ;;  %3114 = vmatprep.mubr.bf16.mxu0 %v3889_v11  ;;  %v1184_v39 = vrot.slane %v1183_v31, 4  ;;  %v3906_v53 = vcombine.low %v1401_v41, %v1404_v48  ;;  %v1197_v2 = vor.u32 %v1196_v62, %v1193_v61  ;;  %v1208_v11 = vrot.slane %v1207_v4, 4  ;;  %v4491_v31 = vld [vmem:[#allocation2 + $0x48] sm:$0xff]   ;;  %v1343_v41 = vld [vmem:[#allocation2 + $0x44] sm:$0x1]  ;;  %v4497_v4 = vld [vmem:[#allocation2 + $0x54] sm:$0xff]  }
  0xab   : > { %4205 = vmatprep.subr.bf16.mxu0 %v4481_v36  ;;  %v1179_v45 = vsel %vm5026_vm14, %v1174_v37, %v1178_v23  ;;  %v1083_v23 = vld [vmem:[#allocation2 + $0x40] sm:$0xf]  ;;  %4268 = vmatpush3.bf16.msra.mxu1 %v4490_v19  ;;  %v1236_v37 = vrot.slane %v1234_v30, 5  ;;  %v4493_v48 = vld [vmem:[%s5498_s3 + $0x168] sm:$0xff]  }
  0xac   : > { %v1189_v47 = vsel %vm5026_vm14, %v1184_v39, %v1188_v25  ;;  %v1198_v9 = vrot.slane %v1197_v2, 4  ;;  %v1213_v17 = vsel %vm5026_vm14, %v1208_v11, %v1212_v34  ;;  %v1224_v27 = vshll.u32 %v1083_v23, 16  ;;  %v1341_v39 = vld [vmem:[#allocation2 + $0x3c] sm:$0xe]  ;;  %4269 = vmatprep.subr.bf16.mxu1 %v4494_v51  ;;  %v1344_v11 = vld [vmem:[#allocation2 + $0x48] sm:$0xe] }
  0xad   : > { %v3890_v52 = vcombine.low %v1179_v45, %v1189_v47  ;;  %4206 = vmatpush3.bf16.msra.mxu0 %v4483_v46  ;;  %v1228_v28 = vshrl.u32 %v1083_v23, 16  ;;  %v3900_v45 = vrot.slane %v1341_v39, 9  ;;  %v1417_v47 = vrot.slane %v1343_v41, 5  ;;  %v4502_v30 = vld [vmem:[%s5498_s3 + $0x1a0] sm:$0xff]  }
  0xae   : > { %4207 = vmatprep.subr.bf16.mxu0 %v4487_v8  ;;  %v1203_v16 = vsel %vm5026_vm14, %v1198_v9, %v1202_v63  ;;  %v1226_v35 = vrot.slane %v1224_v27, 5  ;;  %v1086_v63 = vld [vmem:[#allocation2 + $0x4c] sm:$0xf]  ;;  %v1260_v9 = vrot.slane %v1258_v1, 5 }
  0xaf   : > { %v3891_v21 = vcombine.low %v1203_v16, %v1213_v17  ;;  %v1230_v36 = vrot.slane %v1228_v28, 4  ;;  %4270 = vmatpush3.bf16.msra.mxu1 %v4496_v43  ;;  %v1248_v3 = vshll.u32 %v1086_v63, 16  ;;  %v3901_v16 = vrot.slane %v1344_v11, 9  ;;  %v1802_v11 = vld [vmem:[#allocation2 + $0x10] sm:$0xf] }
  0xb0   : > { %3115 = vmatmul.mubr.bf16.gmra.mrb[8].mxu0 %v4474_v29  ;;  %v1339_v29 = vld [vmem:[#allocation2 + $0x34] sm:$0xf] }
  0xb1   : > { %3212 = vmatmul.mubr.bf16.gmra.mrb[8].mxu1 %v3905_v12  ;;  %3122 = vmatprep.mubr.bf16.mxu0 %v3890_v52  ;;  %v1407_v6 = vrot.slane %v1339_v29, 5  ;;  %v4486_v12 = vld [vmem:[#allocation2 + $0x30] sm:$0xff]   ;;  %v1231_v44 = vor.u32 %v1230_v36, %v1226_v35  ;;  %v1252_v29 = vshrl.u32 %v1086_v63, 16 }
  0xb2   : > { %3219 = vmatprep.mubr.bf16.mxu1 %v4479_v20  ;;  %v1082_v20 = vld [vmem:[#allocation2 + $0x3c] sm:$0xf]  ;;  %4208 = vmatpush3.bf16.msra.mxu0 %v4489_v14  ;;  %v1088_v36 = vld [vmem:[#allocation2 + $0x54] sm:$0xf] }
  0xb3   : > { %v1408_v13 = vsel %vm5020_vm13, %v3899_v5, %v1407_v6  ;;  %v1409_v15 = vrot.slane %v1407_v6, 4  ;;  %v1215_v25 = vshrl.u32 %v1082_v20, 16  ;;  %v1218_v26 = vshll.u32 %v1082_v20, 16  ;;  %4209 = vmatprep.subr.bf16.mxu0 %v4493_v48  ;;  %v4500_v20 = vld [vmem:[%s5498_s3 + $0x1e0] sm:$0xff]  }
  0xb4   : > { %v1232_v52 = vrot.slane %v1231_v44, 4  ;;  %v1254_v8 = vrot.slane %v1252_v29, 4  ;;  %4271 = vmatprep.subr.bf16.mxu1 %v4500_v20  ;;  %v1263_v39 = vshrl.u32 %v1088_v36, 16  ;;  %v4509_v29 = vld [vmem:[%s5498_s3 + $0x138] sm:$0xff]  }
  0xb5   : > { %v1411_v18 = vsel %vm5020_vm13, %v1409_v15, %v1410_v7  ;;  %v1217_v32 = vrot.slane %v1215_v25, 4  ;;  %v1220_v33 = vrot.slane %v1218_v26, 5  ;;  %v1250_v7 = vrot.slane %v1248_v3, 5  ;;  %v4501_v26 = vld [vmem:[%s5498_s3 + $0x130] sm:$0xff]   ;;  %4272 = vmatpush3.bf16.msra.mxu1 %v4502_v30 }
  0xb6   : > { %v3907_v22 = vcombine.low %v1408_v13, %v1411_v18  ;;  %v1237_v42 = vsel %vm5026_vm14, %v1232_v52, %v1236_v37  ;;  %4210 = vmatpush3.bf16.msra.mxu0 %v4495_v58  ;;  %v1346_v13 = vld [vmem:[#allocation2 + $0x50] sm:$0x1]  ;;  %v1089_v37 = vld [vmem:[#allocation2 + $0x58] sm:$0xf] }
  0xb7   : > { %v1221_v38 = vor.u32 %v1220_v33, %v1217_v32  ;;  %v1255_v15 = vor.u32 %v1254_v8, %v1250_v7  ;;  %v1424_v17 = vrot.slane %v1346_v13, 5  ;;  %v4499_v18 = vld [vmem:[%s5498_s3 + $0x170] sm:$0xff]   ;;  %v4503_v33 = vld [vmem:[%s5498_s3 + $0x1e8] sm:$0xff]   ;;  %v1272_v41 = vshll.u32 %v1089_v37, 16  ;;  %v4511_v8 = vld [vmem:[%s5498_s3 + $0x1f8] sm:$0xff]  }
  0xb8   : > { %3123 = vmatmul.mubr.bf16.gmra.mrb[12].mxu0 %v4480_v40  ;;  %v1342_v40 = vld [vmem:[#allocation2 + $0x40] sm:$0xf]  ;;  %4211 = vmatprep.subr.bf16.mxu0 %v4499_v18  ;;  %v1276_v44 = vshrl.u32 %v1089_v37, 16 }
  0xb9   : > { %3220 = vmatmul.mubr.bf16.gmra.mrb[12].mxu1 %v3906_v53  ;;  %3130 = vmatprep.mubr.bf16.mxu0 %v3891_v21  ;;  %v1414_v46 = vrot.slane %v1342_v40, 5  ;;  %v1222_v49 = vrot.slane %v1221_v38, 4  ;;  %v4492_v53 = vld [vmem:[#allocation2 + $0x3c] sm:$0xff]   ;;  %v1256_v21 = vrot.slane %v1255_v15, 4  ;;  %v1266_v40 = vshll.u32 %v1088_v36, 16 }
  0xba   : > { %3227 = vmatprep.mubr.bf16.mxu1 %v4485_v60  ;;  %v1085_v60 = vld [vmem:[#allocation2 + $0x48] sm:$0xf]  ;;  %4212 = vmatpush3.bf16.msra.mxu0 %v4501_v26  ;;  %v1090_v38 = vld [vmem:[#allocation2 + $0x5c] sm:$0x1]  ;;  %v1278_v51 = vrot.slane %v1276_v44, 4  ;;  %v1851_v15 = vrot.slane %v1802_v11, 5 }
  0xbb   : > { %v1415_v54 = vsel %vm5020_vm13, %v3900_v45, %v1414_v46  ;;  %v1416_v56 = vrot.slane %v1414_v46, 4  ;;  %v1227_v57 = vsel %vm5026_vm14, %v1222_v49, %v1226_v35  ;;  %v1239_v34 = vshrl.u32 %v1085_v60, 16  ;;  %v4504_v35 = vld [vmem:[%s5498_s3 + $0x1a8] sm:$0xff]   ;;  %4273 = vmatprep.subr.bf16.mxu1 %v4503_v33  ;;  %v4505_v46 = vld [vmem:[#allocation2 + $0x60] sm:$0xff]   ;;  %v1547_v33 = vld [vmem:[#allocation2 + $0x14] sm:$0x1] }
  0xbc   : > { %v3892_v61 = vcombine.low %v1227_v57, %v1237_v42  ;;  %v1242_v2 = vshll.u32 %v1085_v60, 16  ;;  %v1261_v27 = vsel %vm5026_vm14, %v1256_v21, %v1260_v9  ;;  %v1282_v45 = vshll.u32 %v1090_v38, 16  ;;  %4274 = vmatpush3.bf16.msra.mxu1 %v4504_v35  ;;  %v1349_v57 = vld [vmem:[#allocation2 + $0x5c] sm:$0x1]  ;;  %v2020_v18 = vld [vmem:[#allocation2 + $0x20] sm:$0x1] }
  0xbd   : > { %v1418_v59 = vsel %vm5020_vm13, %v1416_v56, %v1417_v47  ;;  %v1241_v5 = vrot.slane %v1239_v34, 4  ;;  %v1265_v47 = vrot.slane %v1263_v39, 4  ;;  %v1268_v48 = vrot.slane %v1266_v40, 5  ;;  %v1348_v56 = vld [vmem:[#allocation2 + $0x58] sm:$0xf]  ;;  %v5197_v39 = vld [vmem:[%s5498_s3 + $0x200] sm:$0xff]  }
  0xbe   : > { %v3908_v62 = vcombine.low %v1415_v54, %v1418_v59  ;;  %v1244_v6 = vrot.slane %v1242_v2, 5  ;;  %v1274_v49 = vrot.slane %v1272_v41, 5  ;;  %v1284_v52 = vrot.slane %v1282_v45, 5  ;;  %v1347_v54 = vld [vmem:[#allocation2 + $0x54] sm:$0xe]  ;;  %v4507_v60 = vld [vmem:[%s5498_s3 + $0x178] sm:$0xff]  }
  0xbf   : > { %v3902_v42 = vrot.slane %v1347_v54, 9  ;;  %v1428_v59 = vrot.slane %v1348_v56, 5  ;;  %v1431_v43 = vrot.slane %v1349_v57, 5  ;;  %4213 = vmatprep.subr.bf16.mxu0 %v4507_v60  ;;  %v4512_v9 = vld [vmem:[%s5498_s3 + $0x1b8] sm:$0xff]   ;;  %v1545_v26 = vld [vmem:[#allocation2 + $0xc] sm:$0xf] }
  0xc0   : > { %3131 = vmatmul.mubr.bf16.gmra.mrb[16].mxu0 %v4486_v12  ;;  %v1245_v10 = vor.u32 %v1244_v6, %v1241_v5  ;;  %v1345_v12 = vld [vmem:[#allocation2 + $0x4c] sm:$0xf]  ;;  %v1279_v58 = vor.u32 %v1278_v51, %v1274_v49  ;;  %v4510_v5 = vld [vmem:[%s5498_s3 + $0x1b0] sm:$0xff]   ;;  %v1570_v37 = vshrl.u32 %v1545_v26, 16  ;;  %v1573_v38 = vshll.u32 %v1545_v26, 16  ;;  %v4513_v54 = vld [vmem:[#allocation2 + $0x18] sm:$0xff]  }
  0xc1   : > { %3228 = vmatmul.mubr.bf16.gmra.mrb[16].mxu1 %v3907_v22  ;;  %3138 = vmatprep.mubr.bf16.mxu0 %v3892_v61  ;;  %v1421_v14 = vrot.slane %v1345_v12, 5  ;;  %v4498_v22 = vld [vmem:[#allocation2 + $0x48] sm:$0xff]   ;;  %v1429_v34 = vsel %vm5020_vm13, %v3902_v42, %v1428_v59  ;;  %v1430_v2 = vrot.slane %v1428_v59, 4  ;;  %v1803_v12 = vld [vmem:[#allocation2 + $0x14] sm:$0x1] }
  0xc2   : > { %3235 = vmatprep.mubr.bf16.mxu1 %v4491_v31  ;;  %v1246_v19 = vrot.slane %v1245_v10, 4  ;;  %v1280_v63 = vrot.slane %v1279_v58, 4  ;;  %4214 = vmatpush3.bf16.msra.mxu0 %v4509_v29  ;;  %v1801_v10 = vld [vmem:[#allocation2 + $0xc] sm:$0xe]  ;;  %v1804_v56 = vld [vmem:[#allocation2 + $0x18] sm:$0xe] }
  0xc3   : > { %v1422_v23 = vsel %vm5020_vm13, %v3901_v16, %v1421_v14  ;;  %v1423_v24 = vrot.slane %v1421_v14, 4  ;;  %v3927_v13 = vrot.slane %v1801_v10, 9  ;;  %v1854_v16 = vrot.slane %v1803_v12, 5  ;;  %v2018_v14 = vld [vmem:[#allocation2 + $0x18] sm:$0xf]  ;;  %4343 = vmatprep.subr.bf16.mxu0 %v5197_v39  ;;  %v5210_v11 = vld [vmem:[%s5498_s3 + $0x208] sm:$0xff]  }
  0xc4   : > { %v1251_v25 = vsel %vm5026_vm14, %v1246_v19, %v1250_v7  ;;  %v1285_v1 = vsel %vm5026_vm14, %v1280_v63, %v1284_v52  ;;  %v2043_v19 = vshrl.u32 %v2018_v14, 16  ;;  %v2046_v20 = vshll.u32 %v2018_v14, 16  ;;  %v1805_v59 = vld [vmem:[#allocation2 + $0x1c] sm:$0xf]  ;;  %v1550_v14 = vld [vmem:[#allocation2 + $0x20] sm:$0x1] }
  0xc5   : > { %v1425_v28 = vsel %vm5020_vm13, %v1423_v24, %v1424_v17  ;;  %v3893_v31 = vcombine.low %v1251_v25, %v1261_v27  ;;  %v2019_v17 = vld [vmem:[#allocation2 + $0x1c] sm:$0xf]  ;;  %v1853_v24 = vrot.slane %v1851_v15, 4  ;;  %v2062_v25 = vshll.u32 %v2020_v18, 16  ;;  %v1546_v27 = vld [vmem:[#allocation2 + $0x10] sm:$0xf] }
  0xc6   : > { %v3909_v32 = vcombine.low %v1422_v23, %v1425_v28  ;;  %v2052_v21 = vshll.u32 %v2019_v17, 16  ;;  %v1852_v23 = vsel %vm5020_vm13, %v3927_v13, %v1851_v15  ;;  %v2045_v28 = vrot.slane %v2043_v19, 4  ;;  %v1549_v10 = vld [vmem:[#allocation2 + $0x1c] sm:$0xf] }
  0xc7   : > { %v2048_v30 = vrot.slane %v2046_v20, 5  ;;  %v1855_v35 = vsel %vm5020_vm13, %v1853_v24, %v1854_v16  ;;  %v2064_v36 = vrot.slane %v2062_v25, 5  ;;  %v1579_v45 = vshll.u32 %v1546_v27, 16 }
  0xc8   : > { %3139 = vmatmul.mubr.bf16.gmra.mrb[20].mxu0 %v4492_v53  ;;  %v1269_v53 = vor.u32 %v1268_v48, %v1265_v47  ;;  %v3935_v40 = vcombine.low %v1852_v23, %v1855_v35  ;;  %v1575_v47 = vrot.slane %v1573_v38, 5  ;;  %v1583_v48 = vshrl.u32 %v1546_v27, 16 }
  0xc9   : > { %3236 = vmatmul.mubr.bf16.gmra.mrb[20].mxu1 %v3908_v62  ;;  %3146 = vmatprep.mubr.bf16.mxu0 %v3893_v31  ;;  %v4508_v62 = vld [vmem:[%s5498_s3 + $0x1f0] sm:$0xff]   ;;  %v2054_v31 = vrot.slane %v2052_v21, 5  ;;  %v2049_v41 = vor.u32 %v2048_v30, %v2045_v28  ;;  %v1858_v63 = vrot.slane %v1805_v59, 5  ;;  %v1807_v30 = vld [vmem:[#allocation2 + $0x24] sm:$0xe]  ;;  %v1607_v35 = vshrl.u32 %v1549_v10, 16 }
  0xca   : > { %3243 = vmatprep.mubr.bf16.mxu1 %v4497_v4  ;;  %v1270_v61 = vrot.slane %v1269_v53, 4  ;;  %4275 = vmatprep.subr.bf16.mxu1 %v4508_v62  ;;  %v1432_v4 = vsel %vm5020_vm13, %v1430_v2, %v1431_v43  ;;  %v1581_v53 = vrot.slane %v1579_v45, 5  ;;  %v1585_v58 = vrot.slane %v1583_v48, 4  ;;  %v1806_v43 = vld [vmem:[#allocation2 + $0x20] sm:$0x1]  ;;  %v4515_v59 = vld [vmem:[#allocation2 + $0x24] sm:$0xff]  }
  0xcb   : > { %v3910_v7 = vcombine.low %v1429_v34, %v1432_v4  ;;  %4276 = vmatpush3.bf16.msra.mxu1 %v4510_v5  ;;  %v2050_v51 = vrot.slane %v2049_v41, 4  ;;  %v3928_v62 = vrot.slane %v1804_v56, 9  ;;  %v2022_v34 = vld [vmem:[#allocation2 + $0x28] sm:$0xf]  ;;  %v2023_v4 = vld [vmem:[#allocation2 + $0x2c] sm:$0x1] }
  0xcc   : > { %v1275_v3 = vsel %vm5026_vm14, %v1270_v61, %v1274_v49  ;;  %4277 = vmatprep.subr.bf16.mxu1 %v4511_v8  ;;  %v1589_v49 = vshll.u32 %v1547_v33, 16  ;;  %v1586_v29 = vor.u32 %v1585_v58, %v1581_v53  ;;  %v1548_v5 = vld [vmem:[#allocation2 + $0x18] sm:$0xf]  ;;  %v2076_v15 = vshll.u32 %v2022_v34, 16 }
  0xcd   : > { %v3894_v6 = vcombine.low %v1275_v3, %v1285_v1  ;;  %v2055_v60 = vsel %vm5026_vm14, %v2050_v51, %v2054_v31  ;;  %v1861_v1 = vrot.slane %v1806_v43, 5  ;;  %v2080_v16 = vshrl.u32 %v2022_v34, 16  ;;  %v2024_v51 = vld [vmem:[#allocation2 + $0x30] sm:$0xf]  ;;  %v2026_v43 = vld [vmem:[#allocation2 + $0x38] sm:$0x1] }
  0xce   : > { %v1591_v42 = vrot.slane %v1589_v49, 5  ;;  %v1587_v13 = vrot.slane %v1586_v29, 4  ;;  %v2086_v20 = vshll.u32 %v2023_v4, 16  ;;  %v2078_v23 = vrot.slane %v2076_v15, 5 }
  0xcf   : > { %4278 = vmatpush3.bf16.msra.mxu1 %v4512_v9  ;;  %v2082_v24 = vrot.slane %v2080_v16, 4  ;;  %v1594_v28 = vshrl.u32 %v1548_v5, 16  ;;  %v1603_v33 = vshll.u32 %v1549_v10, 16  ;;  %v1613_v41 = vshll.u32 %v1550_v14, 16  ;;  %v5251_v16 = vld [vmem:[%s5498_s3 + $0x220] sm:$0xff]  }
  0xd0   : > { %3147 = vmatmul.mubr.bf16.gmra.mrb[24].mxu0 %v4498_v22  ;;  %v2056_v22 = vshrl.u32 %v2019_v17, 16  ;;  %4375 = vmatprep.subr.bf16.mxu1 %v5197_v39  ;;  %v1592_v21 = vsel %vm5026_vm14, %v1587_v13, %v1591_v42  ;;  %v2088_v27 = vrot.slane %v2086_v20, 5  ;;  %v3929_v45 = vrot.slane %v1807_v30, 9  ;;  %v1810_v20 = vld [vmem:[#allocation2 + $0x30] sm:$0xe] }
  0xd1   : > { %3244 = vmatmul.mubr.bf16.gmra.mrb[24].mxu1 %v3909_v32  ;;  %3154 = vmatprep.mubr.bf16.mxu0 %v3894_v6  ;;  %v1859_v6 = vsel %vm5020_vm13, %v3928_v62, %v1858_v63  ;;  %v1605_v48 = vrot.slane %v1603_v33, 5  ;;  %v1609_v49 = vrot.slane %v1607_v35, 4  ;;  %v2094_v34 = vshll.u32 %v2024_v51, 16 }
  0xd2   : > { %3251 = vmatprep.mubr.bf16.mxu1 %v4505_v46  ;;  %v2058_v32 = vrot.slane %v2056_v22, 4  ;;  %v1572_v46 = vrot.slane %v1570_v37, 4  ;;  %v5223_v37 = vld [vmem:[%s5498_s3 + $0x210] sm:$0xff]   ;;  %v2110_v10 = vshll.u32 %v2026_v43, 16 }
  0xd3   : > { %v1610_v42 = vor.u32 %v1609_v49, %v1605_v48 }
  0xd4   : > { %v2059_v44 = vor.u32 %v2058_v32, %v2054_v31  ;;  %v1576_v57 = vor.u32 %v1575_v47, %v1572_v46  ;;  %v2083_v31 = vor.u32 %v2082_v24, %v2078_v23  ;;  %v1597_v32 = vshll.u32 %v1548_v5, 16 }
  0xd6   : > { %v2060_v52 = vrot.slane %v2059_v44, 4  ;;  %v1577_v3 = vrot.slane %v1576_v57, 4  ;;  %v1809_v44 = vld [vmem:[#allocation2 + $0x2c] sm:$0x1]  ;;  %v2084_v46 = vrot.slane %v2083_v31, 4  ;;  %v1599_v47 = vrot.slane %v1597_v32, 5 }
  0xd7   : > { %v1868_v56 = vrot.slane %v1809_v44, 5  ;;  %v2025_v57 = vld [vmem:[#allocation2 + $0x34] sm:$0xf]  ;;  %v3930_v31 = vrot.slane %v1810_v20, 9  ;;  %v2027_v32 = vld [vmem:[#allocation2 + $0x3c] sm:$0xf] }
  0xd8   : > { %3155 = vmatmul.mubr.bf16.gmra.mrb[28].mxu0 %v4506_v0  ;;  %v2065_v61 = vsel %vm5026_vm14, %v2060_v52, %v2064_v36  ;;  %v2021_v0 = vld [vmem:[#allocation2 + $0x24] sm:$0xf]  ;;  %v1582_v12 = vsel %vm5026_vm14, %v1577_v3, %v1581_v53  ;;  %v1808_v36 = vld [vmem:[#allocation2 + $0x28] sm:$0xf]  ;;  %v1615_v53 = vrot.slane %v1613_v41, 5  ;;  %v2100_v5 = vshll.u32 %v2025_v57, 16 }
  0xd9   : > { %3252 = vmatmul.mubr.bf16.gmra.mrb[28].mxu1 %v3910_v7  ;;  %3292 = vmatprep.mubr.bf16.mxu0 %v3935_v40  ;;  %v3951_v2 = vcombine.low %v2055_v60, %v2065_v61  ;;  %v1860_v7 = vrot.slane %v1858_v63, 4  ;;  %v2067_v8 = vshrl.u32 %v2021_v0, 16  ;;  %v2070_v9 = vshll.u32 %v2021_v0, 16  ;;  %v5235_v61 = vld [vmem:[%s5498_s3 + $0x218] sm:$0xff]   ;;  %v1552_v3 = vld [vmem:[#allocation2 + $0x28] sm:$0xf] }
  0xda   : > { %v3919_v25 = vcombine.low %v1582_v12, %v1592_v21  ;;  %v1596_v40 = vrot.slane %v1594_v28, 4  ;;  %v2091_v60 = vshrl.u32 %v2024_v51, 16  ;;  %v2102_v15 = vrot.slane %v2100_v5, 5  ;;  %v1811_v21 = vld [vmem:[#allocation2 + $0x34] sm:$0xf] }
  0xdb   : > { %3389 = vmatprep.mubr.bf16.mxu1 %v3951_v2  ;;  %v1862_v17 = vsel %vm5020_vm13, %v1860_v7, %v1861_v1  ;;  %v2069_v18 = vrot.slane %v2067_v8, 4  ;;  %v2072_v19 = vrot.slane %v2070_v9, 5  ;;  %v1551_v2 = vld [vmem:[#allocation2 + $0x24] sm:$0xf]  ;;  %v1611_v1 = vrot.slane %v1610_v42, 4  ;;  %v4517_v44 = vld [vmem:[#allocation2 + $0x30] sm:$0xff]  }
  0xdc   : > { %v3936_v22 = vcombine.low %v1859_v6, %v1862_v17  ;;  %v1600_v58 = vor.u32 %v1599_v47, %v1596_v40  ;;  %v2093_v4 = vrot.slane %v2091_v60, 4  ;;  %v1553_v6 = vld [vmem:[#allocation2 + $0x2c] sm:$0x1]  ;;  %v2096_v8 = vrot.slane %v2094_v34, 5  ;;  %v2028_v51 = vld [vmem:[#allocation2 + $0x40] sm:$0xf] }
  0xdd   : > { %v2073_v26 = vor.u32 %v2072_v19, %v2069_v18  ;;  %v2104_v9 = vshrl.u32 %v2025_v57, 16  ;;  %v1616_v13 = vsel %vm5026_vm14, %v1611_v1, %v1615_v53  ;;  %v2112_v19 = vrot.slane %v2110_v10, 5  ;;  %v1555_v42 = vld [vmem:[#allocation2 + $0x34] sm:$0xf]  ;;  %v1813_v10 = vld [vmem:[#allocation2 + $0x3c] sm:$0xe] }
  0xde   : > { %v1601_v29 = vrot.slane %v1600_v58, 4  ;;  %v2097_v17 = vor.u32 %v2096_v8, %v2093_v4  ;;  %v1627_v24 = vshll.u32 %v1552_v3, 16  ;;  %v1637_v30 = vshll.u32 %v1553_v6, 16  ;;  %v1554_v58 = vld [vmem:[#allocation2 + $0x30] sm:$0xf] }
  0xdf   : > { %v2074_v38 = vrot.slane %v2073_v26, 4  ;;  %v2106_v18 = vrot.slane %v2104_v9, 4  ;;  %v1812_v26 = vld [vmem:[#allocation2 + $0x38] sm:$0x1]  ;;  %v2115_v53 = vshrl.u32 %v2027_v32, 16  ;;  %v2128_v34 = vshrl.u32 %v2028_v51, 16 }
  0xe0   : > { %3293 = vmatmul.mubr.bf16.vlgmr.msra.gmra.mrb[32].mxu0 %v3919_v25  ;;  %v1606_v12 = vsel %vm5026_vm14, %v1601_v29, %v1605_v48  ;;  %v1631_v25 = vshrl.u32 %v1552_v3, 16  ;;  %v1639_v41 = vrot.slane %v1637_v30, 5  ;;  %v1875_v49 = vrot.slane %v1812_v26, 5  ;;  %v1556_v4 = vld [vmem:[#allocation2 + $0x38] sm:$0x1]  ;;  %v4526_v5 = vld [vmem:[%s5498_s3 + $0x230] sm:$0xff]  }
  0xe1   : > { %3390 = vmatmul.mubr.bf16.vlgmr.msra.gmra.mrb[32].mxu1 %v4513_v54  ;;  %4344 = vmatpush3.bf16.msra.mxu0 %v5197_v39  ;;  %v2079_v52 = vsel %vm5026_vm14, %v2074_v38, %v2078_v23  ;;  %v1865_v54 = vrot.slane %v1808_v36, 5  ;;  %v3920_v14 = vcombine.low %v1606_v12, %v1616_v13  ;;  %v1621_v23 = vshll.u32 %v1551_v2, 16  ;;  %v1814_v12 = vld [vmem:[#allocation2 + $0x40] sm:$0xf] }
  0xe2   : > { %4383 = vmatpush3.bf16.msra.mxu1 %v5197_v39  ;;  %3300 = vmatprep.mubr.bf16.mxu0 %v3936_v22  ;;  %v2089_v39 = vsel %vm5026_vm14, %v2084_v46, %v2088_v27  ;;  %v1618_v22 = vshrl.u32 %v1551_v2, 16  ;;  %v2098_v27 = vrot.slane %v2097_v17, 4  ;;  %v2107_v28 = vor.u32 %v2106_v18, %v2102_v15  ;;  %v4524_v46 = vld [vmem:[%s5498_s3 + $0x228] sm:$0xff]   ;;  %v1815_v17 = vld [vmem:[#allocation2 + $0x44] sm:$0x1] }
  0xe3   : > { %4376 = vmatprep.subr.bf16.mxu1 %v5210_v11  ;;  %4345 = vmatprep.subr.bf16.mxu0 %v5210_v11  ;;  %v3952_v62 = vcombine.low %v2079_v52, %v2089_v39  ;;  %v1866_v63 = vsel %vm5020_vm13, %v3929_v45, %v1865_v54  ;;  %v1867_v0 = vrot.slane %v1865_v54, 4  ;;  %v1623_v35 = vrot.slane %v1621_v23, 5  ;;  %v2029_v52 = vld [vmem:[#allocation2 + $0x44] sm:$0x1] }
  0xe4   : > { %v1620_v33 = vrot.slane %v1618_v22, 4  ;;  %v1629_v36 = vrot.slane %v1627_v24, 5  ;;  %v1633_v38 = vrot.slane %v1631_v25, 4  ;;  %v2103_v40 = vsel %vm5026_vm14, %v2098_v27, %v2102_v15  ;;  %v4528_v22 = vld [vmem:[%s5498_s3 + $0x238] sm:$0xff]   ;;  %v2031_v27 = vld [vmem:[#allocation2 + $0x4c] sm:$0xf] }
  0xe5   : > { %4346 = vmatpush3.bf16.msra.mxu0 %v5210_v11  ;;  %3397 = vmatprep.mubr.bf16.mxu1 %v3952_v62  ;;  %v1869_v7 = vsel %vm5020_vm13, %v1867_v0, %v1868_v56  ;;  %v1872_v45 = vrot.slane %v1811_v21, 5  ;;  %v2118_v39 = vshll.u32 %v2027_v32, 16  ;;  %v2117_v62 = vrot.slane %v2115_v53, 4  ;;  %v2030_v21 = vld [vmem:[#allocation2 + $0x48] sm:$0xf] }
  0xe6   : > { %4384 = vmatpush3.bf16.msra.mxu1 %v5210_v11  ;;  %4347 = vmatprep.subr.bf16.mxu0 %v5223_v37  ;;  %v3937_v11 = vcombine.low %v1866_v63, %v1869_v7  ;;  %v1624_v47 = vor.u32 %v1623_v35, %v1620_v33  ;;  %v1634_v48 = vor.u32 %v1633_v38, %v1629_v36  ;;  %v2124_v0 = vshll.u32 %v2028_v51, 16  ;;  %v4519_v35 = vld [vmem:[#allocation2 + $0x3c] sm:$0xff]  }
  0xe7   : > { %4377 = vmatprep.subr.bf16.mxu1 %v5223_v37  ;;  %v1873_v56 = vsel %vm5020_vm13, %v3930_v31, %v1872_v45  ;;  %v1874_v57 = vrot.slane %v1872_v45, 4  ;;  %v2120_v63 = vrot.slane %v2118_v39, 5  ;;  %v2134_v1 = vshll.u32 %v2029_v52, 16 }
  0xe8   : > { %3301 = vmatmul.mubr.bf16.gmra.mrb[36].mxu0 %v3920_v14  ;;  %v1625_v43 = vrot.slane %v1624_v47, 4  ;;  %v1635_v60 = vrot.slane %v1634_v48, 4  ;;  %v2126_v8 = vrot.slane %v2124_v0, 5  ;;  %v2130_v9 = vrot.slane %v2128_v34, 4  ;;  %v1557_v47 = vld [vmem:[#allocation2 + $0x3c] sm:$0xf] }
  0xe9   : > { %3398 = vmatmul.mubr.bf16.gmra.mrb[36].mxu1 %v4515_v59  ;;  %4348 = vmatpush3.bf16.msra.mxu0 %v5223_v37  ;;  %v2121_v7 = vor.u32 %v2120_v63, %v2117_v62  ;;  %v2136_v13 = vrot.slane %v2134_v1, 5  ;;  %v1645_v15 = vshll.u32 %v1554_v58, 16  ;;  %v1651_v14 = vshll.u32 %v1555_v42, 16  ;;  %v1559_v63 = vld [vmem:[#allocation2 + $0x44] sm:$0x1] }
  0xea   : > { %4385 = vmatpush3.bf16.msra.mxu1 %v5223_v37  ;;  %4349 = vmatprep.subr.bf16.mxu0 %v5235_v61  ;;  %v2108_v37 = vrot.slane %v2107_v28, 4  ;;  %v1630_v2 = vsel %vm5026_vm14, %v1625_v43, %v1629_v36  ;;  %v1640_v3 = vsel %vm5026_vm14, %v1635_v60, %v1639_v41  ;;  %v2131_v18 = vor.u32 %v2130_v9, %v2126_v8  ;;  %v1558_v43 = vld [vmem:[#allocation2 + $0x40] sm:$0xf]  ;;  %v1816_v34 = vld [vmem:[#allocation2 + $0x48] sm:$0xe] }
  0xeb   : > { %4378 = vmatprep.subr.bf16.mxu1 %v5235_v61  ;;  %3308 = vmatprep.mubr.bf16.mxu0 %v3937_v11  ;;  %v3921_v6 = vcombine.low %v1630_v2, %v1640_v3  ;;  %v1642_v11 = vshrl.u32 %v1554_v58, 16  ;;  %v1661_v20 = vshll.u32 %v1556_v4, 16  ;;  %v1647_v24 = vrot.slane %v1645_v15, 5  ;;  %v1817_v4 = vld [vmem:[#allocation2 + $0x4c] sm:$0xf] }
  0xec   : > { %v2113_v54 = vsel %vm5026_vm14, %v2108_v37, %v2112_v19  ;;  %v1655_v19 = vshrl.u32 %v1555_v42, 16  ;;  %v1653_v25 = vrot.slane %v1651_v14, 5  ;;  %v3931_v26 = vrot.slane %v1813_v10, 9  ;;  %v1818_v9 = vld [vmem:[#allocation2 + $0x50] sm:$0x1] }
  0xed   : > { %4350 = vmatpush3.bf16.msra.mxu0 %v5235_v61  ;;  %v3953_v59 = vcombine.low %v2103_v40, %v2113_v54  ;;  %v1644_v23 = vrot.slane %v1642_v11, 4  ;;  %v2132_v30 = vrot.slane %v2131_v18, 4  ;;  %v1663_v32 = vrot.slane %v1661_v20, 5  ;;  %v2032_v40 = vld [vmem:[#allocation2 + $0x50] sm:$0x1] }
  0xee   : > { %4386 = vmatpush3.bf16.msra.mxu1 %v5235_v61  ;;  %4351 = vmatprep.subr.bf16.mxu0 %v5251_v16  ;;  %v1876_v61 = vsel %vm5020_vm13, %v1874_v57, %v1875_v49  ;;  %v1657_v31 = vrot.slane %v1655_v19, 4  ;;  %v1879_v36 = vrot.slane %v1814_v12, 5  ;;  %v1882_v38 = vrot.slane %v1815_v17, 5  ;;  %v2033_v15 = vld [vmem:[#allocation2 + $0x54] sm:$0xf] }
  0xef   : > { %4379 = vmatprep.subr.bf16.mxu1 %v5251_v16  ;;  %3405 = vmatprep.mubr.bf16.mxu1 %v3953_v59  ;;  %v3938_v29 = vcombine.low %v1873_v56, %v1876_v61  ;;  %v1648_v33 = vor.u32 %v1647_v24, %v1644_v23  ;;  %v2139_v37 = vshrl.u32 %v2030_v21, 16  ;;  %v2137_v41 = vsel %vm5026_vm14, %v2132_v30, %v2136_v13  ;;  %v2034_v19 = vld [vmem:[#allocation2 + $0x58] sm:$0xf]  ;;  %v2035_v24 = vld [vmem:[#allocation2 + $0x5c] sm:$0x1] }
  0xf0   : > { %3309 = vmatmul.mubr.bf16.gmra.mrb[40].mxu0 %v3921_v6  ;;  %v2142_v45 = vshll.u32 %v2030_v21, 16  ;;  %v1880_v51 = vsel %vm5020_vm13, %v3931_v26, %v1879_v36  ;;  %v1881_v52 = vrot.slane %v1879_v36, 4  ;;  %v2152_v42 = vshrl.u32 %v2031_v27, 16 }
  0xf1   : > { %4352 = vmatpush3.bf16.msra.mxu0 %v5251_v16  ;;  %3406 = vmatmul.mubr.bf16.gmra.mrb[40].mxu1 %v4517_v44  ;;  %v1658_v44 = vor.u32 %v1657_v31, %v1653_v25  ;;  %v1649_v49 = vrot.slane %v1648_v33, 4  ;;  %v2141_v54 = vrot.slane %v2139_v37, 4  ;;  %v2158_v59 = vshll.u32 %v2032_v40, 16  ;;  %v4521_v33 = vld [vmem:[#allocation2 + $0x48] sm:$0xff]  }
  0xf2   : > { %4387 = vmatpush3.bf16.msra.mxu1 %v5251_v16  ;;  %4353 = vmatprep.subr.bf16.mxu0 %v4524_v46  ;;  %v2122_v16 = vrot.slane %v2121_v7, 4  ;;  %v2144_v56 = vrot.slane %v2142_v45, 5  ;;  %v1883_v58 = vsel %vm5020_vm13, %v1881_v52, %v1882_v38  ;;  %v1666_v0 = vshrl.u32 %v1557_v47, 16 }
  0xf3   : > { %4380 = vmatprep.subr.bf16.mxu1 %v4524_v46  ;;  %3316 = vmatprep.mubr.bf16.mxu0 %v3938_v29  ;;  %v1659_v53 = vrot.slane %v1658_v44, 4  ;;  %v1654_v39 = vsel %vm5026_vm14, %v1649_v49, %v1653_v25  ;;  %v3939_v62 = vcombine.low %v1880_v51, %v1883_v58  ;;  %v2154_v3 = vrot.slane %v2152_v42, 4  ;;  %v1560_v25 = vld [vmem:[#allocation2 + $0x48] sm:$0xf]  ;;  %v1561_v44 = vld [vmem:[#allocation2 + $0x4c] sm:$0xf] }
  0xf4   : > { %v2127_v28 = vsel %vm5026_vm14, %v2122_v16, %v2126_v8  ;;  %v2145_v61 = vor.u32 %v2144_v56, %v2141_v54  ;;  %v2160_v29 = vrot.slane %v2158_v59, 5  ;;  %v1669_v1 = vshll.u32 %v1557_v47, 16  ;;  %v1819_v42 = vld [vmem:[#allocation2 + $0x54] sm:$0xe]  ;;  %v1820_v59 = vld [vmem:[#allocation2 + $0x58] sm:$0xf] }
  0xf5   : > { %4354 = vmatpush3.bf16.msra.mxu0 %v4524_v46  ;;  %v3954_v48 = vcombine.low %v2127_v28, %v2137_v41  ;;  %v1664_v60 = vsel %vm5026_vm14, %v1659_v53, %v1663_v32  ;;  %v1668_v6 = vrot.slane %v1666_v0, 4  ;;  %v1675_v7 = vshll.u32 %v1558_v43, 16  ;;  %v1562_v53 = vld [vmem:[#allocation2 + $0x50] sm:$0x1] }
  0xf6   : > { %4388 = vmatpush3.bf16.msra.mxu1 %v4524_v46  ;;  %4355 = vmatprep.subr.bf16.mxu0 %v4526_v5  ;;  %v2148_v46 = vshll.u32 %v2031_v27, 16  ;;  %v3922_v2 = vcombine.low %v1654_v39, %v1664_v60  ;;  %v1679_v8 = vshrl.u32 %v1558_v43, 16  ;;  %v1671_v12 = vrot.slane %v1669_v1, 5 }
  0xf7   : > { %4381 = vmatprep.subr.bf16.mxu1 %v4526_v5  ;;  %3413 = vmatprep.mubr.bf16.mxu1 %v3954_v48  ;;  %v1685_v13 = vshll.u32 %v1559_v63, 16  ;;  %v3932_v11 = vrot.slane %v1816_v34, 9  ;;  %v1677_v17 = vrot.slane %v1675_v7, 5  ;;  %v1886_v18 = vrot.slane %v1817_v4, 5  ;;  %v1821_v63 = vld [vmem:[#allocation2 + $0x5c] sm:$0x1] }
  0xf8   : > { %v2150_v57 = vrot.slane %v2148_v46, 5  ;;  %3317 = vmatmul.mubr.bf16.gmra.mrb[44].mxu0 %v3922_v2  ;;  %v1681_v16 = vrot.slane %v1679_v8, 4  ;;  %v1672_v21 = vor.u32 %v1671_v12, %v1668_v6  ;;  %v1889_v23 = vrot.slane %v1818_v9, 5  ;;  %v2037_v7 = vld [vmem:[#allocation2 + $0x64] sm:$0xf] }
  0xf9   : > { %4356 = vmatpush3.bf16.msra.mxu0 %v4526_v5  ;;  %3414 = vmatmul.mubr.bf16.gmra.mrb[44].mxu1 %v4519_v35  ;;  %v1887_v27 = vsel %vm5020_vm13, %v3932_v11, %v1886_v18  ;;  %v1888_v28 = vrot.slane %v1886_v18, 4  ;;  %v2163_v30 = vshrl.u32 %v2033_v15, 16  ;;  %v2166_v35 = vshll.u32 %v2033_v15, 16 }
  0xfa   : > { %4389 = vmatpush3.bf16.msra.mxu1 %v4526_v5  ;;  %4357 = vmatprep.subr.bf16.mxu0 %v4528_v22  ;;  %v2146_v5 = vrot.slane %v2145_v61, 4  ;;  %v2155_v10 = vor.u32 %v2154_v3, %v2150_v57  ;;  %v1682_v26 = vor.u32 %v1681_v16, %v1677_v17  ;;  %v1673_v32 = vrot.slane %v1672_v21, 4  ;;  %v4523_v16 = vld [vmem:[#allocation2 + $0x54] sm:$0xff]  }
  0xfb   : > { %4382 = vmatprep.subr.bf16.mxu1 %v4528_v22  ;;  %3324 = vmatprep.mubr.bf16.mxu0 %v3939_v62  ;;  %v2172_v36 = vshll.u32 %v2034_v19, 16  ;;  %v1890_v37 = vsel %vm5020_vm13, %v1888_v28, %v1889_v23  ;;  %v2165_v41 = vrot.slane %v2163_v30, 4  ;;  %v2168_v47 = vrot.slane %v2166_v35, 5 }
  0xfc   : > { %v2151_v14 = vsel %vm5026_vm14, %v2146_v5, %v2150_v57  ;;  %v2156_v20 = vrot.slane %v2155_v10, 4  ;;  %v1683_v40 = vrot.slane %v1682_v26, 4  ;;  %v1678_v45 = vsel %vm5026_vm14, %v1673_v32, %v1677_v17  ;;  %v1563_v26 = vld [vmem:[#allocation2 + $0x54] sm:$0xf]  ;;  %v1564_v32 = vld [vmem:[#allocation2 + $0x58] sm:$0xf] }
  0xfd   : > { %4358 = vmatpush3.bf16.msra.mxu0 %v4528_v22  ;;  %v3940_v46 = vcombine.low %v1887_v27, %v1890_v37  ;;  %v2174_v48 = vrot.slane %v2172_v36, 5  ;;  %v2176_v51 = vshrl.u32 %v2034_v19, 16  ;;  %v2182_v52 = vshll.u32 %v2035_v24, 16  ;;  %v2038_v24 = vld [vmem:[#allocation2 + $0x68] sm:$0x1] }
  0xfe   : > { %4390 = vmatpush3.bf16.msra.mxu1 %v4528_v22  ;;  %v1687_v22 = vrot.slane %v1685_v13, 5  ;;  %v2161_v31 = vsel %vm5026_vm14, %v2156_v20, %v2160_v29  ;;  %v1690_v54 = vshrl.u32 %v1560_v25, 16  ;;  %v2169_v57 = vor.u32 %v2168_v47, %v2165_v41  ;;  %v2036_v29 = vld [vmem:[#allocation2 + $0x60] sm:$0xf] }
  0xff   : > { %v3955_v38 = vcombine.low %v2151_v14, %v2161_v31  ;;  %v1693_v39 = vshll.u32 %v1560_v25, 16  ;;  %v1699_v58 = vshll.u32 %v1561_v44, 16  ;;  %v2178_v43 = vrot.slane %v2176_v51, 4 }
 0x100   : > { %v1688_v49 = vsel %vm5026_vm14, %v1683_v40, %v1687_v22  ;;  %v2184_v60 = vrot.slane %v2182_v52, 5  ;;  %v1692_v62 = vrot.slane %v1690_v54, 4  ;;  %v1703_v61 = vshrl.u32 %v1561_v44, 16  ;;  %v1565_v40 = vld [vmem:[#allocation2 + $0x5c] sm:$0x1] }
 0x101   : > { %3421 = vmatprep.mubr.bf16.mxu1 %v3955_v38  ;;  %v3923_v56 = vcombine.low %v1678_v45, %v1688_v49  ;;  %v2170_v0 = vrot.slane %v2169_v57, 4  ;;  %v1695_v34 = vrot.slane %v1693_v39, 5  ;;  %v1701_v2 = vrot.slane %v1699_v58, 5  ;;  %v1823_v52 = vld [vmem:[#allocation2 + $0x64] sm:$0xf] }
 0x102   : > { %3422 = vmatmul.mubr.bf16.gmra.mrb[48].mxu1 %v4521_v33  ;;  %v1709_v3 = vshll.u32 %v1562_v53, 16  ;;  %v2179_v1 = vor.u32 %v2178_v43, %v2174_v48  ;;  %v1705_v4 = vrot.slane %v1703_v61, 4  ;;  %v3933_v5 = vrot.slane %v1819_v42, 9  ;;  %v1824_v53 = vld [vmem:[#allocation2 + $0x68] sm:$0x1] }
 0x103   : > { %3325 = vmatmul.mubr.bf16.gmra.mrb[48].mxu0 %v3923_v56  ;;  %v1893_v6 = vrot.slane %v1820_v59, 5  ;;  %v2175_v8 = vsel %vm5026_vm14, %v2170_v0, %v2174_v48  ;;  %v1696_v9 = vor.u32 %v1695_v34, %v1692_v62  ;;  %v1896_v12 = vrot.slane %v1821_v63, 5  ;;  %v2039_v58 = vld [vmem:[#allocation2 + $0x6c] sm:$0xf]  ;;  %v2040_v42 = vld [vmem:[#allocation2 + $0x70] sm:$0xf] }
 0x104   : > { %3332 = vmatprep.mubr.bf16.mxu0 %v3940_v46  ;;  %v1711_v10 = vrot.slane %v1709_v3, 5  ;;  %v2180_v13 = vrot.slane %v2179_v1, 4  ;;  %v1706_v11 = vor.u32 %v1705_v4, %v1701_v2  ;;  %v2187_v18 = vshrl.u32 %v2036_v29, 16  ;;  %v1822_v46 = vld [vmem:[#allocation2 + $0x60] sm:$0xe] }
 0x105   : > { %v1894_v15 = vsel %vm5020_vm13, %v3933_v5, %v1893_v6  ;;  %v1895_v14 = vrot.slane %v1893_v6, 4  ;;  %v1697_v17 = vrot.slane %v1696_v9, 4  ;;  %v2190_v19 = vshll.u32 %v2036_v29, 16  ;;  %v4525_v1 = vld [vmem:[#allocation2 + $0x60] sm:$0xff]   ;;  %v2041_v5 = vld [vmem:[#allocation2 + $0x74] sm:$0x1] }
 0x106   : > { %v2196_v20 = vshll.u32 %v2037_v7, 16  ;;  %v2185_v21 = vsel %vm5026_vm14, %v2180_v13, %v2184_v60  ;;  %v1707_v22 = vrot.slane %v1706_v11, 4  ;;  %v2200_v25 = vshrl.u32 %v2037_v7, 16 }
 0x107   : > { %v1897_v23 = vsel %vm5020_vm13, %v1895_v14, %v1896_v12  ;;  %v3956_v27 = vcombine.low %v2175_v8, %v2185_v21  ;;  %v1702_v28 = vsel %vm5026_vm14, %v1697_v17, %v1701_v2  ;;  %v2189_v31 = vrot.slane %v2187_v18, 4  ;;  %v1566_v18 = vld [vmem:[#allocation2 + $0x60] sm:$0xf] }
 0x108   : > { %v3941_v30 = vcombine.low %v1894_v15, %v1897_v23  ;;  %v1712_v33 = vsel %vm5026_vm14, %v1707_v22, %v1711_v10  ;;  %v2192_v35 = vrot.slane %v2190_v19, 5  ;;  %v2198_v36 = vrot.slane %v2196_v20, 5  ;;  %v1567_v19 = vld [vmem:[#allocation2 + $0x64] sm:$0xf] }
 0x109   : > { %v2202_v38 = vrot.slane %v2200_v25, 4  ;;  %3429 = vmatprep.mubr.bf16.mxu1 %v3956_v27  ;;  %v3924_v37 = vcombine.low %v1702_v28, %v1712_v33  ;;  %v2206_v41 = vshll.u32 %v2038_v24, 16  ;;  %v1714_v44 = vshrl.u32 %v1563_v26, 16  ;;  %v1568_v24 = vld [vmem:[#allocation2 + $0x68] sm:$0x1] }
 0x10a   : > { %v1717_v45 = vshll.u32 %v1563_v26, 16  ;;  %3430 = vmatmul.mubr.bf16.gmra.mrb[52].mxu1 %v4523_v16  ;;  %v2193_v47 = vor.u32 %v2192_v35, %v2189_v31  ;;  %v1723_v49 = vshll.u32 %v1564_v32, 16  ;;  %v1727_v51 = vshrl.u32 %v1564_v32, 16  ;;  %v2274_v25 = vld [vmem:[#allocation2 + $0x18] sm:$0xe] }
 0x10b   : > { %v2203_v48 = vor.u32 %v2202_v38, %v2198_v36  ;;  %3333 = vmatmul.mubr.bf16.gmra.mrb[52].mxu0 %v3924_v37  ;;  %v2208_v54 = vrot.slane %v2206_v41, 5  ;;  %v1716_v56 = vrot.slane %v1714_v44, 4  ;;  %v1733_v39 = vshll.u32 %v1565_v40, 16  ;;  %v2275_v31 = vld [vmem:[#allocation2 + $0x1c] sm:$0xf] }
 0x10c   : > { %v1719_v57 = vrot.slane %v1717_v45, 5  ;;  %3340 = vmatprep.mubr.bf16.mxu0 %v3941_v30  ;;  %v2194_v59 = vrot.slane %v2193_v47, 4  ;;  %v1725_v60 = vrot.slane %v1723_v49, 5  ;;  %v1729_v62 = vrot.slane %v1727_v51, 4  ;;  %v2276_v38 = vld [vmem:[#allocation2 + $0x20] sm:$0x1] }
 0x10d   : > { %v2204_v43 = vrot.slane %v2203_v48, 4  ;;  %v1735_v63 = vrot.slane %v1733_v39, 5  ;;  %v3934_v0 = vrot.slane %v1822_v46, 9  ;;  %v1900_v34 = vrot.slane %v1823_v52, 5  ;;  %v2286_v45 = vld [vmem:[#allocation2 + $0x48] sm:$0xe] }
 0x10e   : > { %v1720_v61 = vor.u32 %v1719_v57, %v1716_v56  ;;  %v2199_v2 = vsel %vm5026_vm14, %v2194_v59, %v2198_v36  ;;  %v1730_v29 = vor.u32 %v1729_v62, %v1725_v60  ;;  %v1903_v4 = vrot.slane %v1824_v53, 5  ;;  %v2287_v51 = vld [vmem:[#allocation2 + $0x4c] sm:$0xf]  ;;  %v2288_v57 = vld [vmem:[#allocation2 + $0x50] sm:$0x1] }
 0x10f   : > { %v2209_v3 = vsel %vm5026_vm14, %v2204_v43, %v2208_v54  ;;  %v1901_v8 = vsel %vm5020_vm13, %v3934_v0, %v1900_v34  ;;  %v1902_v9 = vrot.slane %v1900_v34, 4  ;;  %v2211_v12 = vshrl.u32 %v2039_v58, 16  ;;  %v2277_v43 = vld [vmem:[#allocation2 + $0x24] sm:$0xe] }
 0x110   : > { %v3957_v6 = vcombine.low %v2199_v2, %v2209_v3  ;;  %v1721_v7 = vrot.slane %v1720_v61, 4  ;;  %v1731_v10 = vrot.slane %v1730_v29, 4  ;;  %v2214_v13 = vshll.u32 %v2039_v58, 16  ;;  %v2279_v2 = vld [vmem:[#allocation2 + $0x2c] sm:$0x1] }
 0x111   : > { %v2220_v11 = vshll.u32 %v2040_v42, 16  ;;  %v1904_v14 = vsel %vm5020_vm13, %v1902_v9, %v1903_v4  ;;  %v2224_v17 = vshrl.u32 %v2040_v42, 16  ;;  %v2230_v16 = vshll.u32 %v2041_v5, 16  ;;  %v2289_v3 = vld [vmem:[#allocation2 + $0x54] sm:$0xe] }
 0x112   : > { %3437 = vmatprep.mubr.bf16.mxu1 %v3957_v6  ;;  %v1726_v15 = vsel %vm5026_vm14, %v1721_v7, %v1725_v60  ;;  %v1736_v20 = vsel %vm5026_vm14, %v1731_v10, %v1735_v63  ;;  %v3942_v21 = vcombine.low %v1901_v8, %v1904_v14  ;;  %v2213_v22 = vrot.slane %v2211_v12, 4  ;;  %v2278_v60 = vld [vmem:[#allocation2 + $0x28] sm:$0xf]  ;;  %v4527_v63 = vld [vmem:[#allocation2 + $0x6c] sm:$0xff]   ;;  %v2290_v6 = vld [vmem:[#allocation2 + $0x58] sm:$0xf] }
 0x113   : > { %3438 = vmatmul.mubr.bf16.gmra.mrb[56].mxu1 %v4525_v1  ;;  %v2216_v23 = vrot.slane %v2214_v13, 5  ;;  %v3925_v26 = vcombine.low %v1726_v15, %v1736_v20  ;;  %v2222_v27 = vrot.slane %v2220_v11, 5  ;;  %v2226_v28 = vrot.slane %v2224_v17, 4  ;;  %v2291_v12 = vld [vmem:[#allocation2 + $0x5c] sm:$0x1] }
 0x114   : > { %v2232_v30 = vrot.slane %v2230_v16, 5  ;;  %v1738_v33 = vshrl.u32 %v1566_v18, 16  ;;  %v1741_v35 = vshll.u32 %v1566_v18, 16  ;;  %v1747_v36 = vshll.u32 %v1567_v19, 16  ;;  %v2280_v17 = vld [vmem:[#allocation2 + $0x30] sm:$0xe] }
 0x115   : > { %v2217_v32 = vor.u32 %v2216_v23, %v2213_v22  ;;  %3341 = vmatmul.mubr.bf16.gmra.mrb[56].mxu0 %v3925_v26  ;;  %v2227_v40 = vor.u32 %v2226_v28, %v2222_v27  ;;  %v1751_v37 = vshrl.u32 %v1567_v19, 16  ;;  %v1757_v41 = vshll.u32 %v1568_v24, 16  ;;  %v2281_v16 = vld [vmem:[#allocation2 + $0x34] sm:$0xf]  ;;  %v2282_v22 = vld [vmem:[#allocation2 + $0x38] sm:$0x1] }
 0x116   : > { %v3959_v44 = vrot.slane %v2274_v25, 9  ;;  %3348 = vmatprep.mubr.bf16.mxu0 %v3942_v21  ;;  %v1740_v47 = vrot.slane %v1738_v33, 4  ;;  %v1743_v48 = vrot.slane %v1741_v35, 5  ;;  %v1749_v49 = vrot.slane %v1747_v36, 5  ;;  %v2292_v23 = vld [vmem:[#allocation2 + $0x60] sm:$0xe] }
 0x117   : > { %v2218_v46 = vrot.slane %v2217_v32, 4  ;;  %v2228_v52 = vrot.slane %v2227_v40, 4  ;;  %v1753_v53 = vrot.slane %v1751_v37, 4  ;;  %v1759_v54 = vrot.slane %v1757_v41, 5  ;;  %v2293_v28 = vld [vmem:[#allocation2 + $0x64] sm:$0xf] }
 0x118   : > { %v2324_v56 = vrot.slane %v2275_v31, 5  ;;  %v1744_v58 = vor.u32 %v1743_v48, %v1740_v47  ;;  %v2327_v42 = vrot.slane %v2276_v38, 5  ;;  %v3963_v59 = vrot.slane %v2286_v45, 9  ;;  %v2283_v35 = vld [vmem:[#allocation2 + $0x3c] sm:$0xe] }
 0x119   : > { %v2223_v39 = vsel %vm5026_vm14, %v2218_v46, %v2222_v27  ;;  %v2233_v62 = vsel %vm5026_vm14, %v2228_v52, %v2232_v30  ;;  %v1754_v61 = vor.u32 %v1753_v53, %v1749_v49  ;;  %v2352_v4 = vrot.slane %v2287_v51, 5  ;;  %v2294_v30 = vld [vmem:[#allocation2 + $0x68] sm:$0x1]  ;;  %v2284_v37 = vld [vmem:[#allocation2 + $0x40] sm:$0xf] }
 0x11a   : > { %v2325_v0 = vsel %vm5020_vm13, %v3959_v44, %v2324_v56  ;;  %v2326_v34 = vrot.slane %v2324_v56, 4  ;;  %v3958_v29 = vcombine.low %v2223_v39, %v2233_v62  ;;  %v1745_v1 = vrot.slane %v1744_v58, 4  ;;  %v2295_v41 = vld [vmem:[#allocation2 + $0x6c] sm:$0xe]  ;;  %v2296_v48 = vld [vmem:[#allocation2 + $0x70] sm:$0xf] }
 0x11b   : > { %v2355_v5 = vrot.slane %v2288_v57, 5  ;;  %v1755_v7 = vrot.slane %v1754_v61, 4  ;;  %v3960_v9 = vrot.slane %v2277_v43, 9  ;;  %v2331_v10 = vrot.slane %v2278_v60, 5 }
 0x11c   : > { %v2328_v8 = vsel %vm5020_vm13, %v2326_v34, %v2327_v42  ;;  %3445 = vmatprep.mubr.bf16.mxu1 %v3958_v29  ;;  %v1750_v13 = vsel %vm5026_vm14, %v1745_v1, %v1749_v49  ;;  %v2353_v15 = vsel %vm5020_vm13, %v3963_v59, %v2352_v4  ;;  %v2354_v14 = vrot.slane %v2352_v4, 4  ;;  %v2297_v42 = vld [vmem:[#allocation2 + $0x74] sm:$0x1] }
 0x11d   : > { %v3967_v11 = vcombine.low %v2325_v0, %v2328_v8  ;;  %v1760_v18 = vsel %vm5026_vm14, %v1755_v7, %v1759_v54  ;;  %3446 = vmatmul.mubr.bf16.gmra.mrb[60].mxu1 %v4527_v63  ;;  %v2332_v19 = vsel %vm5020_vm13, %v3960_v9, %v2331_v10  ;;  %v2333_v20 = vrot.slane %v2331_v10, 4  ;;  %v2285_v54 = vld [vmem:[#allocation2 + $0x44] sm:$0x1] }
 0x11e   : > { %v2334_v21 = vrot.slane %v2279_v2, 5  ;;  %v3926_v24 = vcombine.low %v1750_v13, %v1760_v18  ;;  %v2356_v25 = vsel %vm5020_vm13, %v2354_v14, %v2355_v5  ;;  %v3964_v26 = vrot.slane %v2289_v3, 9 }
 0x11f   : > { %v2359_v27 = vrot.slane %v2290_v6, 5  ;;  %v3971_v31 = vcombine.low %v2353_v15, %v2356_v25  ;;  %v2362_v32 = vrot.slane %v2291_v12, 5  ;;  %v3961_v33 = vrot.slane %v2280_v17, 9 }
 0x120   : > { %v2335_v55 = vsel %vm5020_vm13, %v2333_v20, %v2334_v21  ;;  %3349 = vmatmul.mubr.bf16.gmra.mrb[60].mxu0 %v3926_v24  ;;  %v2338_v40 = vrot.slane %v2281_v16, 5  ;;  %v2341_v44 = vrot.slane %v2282_v22, 5  ;;  %v3965_v45 = vrot.slane %v2292_v23, 9 }
 0x121   : > { %v2360_v36 = vsel %vm5020_vm13, %v3964_v26, %v2359_v27  ;;  %v2361_v38 = vrot.slane %v2359_v27, 4  ;;  %4359 = vmatprep.mubr.bf16.mxu0 %v3967_v11  ;;  %4367 = vmatprep.mubr.bf16.mxu1 %v3971_v31  ;;  %v2366_v46 = vrot.slane %v2293_v28, 5  ;;  %v2369_v47 = vrot.slane %v2294_v30, 5 }
 0x122   : > { %v3968_v49 = vcombine.low %v2332_v19, %v2335_v55  ;;  %v2339_v52 = vsel %vm5020_vm13, %v3961_v33, %v2338_v40  ;;  %v2340_v53 = vrot.slane %v2338_v40, 4  ;;  %v2345_v58 = vrot.slane %v2284_v37, 5 }
 0x123   : > { %v2363_v51 = vsel %vm5020_vm13, %v2361_v38, %v2362_v32  ;;  %v2367_v57 = vsel %vm5020_vm13, %v3965_v45, %v2366_v46  ;;  %v2368_v39 = vrot.slane %v2366_v46, 4  ;;  %v3962_v43 = vrot.slane %v2283_v35, 9 }
 0x124   : > { %v3972_v56 = vcombine.low %v2360_v36, %v2363_v51  ;;  %v2342_v59 = vsel %vm5020_vm13, %v2340_v53, %v2341_v44  ;;  %v3966_v60 = vrot.slane %v2295_v41, 9  ;;  %v2373_v62 = vrot.slane %v2296_v48, 5 }
 0x125   : > { %v3969_v61 = vcombine.low %v2339_v52, %v2342_v59  ;;  %v2370_v63 = vsel %vm5020_vm13, %v2368_v39, %v2369_v47  ;;  %v2347_v0 = vrot.slane %v2345_v58, 4  ;;  %v2348_v34 = vrot.slane %v2285_v54, 5 }
 0x126   : > { %4368 = vmatmul.mubr.bf16.vlgmr.msra.gmra.mrb[64].mxu1 %v3972_v56  ;;  %v3973_v2 = vcombine.low %v2367_v57, %v2370_v63  ;;  %v2374_v3 = vsel %vm5020_vm13, %v3966_v60, %v2373_v62  ;;  %v2375_v29 = vrot.slane %v2373_v62, 4  ;;  %v2376_v1 = vrot.slane %v2297_v42, 5 }
 0x127   : > { %v2346_v5 = vsel %vm5020_vm13, %v3962_v43, %v2345_v58  ;;  %v2349_v6 = vsel %vm5020_vm13, %v2347_v0, %v2348_v34 }
 0x128   : > { %4360 = vmatmul.mubr.bf16.vlgmr.msra.gmra.mrb[64].mxu0 %v3968_v49  ;;  %4371 = vmatprep.mubr.bf16.mxu1 %v3973_v2  ;;  %v2377_v4 = vsel %vm5020_vm13, %v2375_v29, %v2376_v1  ;;  %v3970_v8 = vcombine.low %v2346_v5, %v2349_v6 }
 0x129   : > { %4363 = vmatprep.mubr.bf16.mxu0 %v3969_v61  ;;  %v3974_v7 = vcombine.low %v2374_v3, %v2377_v4 }
 0x12e   : > { %4372 = vmatmul.mubr.bf16.gmra.mrb[68].mxu1 %v3974_v7 }
 0x130   : > { %4364 = vmatmul.mubr.bf16.gmra.mrb[68].mxu0 %v3970_v8 }
 0x173   : > { %v4087_v10 = vpop.f32.mrb[0].mxu0 }
 0x174   : > { %v4151_v9 = vpop.f32.mrb[0].mxu1  ;;  %v4088_v13 = vpop.f32.mrb[1].mxu0 }
 0x175   : > { %v4152_v12 = vpop.f32.mrb[1].mxu1  ;;  %v4089_v14 = vadd.f32 %v4088_v13, %v4087_v10  ;;  %v4090_v17 = vpop.f32.mrb[2].mxu0 }
 0x176   : > { %v4153_v11 = vadd.f32 %v4152_v12, %v4151_v9  ;;  %v4154_v15 = vpop.f32.mrb[2].mxu1  ;;  %v4091_v18 = vpop.f32.mrb[3].mxu0 }
 0x177   : > { %v4155_v16 = vpop.f32.mrb[3].mxu1  ;;  %v4092_v21 = vadd.f32 %v4091_v18, %v4090_v17 }
 0x178   : > { %v4156_v19 = vadd.f32 %v4155_v16, %v4154_v15  ;;  %v5372_v20 = vadd.f32 %v4153_v11, %v4089_v14 }
 0x17a   : > { %v5374_v50 = vadd.f32 %v4156_v19, %v4092_v21 }
 0x17b   : > { %v4093_v23 = vpop.f32.mrb[4].mxu0 }
 0x17c   : > { %v4157_v22 = vpop.f32.mrb[4].mxu1  ;;  %v4094_v25 = vpop.f32.mrb[5].mxu0 }
 0x17d   : > { %v4158_v24 = vpop.f32.mrb[5].mxu1  ;;  %v4095_v28 = vadd.f32 %v4094_v25, %v4093_v23  ;;  %v4096_v30 = vpop.f32.mrb[6].mxu0 }
 0x17e   : > { %v4159_v26 = vadd.f32 %v4158_v24, %v4157_v22  ;;  %v4160_v27 = vpop.f32.mrb[6].mxu1  ;;  %v4097_v55 = vpop.f32.mrb[7].mxu0 }
 0x17f   : > { %v4161_v31 = vpop.f32.mrb[7].mxu1  ;;  %v4098_v35 = vadd.f32 %v4097_v55, %v4096_v30 }
 0x180   : > { %v4162_v32 = vadd.f32 %v4161_v31, %v4160_v27  ;;  %v5376_v33 = vadd.f32 %v4159_v26, %v4095_v28 }
 0x182   : > { %v5378_v36 = vadd.f32 %v4162_v32, %v4098_v35 }
 0x183   : > { %v4099_v40 = vpop.f32.mrb[8].mxu0 }
 0x184   : > { %v4163_v38 = vpop.f32.mrb[8].mxu1  ;;  %v4100_v41 = vpop.f32.mrb[9].mxu0 }
 0x185   : > { %v4164_v37 = vpop.f32.mrb[9].mxu1  ;;  %v4101_v46 = vadd.f32 %v4100_v41, %v4099_v40  ;;  %v4102_v47 = vpop.f32.mrb[10].mxu0 }
 0x186   : > { %v4165_v44 = vadd.f32 %v4164_v37, %v4163_v38  ;;  %v4166_v45 = vpop.f32.mrb[10].mxu1  ;;  %v4103_v49 = vpop.f32.mrb[11].mxu0 }
 0x187   : > { %v4167_v48 = vpop.f32.mrb[11].mxu1  ;;  %v4104_v53 = vadd.f32 %v4103_v49, %v4102_v47 }
 0x188   : > { %v4168_v51 = vadd.f32 %v4167_v48, %v4166_v45  ;;  %v5380_v52 = vadd.f32 %v4165_v44, %v4101_v46 }
 0x18a   : > { %v5382_v54 = vadd.f32 %v4168_v51, %v4104_v53 }
 0x18b   : > { %v4105_v57 = vpop.f32.mrb[12].mxu0 }
 0x18c   : > { %v4169_v56 = vpop.f32.mrb[12].mxu1  ;;  %v4106_v58 = vpop.f32.mrb[13].mxu0 }
 0x18d   : > { %v4170_v39 = vpop.f32.mrb[13].mxu1  ;;  %v4107_v43 = vadd.f32 %v4106_v58, %v4105_v57  ;;  %v4108_v60 = vpop.f32.mrb[14].mxu0 }
 0x18e   : > { %v4171_v42 = vadd.f32 %v4170_v39, %v4169_v56  ;;  %v4172_v59 = vpop.f32.mrb[14].mxu1  ;;  %v4109_v61 = vpop.f32.mrb[15].mxu0 }
 0x18f   : > { %v4173_v62 = vpop.f32.mrb[15].mxu1  ;;  %v4110_v34 = vadd.f32 %v4109_v61, %v4108_v60 }
 0x190   : > { %v4174_v63 = vadd.f32 %v4173_v62, %v4172_v59  ;;  %v5384_v0 = vadd.f32 %v4171_v42, %v4107_v43 }
 0x192   : > { %v5386_v2 = vadd.f32 %v4174_v63, %v4110_v34 }
 0x193   : > { %v4111_v29 = vpop.f32.mrb[16].mxu0 }
 0x194   : > { %v4175_v3 = vpop.f32.mrb[16].mxu1  ;;  %v4112_v4 = vpop.f32.mrb[17].mxu0 }
 0x195   : > { %v4176_v1 = vpop.f32.mrb[17].mxu1  ;;  %v4113_v7 = vadd.f32 %v4112_v4, %v4111_v29  ;;  %v4114_v8 = vpop.f32.mrb[18].mxu0 }
 0x196   : > { %v4177_v5 = vadd.f32 %v4176_v1, %v4175_v3  ;;  %v4178_v6 = vpop.f32.mrb[18].mxu1  ;;  %v4115_v10 = vpop.f32.mrb[19].mxu0 }
 0x197   : > { %v4179_v9 = vpop.f32.mrb[19].mxu1  ;;  %v4116_v11 = vadd.f32 %v4115_v10, %v4114_v8 }
 0x198   : > { %v4180_v12 = vadd.f32 %v4179_v9, %v4178_v6  ;;  %v5388_v13 = vadd.f32 %v4177_v5, %v4113_v7 }
 0x19a   : > { %v5390_v15 = vadd.f32 %v4180_v12, %v4116_v11 }
 0x19b   : > { %v4117_v17 = vpop.f32.mrb[20].mxu0 }
 0x19c   : > { %v4181_v14 = vpop.f32.mrb[20].mxu1  ;;  %v4118_v18 = vpop.f32.mrb[21].mxu0 }
 0x19d   : > { %v4182_v16 = vpop.f32.mrb[21].mxu1  ;;  %v4119_v22 = vadd.f32 %v4118_v18, %v4117_v17  ;;  %v4120_v23 = vpop.f32.mrb[22].mxu0 }
 0x19e   : > { %v4183_v19 = vadd.f32 %v4182_v16, %v4181_v14  ;;  %v4184_v21 = vpop.f32.mrb[22].mxu1  ;;  %v4121_v25 = vpop.f32.mrb[23].mxu0 }
 0x19f   : > { %v4185_v24 = vpop.f32.mrb[23].mxu1  ;;  %v4122_v28 = vadd.f32 %v4121_v25, %v4120_v23 }
 0x1a0   : > { %v4186_v26 = vadd.f32 %v4185_v24, %v4184_v21  ;;  %v5392_v27 = vadd.f32 %v4183_v19, %v4119_v22 }
 0x1a2   : > { %v5394_v30 = vadd.f32 %v4186_v26, %v4122_v28 }
 0x1a3   : > { %v4123_v55 = vpop.f32.mrb[24].mxu0 }
 0x1a4   : > { %v4187_v31 = vpop.f32.mrb[24].mxu1  ;;  %v4124_v35 = vpop.f32.mrb[25].mxu0 }
 0x1a5   : > { %v4188_v32 = vpop.f32.mrb[25].mxu1  ;;  %v4125_v37 = vadd.f32 %v4124_v35, %v4123_v55  ;;  %v4126_v41 = vpop.f32.mrb[26].mxu0 }
 0x1a6   : > { %v4189_v38 = vadd.f32 %v4188_v32, %v4187_v31  ;;  %v4190_v40 = vpop.f32.mrb[26].mxu1  ;;  %v4127_v45 = vpop.f32.mrb[27].mxu0 }
 0x1a7   : > { %v4191_v44 = vpop.f32.mrb[27].mxu1  ;;  %v4128_v48 = vadd.f32 %v4127_v45, %v4126_v41 }
 0x1a8   : > { %v4192_v46 = vadd.f32 %v4191_v44, %v4190_v40  ;;  %v5396_v47 = vadd.f32 %v4189_v38, %v4125_v37 }
 0x1aa   : > { %v5398_v49 = vadd.f32 %v4192_v46, %v4128_v48 }
 0x1ab   : > { %v4129_v53 = vpop.f32.mrb[28].mxu0 }
 0x1ac   : > { %v4193_v51 = vpop.f32.mrb[28].mxu1  ;;  %v4130_v57 = vpop.f32.mrb[29].mxu0 }
 0x1ad   : > { %v4194_v56 = vpop.f32.mrb[29].mxu1  ;;  %v4131_v42 = vadd.f32 %v4130_v57, %v4129_v53  ;;  %v4132_v59 = vpop.f32.mrb[30].mxu0 }
 0x1ae   : > { %v4195_v39 = vadd.f32 %v4194_v56, %v4193_v51  ;;  %v4196_v58 = vpop.f32.mrb[30].mxu1  ;;  %v4133_v60 = vpop.f32.mrb[31].mxu0 }
 0x1af   : > { %v4197_v43 = vpop.f32.mrb[31].mxu1  ;;  %v4134_v63 = vadd.f32 %v4133_v60, %v4132_v59 }
 0x1b0   : > { %v4198_v62 = vadd.f32 %v4197_v43, %v4196_v58  ;;  %v5400_v61 = vadd.f32 %v4195_v39, %v4131_v42 }
 0x1b2   : > { %v5402_v34 = vadd.f32 %v4198_v62, %v4134_v63 }
 0x1b3   : > { %v4215_v6 = vpop.f32.mrb[32].mxu0 }
 0x1b4   : > { %v4279_v3 = vpop.f32.mrb[32].mxu1  ;;  %v4216_v8 = vpop.f32.mrb[33].mxu0 }
 0x1b5   : > { %v4280_v29 = vpop.f32.mrb[33].mxu1  ;;  %v4217_v9 = vadd.f32 %v4216_v8, %v4215_v6  ;;  %v4218_v10 = vpop.f32.mrb[34].mxu0 }
 0x1b6   : > { %v4281_v1 = vadd.f32 %v4280_v29, %v4279_v3  ;;  %v4282_v4 = vpop.f32.mrb[34].mxu1  ;;  %v4219_v12 = vpop.f32.mrb[35].mxu0 }
 0x1b7   : > { %v4283_v5 = vpop.f32.mrb[35].mxu1  ;;  %v3295_v11 = vadd.f32 %v4217_v9, %v5372_v20  ;;  %v4220_v14 = vadd.f32 %v4219_v12, %v4218_v10 }
 0x1b8   : > { %v4284_v7 = vadd.f32 %v4283_v5, %v4282_v4 }
 0x1b9   : > { %v3298_v17 = vadd.f32 %v4220_v14, %v5374_v50  ;;  %v5406_v16 = vadd.f32 %v4281_v1, %v3295_v11 }
 0x1bb   : > { %v5408_v21 = vadd.f32 %v4284_v7, %v3298_v17  ;;  %v4221_v24 = vpop.f32.mrb[36].mxu0 }
 0x1bc   : > { %v4285_v18 = vpop.f32.mrb[36].mxu1  ;;  %v4222_v26 = vpop.f32.mrb[37].mxu0 }
 0x1bd   : > { %v4286_v19 = vpop.f32.mrb[37].mxu1  ;;  %v4223_v31 = vadd.f32 %v4222_v26, %v4221_v24  ;;  %v4224_v55 = vpop.f32.mrb[38].mxu0 }
 0x1be   : > { %v4287_v22 = vadd.f32 %v4286_v19, %v4285_v18  ;;  %v4288_v23 = vpop.f32.mrb[38].mxu1  ;;  %v4225_v32 = vpop.f32.mrb[39].mxu0 }
 0x1bf   : > { %v4289_v25 = vpop.f32.mrb[39].mxu1  ;;  %v3303_v20 = vadd.f32 %v4223_v31, %v5376_v33  ;;  %v4226_v35 = vadd.f32 %v4225_v32, %v4224_v55 }
 0x1c0   : > { %v4290_v28 = vadd.f32 %v4289_v25, %v4288_v23 }
 0x1c1   : > { %v3306_v50 = vadd.f32 %v4226_v35, %v5378_v36  ;;  %v5412_v38 = vadd.f32 %v4287_v22, %v3303_v20 }
 0x1c3   : > { %v5414_v37 = vadd.f32 %v4290_v28, %v3306_v50  ;;  %v4227_v44 = vpop.f32.mrb[40].mxu0 }
 0x1c4   : > { %v4291_v40 = vpop.f32.mrb[40].mxu1  ;;  %v4228_v48 = vpop.f32.mrb[41].mxu0 }
 0x1c5   : > { %v4292_v41 = vpop.f32.mrb[41].mxu1  ;;  %v4229_v53 = vadd.f32 %v4228_v48, %v4227_v44  ;;  %v4230_v56 = vpop.f32.mrb[42].mxu0 }
 0x1c6   : > { %v4293_v45 = vadd.f32 %v4292_v41, %v4291_v40  ;;  %v4294_v46 = vpop.f32.mrb[42].mxu1  ;;  %v4231_v39 = vpop.f32.mrb[43].mxu0 }
 0x1c7   : > { %v4295_v51 = vpop.f32.mrb[43].mxu1  ;;  %v3311_v33 = vadd.f32 %v4229_v53, %v5380_v52  ;;  %v4232_v58 = vadd.f32 %v4231_v39, %v4230_v56 }
 0x1c8   : > { %v4296_v57 = vadd.f32 %v4295_v51, %v4294_v46 }
 0x1c9   : > { %v3314_v36 = vadd.f32 %v4232_v58, %v5382_v54  ;;  %v5418_v42 = vadd.f32 %v4293_v45, %v3311_v33 }
 0x1cb   : > { %v5420_v43 = vadd.f32 %v4296_v57, %v3314_v36  ;;  %v4233_v3 = vpop.f32.mrb[44].mxu0 }
 0x1cc   : > { %v4297_v59 = vpop.f32.mrb[44].mxu1  ;;  %v4234_v1 = vpop.f32.mrb[45].mxu0 }
 0x1cd   : > { %v4298_v60 = vpop.f32.mrb[45].mxu1  ;;  %v4235_v5 = vadd.f32 %v4234_v1, %v4233_v3  ;;  %v4236_v6 = vpop.f32.mrb[46].mxu0 }
 0x1ce   : > { %v4299_v62 = vadd.f32 %v4298_v60, %v4297_v59  ;;  %v4300_v63 = vpop.f32.mrb[46].mxu1  ;;  %v4237_v7 = vpop.f32.mrb[47].mxu0 }
 0x1cf   : > { %v4301_v29 = vpop.f32.mrb[47].mxu1  ;;  %v3319_v52 = vadd.f32 %v4235_v5, %v5384_v0  ;;  %v4238_v8 = vadd.f32 %v4237_v7, %v4236_v6 }
 0x1d0   : > { %v4302_v4 = vadd.f32 %v4301_v29, %v4300_v63 }
 0x1d1   : > { %v3322_v54 = vadd.f32 %v4238_v8, %v5386_v2  ;;  %v5424_v9 = vadd.f32 %v4299_v62, %v3319_v52 }
 0x1d3   : > { %v5426_v12 = vadd.f32 %v4302_v4, %v3322_v54 }
 0x1d5   : > { %v4303_v10 = vpop.f32.mrb[48].mxu1 }
 0x1d6   : > { %v4304_v11 = vpop.f32.mrb[49].mxu1  ;;  %v4239_v14 = vpop.f32.mrb[48].mxu0 }
 0x1d7   : > { %v4305_v17 = vadd.f32 %v4304_v11, %v4303_v10  ;;  %v4306_v18 = vpop.f32.mrb[50].mxu1  ;;  %v4240_v19 = vpop.f32.mrb[49].mxu0 }
 0x1d8   : > { %v4307_v22 = vpop.f32.mrb[51].mxu1  ;;  %v4241_v23 = vadd.f32 %v4240_v19, %v4239_v14  ;;  %v4242_v24 = vpop.f32.mrb[50].mxu0 }
 0x1d9   : > { %v4308_v25 = vadd.f32 %v4307_v22, %v4306_v18  ;;  %v4243_v26 = vpop.f32.mrb[51].mxu0 }
 0x1da   : > { %v3327_v0 = vadd.f32 %v4241_v23, %v5388_v13  ;;  %v4244_v28 = vadd.f32 %v4243_v26, %v4242_v24 }
 0x1dc   : > { %v3330_v2 = vadd.f32 %v4244_v28, %v5390_v15  ;;  %v3424_v31 = vadd.f32 %v4305_v17, %v3327_v0 }
 0x1dd   : > { %v4309_v32 = vpop.f32.mrb[52].mxu1 }
 0x1de   : > { %v3427_v55 = vadd.f32 %v4308_v25, %v3330_v2  ;;  %v4245_v20 = vpop.f32.mrb[52].mxu0  ;;  %v4310_v35 = vpop.f32.mrb[53].mxu1 }
 0x1df   : > { %v4246_v50 = vpop.f32.mrb[53].mxu0  ;;  %v4311_v40 = vadd.f32 %v4310_v35, %v4309_v32  ;;  %v4312_v41 = vpop.f32.mrb[54].mxu1 }
 0x1e0   : > { %v4247_v44 = vadd.f32 %v4246_v50, %v4245_v20  ;;  %v4248_v45 = vpop.f32.mrb[54].mxu0  ;;  %v4313_v46 = vpop.f32.mrb[55].mxu1 }
 0x1e1   : > { %v4249_v48 = vpop.f32.mrb[55].mxu0  ;;  %v4314_v51 = vadd.f32 %v4313_v46, %v4312_v41 }
 0x1e2   : > { %v3335_v53 = vadd.f32 %v4247_v44, %v5392_v27  ;;  %v4250_v56 = vadd.f32 %v4249_v48, %v4248_v45 }
 0x1e4   : > { %v3338_v13 = vadd.f32 %v4250_v56, %v5394_v30  ;;  %v3432_v57 = vadd.f32 %v4311_v40, %v3335_v53 }
 0x1e6   : > { %v4315_v15 = vpop.f32.mrb[56].mxu1  ;;  %v3435_v33 = vadd.f32 %v4314_v51, %v3338_v13 }
 0x1e7   : > { %v4316_v39 = vpop.f32.mrb[57].mxu1 }
 0x1e8   : > { %v4317_v58 = vadd.f32 %v4316_v39, %v4315_v15  ;;  %v4318_v36 = vpop.f32.mrb[58].mxu1  ;;  %v4251_v59 = vpop.f32.mrb[56].mxu0 }
 0x1e9   : > { %v4319_v60 = vpop.f32.mrb[59].mxu1  ;;  %v4252_v62 = vpop.f32.mrb[57].mxu0 }
 0x1ea   : > { %v4320_v63 = vadd.f32 %v4319_v60, %v4318_v36  ;;  %v4253_v3 = vadd.f32 %v4252_v62, %v4251_v59  ;;  %v4254_v29 = vpop.f32.mrb[58].mxu0 }
 0x1eb   : > { %v4255_v1 = vpop.f32.mrb[59].mxu0 }
 0x1ec   : > { %v3343_v4 = vadd.f32 %v4253_v3, %v5396_v47  ;;  %v4256_v5 = vadd.f32 %v4255_v1, %v4254_v29 }
 0x1ee   : > { %v3346_v27 = vadd.f32 %v4256_v5, %v5398_v49  ;;  %v3440_v6 = vadd.f32 %v4317_v58, %v3343_v4 }
 0x1f0   : > { %v4321_v30 = vpop.f32.mrb[60].mxu1  ;;  %v3443_v7 = vadd.f32 %v4320_v63, %v3346_v27 }
 0x1f1   : > { %v4322_v52 = vpop.f32.mrb[61].mxu1 }
 0x1f2   : > { %v4323_v8 = vadd.f32 %v4322_v52, %v4321_v30  ;;  %v4324_v54 = vpop.f32.mrb[62].mxu1 }
 0x1f3   : > { %v4257_v10 = vpop.f32.mrb[60].mxu0  ;;  %v4325_v11 = vpop.f32.mrb[63].mxu1 }
 0x1f4   : > { %v4258_v14 = vpop.f32.mrb[61].mxu0  ;;  %v4326_v17 = vadd.f32 %v4325_v11, %v4324_v54 }
 0x1f5   : > { %v4259_v18 = vadd.f32 %v4258_v14, %v4257_v10  ;;  %v4260_v19 = vpop.f32.mrb[62].mxu0 }
 0x1f6   : > { %v4261_v22 = vpop.f32.mrb[63].mxu0 }
 0x1f7   : > { %v3351_v23 = vadd.f32 %v4259_v18, %v5400_v61  ;;  %v4262_v47 = vadd.f32 %v4261_v22, %v4260_v19 }
 0x1f9   : > { %v4369_v24 = vpop.f32.mrb[64].mxu1  ;;  %v3354_v49 = vadd.f32 %v4262_v47, %v5402_v34  ;;  %v3448_v0 = vadd.f32 %v4323_v8, %v3351_v23 }
 0x1fa   : > { %v5436_v25 = vadd.f32 %v4369_v24, %v3432_v57  ;;  %v3520_v26 = vpop.f32.mrb[65].mxu1 }
 0x1fb   : > { %v5438_v28 = vadd.f32 %v3520_v26, %v3424_v31  ;;  %v4370_v2 = vpop.f32.mrb[66].mxu1  ;;  %v4361_v32 = vpop.f32.mrb[64].mxu0  ;;  %v3451_v35 = vadd.f32 %v4326_v17, %v3354_v49 }
 0x1fc   : > { %3561 = vst [vmem:[%s4768_s16 + $0x50] sm:$0xff] %v5436_v25  ;;  %v5442_v61 = vadd.f32 %v4370_v2, %v3435_v33  ;;  %v3523_v20 = vpop.f32.mrb[67].mxu1  ;;  %v3497_v34 = vadd.f32 %v4361_v32, %v5412_v38  ;;  %v3488_v50 = vpop.f32.mrb[65].mxu0  ;;  %v3598_v23 = vmul.f32 %v5436_v25, %v5436_v25 }
 0x1fd   : > { %3559 = vst [vmem:[%s4768_s16 + $0x40] sm:$0xff] %v5438_v28  ;;  %v3524_v40 = vadd.f32 %v3523_v20, %v3427_v55  ;;  %v3489_v31 = vadd.f32 %v3488_v50, %v5406_v16  ;;  %v4362_v41 = vpop.f32.mrb[66].mxu0 }
 0x1fe   : > { %3562 = vst [vmem:[%s4768_s16 + $0x58] sm:$0xff] %v5442_v61  ;;  %3553 = vst [vmem:[%s4768_s16 + $0x10] sm:$0xff] %v3497_v34  ;;  %v3500_v44 = vadd.f32 %v4362_v41, %v5414_v37  ;;  %v3491_v45 = vpop.f32.mrb[67].mxu0  ;;  %v3590_v57 = vmul.f32 %v3497_v34, %v3497_v34  ;;  %v3599_v49 = vmul.f32 %v5442_v61, %v5442_v61 }
 0x1ff   : > { %3560 = vst [vmem:[%s4768_s16 + $0x48] sm:$0xff] %v3524_v40  ;;  %3551 = vst [vmem:[%s4768_s16] sm:$0xff] %v3489_v31  ;;  %v3492_v46 = vadd.f32 %v3491_v45, %v5408_v21  ;;  %v3588_v48 = vmul.f32 %v3489_v31, %v3489_v31  ;;  %v3597_v19 = vmul.f32 %v3524_v40, %v3524_v40 }
 0x200   : > { %3554 = vst [vmem:[%s4768_s16 + $0x18] sm:$0xff] %v3500_v44  ;;  %v3591_v60 = vmul.f32 %v3500_v44, %v3500_v44 }
 0x201   : > { %v4373_v38 = vpop.f32.mrb[68].mxu1  ;;  %3552 = vst [vmem:[%s4768_s16 + $0x8] sm:$0xff] %v3492_v46  ;;  %v3567_v55 = vadd.f32 %v3492_v46, %v3489_v31  ;;  %v3589_v51 = vmul.f32 %v3492_v46, %v3492_v46 }
 0x202   : > { %v3545_v16 = vadd.f32 %v4373_v38, %v3448_v0  ;;  %v3536_v53 = vpop.f32.mrb[69].mxu1 }
 0x203   : > { %v3537_v56 = vadd.f32 %v3536_v53, %v3440_v6  ;;  %v4374_v13 = vpop.f32.mrb[70].mxu1  ;;  %v3568_v37 = vadd.f32 %v3567_v55, %v3497_v34  ;;  %v3604_v15 = vadd.f32 %v3589_v51, %v3588_v48  ;;  %v4365_v39 = vpop.f32.mrb[68].mxu0 }
 0x204   : > { %3565 = vst [vmem:[%s4768_s16 + $0x70] sm:$0xff] %v3545_v16  ;;  %v3548_v21 = vadd.f32 %v4374_v13, %v3451_v35  ;;  %v3539_v33 = vpop.f32.mrb[71].mxu1  ;;  %v3513_v58 = vadd.f32 %v4365_v39, %v5424_v9  ;;  %v3504_v36 = vpop.f32.mrb[69].mxu0  ;;  %v3602_v50 = vmul.f32 %v3545_v16, %v3545_v16 }
 0x205   : > { %3563 = vst [vmem:[%s4768_s16 + $0x60] sm:$0xff] %v3537_v56  ;;  %v3540_v59 = vadd.f32 %v3539_v33, %v3443_v7  ;;  %v3605_v62 = vadd.f32 %v3604_v15, %v3590_v57  ;;  %v3505_v63 = vadd.f32 %v3504_v36, %v5418_v42  ;;  %v3569_v3 = vadd.f32 %v3568_v37, %v3500_v44  ;;  %v4366_v29 = vpop.f32.mrb[70].mxu0 }
 0x206   : > { %3566 = vst [vmem:[%s4768_s16 + $0x78] sm:$0xff] %v3548_v21  ;;  %3557 = vst [vmem:[%s4768_s16 + $0x30] sm:$0xff] %v3513_v58  ;;  %v3516_v1 = vadd.f32 %v4366_v29, %v5426_v12  ;;  %v3507_v4 = vpop.f32.mrb[71].mxu0  ;;  %v3594_v42 = vmul.f32 %v3513_v58, %v3513_v58  ;;  %v3596_v12 = vmul.f32 %v5438_v28, %v5438_v28 }
 0x207   : > { %3564 = vst [vmem:[%s4768_s16 + $0x68] sm:$0xff] %v3540_v59  ;;  %3555 = vst [vmem:[%s4768_s16 + $0x20] sm:$0xff] %v3505_v63  ;;  %v3570_v5 = vadd.f32 %v3569_v3, %v3505_v63  ;;  %v3592_v9 = vmul.f32 %v3505_v63, %v3505_v63  ;;  %v3606_v27 = vadd.f32 %v3605_v62, %v3591_v60 }
 0x208   : > { %v3508_v6 = vadd.f32 %v3507_v4, %v5420_v43  ;;  %3558 = vst [vmem:[%s4768_s16 + $0x38] sm:$0xff] %v3516_v1  ;;  %v3595_v10 = vmul.f32 %v3516_v1, %v3516_v1  ;;  %v3600_v2 = vmul.f32 %v3537_v56, %v3537_v56  ;;  %v3601_v35 = vmul.f32 %v3540_v59, %v3540_v59 }
 0x209   : > { %v3607_v30 = vadd.f32 %v3606_v27, %v3592_v9  ;;  %v3603_v41 = vmul.f32 %v3548_v21, %v3548_v21 }
 0x20a   : > { %3556 = vst [vmem:[%s4768_s16 + $0x28] sm:$0xff] %v3508_v6  ;;  %v3571_v7 = vadd.f32 %v3570_v5, %v3508_v6  ;;  %v3593_v52 = vmul.f32 %v3508_v6, %v3508_v6 }
 0x20c   : > { %v3572_v8 = vadd.f32 %v3571_v7, %v3513_v58  ;;  %v3608_v54 = vadd.f32 %v3607_v30, %v3593_v52 }
 0x20e   : > { %v3573_v11 = vadd.f32 %v3572_v8, %v3516_v1  ;;  %v3609_v14 = vadd.f32 %v3608_v54, %v3594_v42 }
 0x210   : > { %v3574_v17 = vadd.f32 %v3573_v11, %v5438_v28  ;;  %v3610_v18 = vadd.f32 %v3609_v14, %v3595_v10 }
 0x212   : > { %v3611_v22 = vadd.f32 %v3610_v18, %v3596_v12  ;;  %v3575_v43 = vadd.f32 %v3574_v17, %v3524_v40 }
 0x214   : > { %v3576_v47 = vadd.f32 %v3575_v43, %v5436_v25  ;;  %v3612_v24 = vadd.f32 %v3611_v22, %v3597_v19 }
 0x216   : > { %v3577_v26 = vadd.f32 %v3576_v47, %v5442_v61  ;;  %v3613_v0 = vadd.f32 %v3612_v24, %v3598_v23 }
 0x218   : > { %v3578_v32 = vadd.f32 %v3577_v26, %v3537_v56  ;;  %v3614_v20 = vadd.f32 %v3613_v0, %v3599_v49 }
 0x21a   : > { %v3579_v28 = vadd.f32 %v3578_v32, %v3540_v59  ;;  %v3615_v34 = vadd.f32 %v3614_v20, %v3600_v2 }
 0x21c   : > { %v3580_v40 = vadd.f32 %v3579_v28, %v3545_v16  ;;  %v3616_v31 = vadd.f32 %v3615_v34, %v3601_v35 }
 0x21e   : > { %v3581_v44 = vadd.f32 %v3580_v40, %v3548_v21  ;;  %v3617_v25 = vadd.f32 %v3616_v31, %v3602_v50 }
 0x220   : > { %v3582_v45 = vrot.slane %v3581_v44, 4  ;;  %v3618_v46 = vadd.f32 %v3617_v25, %v3603_v41 }
 0x222   : > { %v3583_v38 = vadd.f32 %v3582_v45, %v3581_v44  ;;  %v3619_v48 = vrot.slane %v3618_v46, 4 }
 0x224   : > { %v3584_v61 = vrot.slane %v3583_v38, 2  ;;  %v3620_v55 = vadd.f32 %v3619_v48, %v3618_v46 }
 0x226   : > { %v3585_v51 = vadd.f32 %v3584_v61, %v3583_v38  ;;  %v3621_v53 = vrot.slane %v3620_v55, 2 }
 0x228   : > { %v3586_v56 = vrot.slane %v3585_v51, 1  ;;  %v3622_v13 = vadd.f32 %v3621_v53, %v3620_v55 }
 0x22a   : > { %v3587_v57 = vadd.f32 %v3586_v56, %v3585_v51  ;;  %v3623_v37 = vrot.slane %v3622_v13, 1 }
 0x22c   : > { %v3624_v15 = vadd.f32 %v3623_v37, %v3622_v13  ;;  %3625 = vst [vmem:[%s4812_s13] sm:$0x1] %v3587_v57 }
 0x22e   : > { %3626 = vst [vmem:[%s4812_s13 + $0x1] sm:$0x1] %v3624_v15 }
 0x22f PF: > { %s18_s28 = sadd.s32 1, %s4567_s28   ;;  %s5516_s24 = smov %s4559_s26 }
 0x230   : > { %p15_p1 = scmp.ge.s32.totalorder %s18_s28, 6   ;;  %s5517_s25 = smov %s4563_s27 }
 0x231   : > { %s5518_s26 = smov %s5521_s29  ;;  %s5519_s27 = smov %s5525_s30 }
 0x232   :  { %17 = sbr.rel (!%p15_p1) target bundleno = 3 (0x3), region = 112 }

</bundles_post_ra>
